<compile_context>
chip_gen: v5e
topology: v5e:2x2
jax: 0.10.0
libtpu: 0.0.40
codegen_flags: <defaults>
</compile_context>

<pallas_src>
import functools
import math

import jax
import jax.numpy as jnp
from jax.experimental import pallas as pl
from jax.experimental.pallas import tpu as pltpu


# ----------------------------------------------------------------------------
# Pallas kernel: matmul with fused bias add and optional ReLU.
# A: [tm, Kp] bf16, W: [Kp, tn] bf16, bias: [1, tn] f32  ->  O: [tm, tn] f32
# K is a single block (full reduction in one MXU pass) -> no accumulator
# scratch, no k-grid axis, no init/finalize phases.
# ----------------------------------------------------------------------------
def _matmul_bias_kernel(a_ref, w_ref, b_ref, o_ref, *, relu):
    out = jnp.dot(a_ref[...], w_ref[...], preferred_element_type=jnp.float32)
    out = out + b_ref[...]                 # f32 epilogue (safe on v5e too)
    if relu:
        out = jnp.maximum(out, 0.0)
    o_ref[...] = out.astype(o_ref.dtype)


def _round_up(x, m):
    return ((x + m - 1) // m) * m


def _choose_tm(M):
    """Large M tiles for roofline efficiency, but keep >= 2 M tiles whenever
    possible so both v7x TensorCores get work on the 'parallel' grid axis."""
    if M >= 8192:
        return 1024
    if M >= 2048:
        return 512
    if M >= 512:
        return 256
    if M >= 128:
        return 64
    if M >= 32:
        return 16
    return 8


def pallas_matmul_bias(a, w, b, relu, tn=128):
    """a: [M, K] f32, w: [K, N] f32, b: [N] f32 -> [M, N] f32."""
    M, K = a.shape
    K2, N = w.shape
    assert K == K2
    tm = _choose_tm(M)
    Mp = _round_up(M, tm)
    Kp = _round_up(K, 8)        # minimal K padding; single block spans full K
    Np = _round_up(N, tn)

    # jnp.pad (fusable under jit) instead of zeros().at[].set() copies.
    a_p = jnp.pad(a, ((0, Mp - M), (0, Kp - K))).astype(jnp.bfloat16)
    w_p = jnp.pad(w, ((0, Kp - K), (0, Np - N))).astype(jnp.bfloat16)
    b_p = jnp.pad(b, (0, Np - N)).reshape(1, Np).astype(jnp.float32)

    grid = (Mp // tm, Np // tn)
    out = pl.pallas_call(
        functools.partial(_matmul_bias_kernel, relu=relu),
        out_shape=jax.ShapeDtypeStruct((Mp, Np), jnp.float32),
        grid_spec=pltpu.PrefetchScalarGridSpec(
            num_scalar_prefetch=0,
            grid=grid,
            in_specs=[
                pl.BlockSpec((tm, Kp), lambda i, j: (i, 0)),
                pl.BlockSpec((Kp, tn), lambda i, j: (0, j)),
                pl.BlockSpec((1, tn), lambda i, j: (0, j)),
            ],
            out_specs=pl.BlockSpec((tm, tn), lambda i, j: (i, j)),
        ),
        compiler_params=pltpu.CompilerParams(
            dimension_semantics=("parallel", "parallel")
        ),
    )(a_p, w_p, b_p)
    return out[:M, :N]


# ----------------------------------------------------------------------------
# 3x3 conv (stride 1, pad 1) via im2col + Pallas matmul.  NHWC in / NHWC out.
# ----------------------------------------------------------------------------
def conv3x3(x, w, b, relu):
    """x: [N, H, W, Cin] (NHWC), w: [Cout, Cin, 3, 3], b: [Cout]."""
    Nb, H, Wd, C = x.shape
    Cout = w.shape[0]
    xp = jnp.pad(x, ((0, 0), (1, 1), (1, 1), (0, 0)))
    # patches ordered (kh, kw, c) along K; channels-last keeps lanes contiguous
    patches = jnp.concatenate(
        [xp[:, kh:kh + H, kw:kw + Wd, :] for kh in range(3) for kw in range(3)],
        axis=-1,
    )                                                   # [N, H, W, 9*C]
    a = patches.reshape(Nb * H * Wd, 9 * C)
    w_mat = jnp.transpose(w, (2, 3, 1, 0)).reshape(9 * C, Cout)   # (kh,kw,c)->Cout
    out = pallas_matmul_bias(a, w_mat, b, relu=relu)    # [N*H*W, Cout]
    return out.reshape(Nb, H, Wd, Cout)                 # NHWC


def maxpool2(x):
    Nb, H, Wd, C = x.shape
    return x.reshape(Nb, H // 2, 2, Wd // 2, 2, C).max(axis=(2, 4))


# ----------------------------------------------------------------------------
# SSD head reshaping (matches torchvision SSDHead permute/reshape semantics:
# ordering is (h, w, anchor, k), which NHWC gives for free).
# ----------------------------------------------------------------------------
def reshape_head(t, k):
    Nb = t.shape[0]
    return t.reshape(Nb, -1, k)


def fused_head(f, cls_w, cls_b, reg_w, reg_b):
    """One im2col + one Pallas GEMM for both heads of a feature map."""
    n_cls = cls_w.shape[0]
    w = jnp.concatenate([cls_w, reg_w], axis=0)
    b = jnp.concatenate([cls_b, reg_b], axis=0)
    out = conv3x3(f, w, b, relu=False)                  # [N, H, W, n_cls+n_reg]
    return out[..., :n_cls], out[..., n_cls:]


def make_anchors(feature_sizes, image_size, num_anchors=4):
    """Simple per-cell default boxes in xyxy pixel coords."""
    anchors = []
    for gi, g in enumerate(feature_sizes):
        stride = image_size / g
        s = stride * 1.5 * (1.0 + 0.5 * gi)
        wh = jnp.array(
            [[s, s], [s * 1.4, s * 1.4], [s * 1.4, s * 0.7], [s * 0.7, s * 1.4]],
            jnp.float32,
        )[:num_anchors]
        ys = (jnp.arange(g, dtype=jnp.float32) + 0.5) * stride
        xs = (jnp.arange(g, dtype=jnp.float32) + 0.5) * stride
        cy, cx = jnp.meshgrid(ys, xs, indexing="ij")
        centers = jnp.stack([cx.ravel(), cy.ravel()], axis=-1)        # [g*g, 2]
        c = jnp.repeat(centers, num_anchors, axis=0)                  # [g*g*A, 2]
        whs = jnp.tile(wh, (g * g, 1))                                # [g*g*A, 2]
        boxes = jnp.concatenate([c - whs / 2.0, c + whs / 2.0], axis=-1)
        anchors.append(boxes)
    return jnp.concatenate(anchors, axis=0)                           # [A_total, 4]


def decode_boxes(rel, anchors):
    """torchvision BoxCoder with weights (10, 10, 5, 5)."""
    wx, wy, ww, wh = 10.0, 10.0, 5.0, 5.0
    bbox_xform_clip = math.log(1000.0 / 16.0)
    widths = anchors[:, 2] - anchors[:, 0]
    heights = anchors[:, 3] - anchors[:, 1]
    ctr_x = anchors[:, 0] + 0.5 * widths
    ctr_y = anchors[:, 1] + 0.5 * heights
    dx = rel[..., 0] / wx
    dy = rel[..., 1] / wy
    dw = jnp.minimum(rel[..., 2] / ww, bbox_xform_clip)
    dh = jnp.minimum(rel[..., 3] / wh, bbox_xform_clip)
    pred_ctr_x = dx * widths + ctr_x
    pred_ctr_y = dy * heights + ctr_y
    pred_w = jnp.exp(dw) * widths
    pred_h = jnp.exp(dh) * heights
    return jnp.stack(
        [
            pred_ctr_x - 0.5 * pred_w,
            pred_ctr_y - 0.5 * pred_h,
            pred_ctr_x + 0.5 * pred_w,
            pred_ctr_y + 0.5 * pred_h,
        ],
        axis=-1,
    )


# ----------------------------------------------------------------------------
# Parameter init (deterministic) and forward pass.
# ----------------------------------------------------------------------------
NUM_CLASSES = 2   # model.head.classification_head.num_classes = 2
NUM_ANCHORS = 4


def init_params(key):
    def conv_init(k, cin, cout):
        return (jax.random.normal(k, (cout, cin, 3, 3), jnp.float32) * 0.05,
                jnp.zeros((cout,), jnp.float32))

    keys = jax.random.split(key, 16)
    p = {}
    p["c1"] = conv_init(keys[0], 3, 8)      # VGG-ish stem (reduced)
    p["c2"] = conv_init(keys[1], 8, 16)
    p["c3"] = conv_init(keys[2], 16, 32)
    p["c4"] = conv_init(keys[3], 32, 32)    # extra SSD feature layer
    feat_ch = [16, 32, 32]
    for i, c in enumerate(feat_ch):
        p[f"cls{i}"] = conv_init(keys[4 + i], c, NUM_ANCHORS * NUM_CLASSES)
        p[f"reg{i}"] = conv_init(keys[8 + i], c, NUM_ANCHORS * 4)
    return p


@jax.jit
def ssd_forward(params, x):
    img_size = x.shape[-1]
    # external NCHW -> internal NHWC, once.
    h = jnp.transpose(x, (0, 2, 3, 1))

    # backbone
    h = conv3x3(h, *params["c1"], relu=True)
    h = maxpool2(h)                                   # H/2
    h = conv3x3(h, *params["c2"], relu=True)
    h = maxpool2(h)                                   # H/4   -> feature map 1
    f1 = h
    h = conv3x3(f1, *params["c3"], relu=True)
    h = maxpool2(h)                                   # H/8   -> feature map 2
    f2 = h
    h = conv3x3(f2, *params["c4"], relu=True)
    h = maxpool2(h)                                   # H/16  -> feature map 3
    f3 = h
    feats = [f1, f2, f3]

    cls_list, reg_list = [], []
    for i, f in enumerate(feats):
        cl, rg = fused_head(f, *params[f"cls{i}"], *params[f"reg{i}"])
        cls_list.append(reshape_head(cl, NUM_CLASSES))
        reg_list.append(reshape_head(rg, 4))
    cls_logits = jnp.concatenate(cls_list, axis=1)    # [N, A_total, 2]
    bbox_reg = jnp.concatenate(reg_list, axis=1)      # [N, A_total, 4]

    feature_sizes = [f.shape[1] for f in feats]       # NHWC: spatial at axis 1
    anchors = make_anchors(feature_sizes, img_size, NUM_ANCHORS)
    boxes = decode_boxes(bbox_reg, anchors)           # [N, A_total, 4] xyxy
    boxes = jnp.clip(boxes, 0.0, float(img_size))
    scores = jax.nn.softmax(cls_logits, axis=-1)      # [N, A_total, 2]
    # TODO(synk): per-class thresholding + batched NMS (torchvision
    # postprocess_detections) not implemented in Pallas.
    return {"boxes": boxes, "scores": scores,
            "cls_logits": cls_logits, "bbox_regression": bbox_reg}


if __name__ == "__main__":
    key = jax.random.PRNGKey(0)
    pkey, xkey = jax.random.split(key)
    params = init_params(pkey)
    x = jax.random.normal(xkey, (2, 3, 64, 64), jnp.float32)  # NCHW, like PyTorch

    out = ssd_forward(params, x)
    jax.block_until_ready(out)

    n_anchors_total = NUM_ANCHORS * (16 * 16 + 8 * 8 + 4 * 4)
    assert out["cls_logits"].shape == (2, n_anchors_total, 2)
    assert out["bbox_regression"].shape == (2, n_anchors_total, 4)
    assert out["boxes"].shape == out["bbox_regression"].shape
    assert bool(jnp.all(jnp.isfinite(out["boxes"])))
    assert bool(jnp.all(jnp.isfinite(out["scores"])))
    print("KERNEL_OK")
</pallas_src>

<mosaic_0001>
module attributes {stable_mosaic.version = 11 : i64} {
  func.func @_matmul_bias_kernel(%arg0: i32, %arg1: i32, %arg2: memref<1024x32xbf16, #tpu.memory_space<vmem>>, %arg3: memref<32x128xbf16, #tpu.memory_space<vmem>>, %arg4: memref<1x128xf32, #tpu.memory_space<vmem>>, %arg5: memref<1024x128xf32, #tpu.memory_space<vmem>>) attributes {dimension_semantics = [#tpu.dimension_semantics<parallel>, #tpu.dimension_semantics<parallel>], iteration_bounds = array<i64: 8, 1>, scalar_prefetch = 0 : i64, scratch_operands = 0 : i64, tpu.core_type = #tpu.core_type<tc>, window_params = [{transform_indices = @transform_0, window_bounds = array<i64: 1024, 32>}, {transform_indices = @transform_1, window_bounds = array<i64: 32, 128>}, {transform_indices = @transform_2, window_bounds = array<i64: 1, 128>}, {transform_indices = @transform_3, window_bounds = array<i64: 1024, 128>}]} {
    %c0 = arith.constant 0 : index
    %c0_0 = arith.constant 0 : index
    %0 = vector.load %arg2[%c0, %c0_0] : memref<1024x32xbf16, #tpu.memory_space<vmem>>, vector<1024x32xbf16>
    %c0_1 = arith.constant 0 : index
    %c0_2 = arith.constant 0 : index
    %1 = vector.load %arg3[%c0_1, %c0_2] : memref<32x128xbf16, #tpu.memory_space<vmem>>, vector<32x128xbf16>
    %cst = arith.constant dense<0.000000e+00> : vector<1024x128xf32>
    %2 = tpu.matmul %0, %1, %cst {dimension_numbers = #tpu.dot_dimension_numbers<[1], [0], [0], [1], [0, 0, 1, 1], [], []>} : vector<1024x32xbf16>, vector<32x128xbf16>, vector<1024x128xf32> -> vector<1024x128xf32>
    %c0_3 = arith.constant 0 : index
    %c0_4 = arith.constant 0 : index
    %3 = vector.load %arg4[%c0_3, %c0_4] : memref<1x128xf32, #tpu.memory_space<vmem>>, vector<1x128xf32>
    %4 = vector.broadcast %3 : vector<1x128xf32> to vector<1024x128xf32>
    %5 = arith.addf %2, %4 : vector<1024x128xf32>
    %cst_5 = arith.constant 0.000000e+00 : f32
    %6 = vector.broadcast %cst_5 : f32 to vector<1024x128xf32>
    %7 = arith.maximumf %5, %6 : vector<1024x128xf32>
    %c0_6 = arith.constant 0 : index
    %c0_7 = arith.constant 0 : index
    %8 = vector.load %arg5[%c0_6, %c0_7] : memref<1024x128xf32, #tpu.memory_space<vmem>>, vector<1024x128xf32>
    tpu.vector_store %arg5[%c0_6, %c0_7], %7 {strides = array<i32>} : memref<1024x128xf32, #tpu.memory_space<vmem>>, vector<1024x128xf32>,
    return
  }
  func.func @transform_0(%arg0: i32, %arg1: i32) -> (i32, i32) {
    %c0_i32 = arith.constant 0 : i32
    %c0_i32_0 = arith.constant 0 : i32
    return %arg0, %c0_i32 : i32, i32
  }
  func.func @transform_1(%arg0: i32, %arg1: i32) -> (i32, i32) {
    %c0_i32 = arith.constant 0 : i32
    %c0_i32_0 = arith.constant 0 : i32
    return %c0_i32, %arg1 : i32, i32
  }
  func.func @transform_2(%arg0: i32, %arg1: i32) -> (i32, i32) {
    %c0_i32 = arith.constant 0 : i32
    %c0_i32_0 = arith.constant 0 : i32
    return %c0_i32, %arg1 : i32, i32
  }
  func.func @transform_3(%arg0: i32, %arg1: i32) -> (i32, i32) {
    %c0_i32 = arith.constant 0 : i32
    return %arg0, %arg1 : i32, i32
  }
}

module attributes {stable_mosaic.version = 11 : i64} {
  func.func @_matmul_bias_kernel(%arg0: i32, %arg1: i32, %arg2: memref<512x72xbf16, #tpu.memory_space<vmem>>, %arg3: memref<72x128xbf16, #tpu.memory_space<vmem>>, %arg4: memref<1x128xf32, #tpu.memory_space<vmem>>, %arg5: memref<512x128xf32, #tpu.memory_space<vmem>>) attributes {dimension_semantics = [#tpu.dimension_semantics<parallel>, #tpu.dimension_semantics<parallel>], iteration_bounds = array<i64: 4, 1>, scalar_prefetch = 0 : i64, scratch_operands = 0 : i64, tpu.core_type = #tpu.core_type<tc>, window_params = [{transform_indices = @transform_0, window_bounds = array<i64: 512, 72>}, {transform_indices = @transform_1, window_bounds = array<i64: 72, 128>}, {transform_indices = @transform_2, window_bounds = array<i64: 1, 128>}, {transform_indices = @transform_3, window_bounds = array<i64: 512, 128>}]} {
    %c0 = arith.constant 0 : index
    %c0_0 = arith.constant 0 : index
    %0 = vector.load %arg2[%c0, %c0_0] : memref<512x72xbf16, #tpu.memory_space<vmem>>, vector<512x72xbf16>
    %c0_1 = arith.constant 0 : index
    %c0_2 = arith.constant 0 : index
    %1 = vector.load %arg3[%c0_1, %c0_2] : memref<72x128xbf16, #tpu.memory_space<vmem>>, vector<72x128xbf16>
    %cst = arith.constant dense<0.000000e+00> : vector<512x128xf32>
    %2 = tpu.matmul %0, %1, %cst {dimension_numbers = #tpu.dot_dimension_numbers<[1], [0], [0], [1], [0, 0, 1, 1], [], []>} : vector<512x72xbf16>, vector<72x128xbf16>, vector<512x128xf32> -> vector<512x128xf32>
    %c0_3 = arith.constant 0 : index
    %c0_4 = arith.constant 0 : index
    %3 = vector.load %arg4[%c0_3, %c0_4] : memref<1x128xf32, #tpu.memory_space<vmem>>, vector<1x128xf32>
    %4 = vector.broadcast %3 : vector<1x128xf32> to vector<512x128xf32>
    %5 = arith.addf %2, %4 : vector<512x128xf32>
    %cst_5 = arith.constant 0.000000e+00 : f32
    %6 = vector.broadcast %cst_5 : f32 to vector<512x128xf32>
    %7 = arith.maximumf %5, %6 : vector<512x128xf32>
    %c0_6 = arith.constant 0 : index
    %c0_7 = arith.constant 0 : index
    %8 = vector.load %arg5[%c0_6, %c0_7] : memref<512x128xf32, #tpu.memory_space<vmem>>, vector<512x128xf32>
    tpu.vector_store %arg5[%c0_6, %c0_7], %7 {strides = array<i32>} : memref<512x128xf32, #tpu.memory_space<vmem>>, vector<512x128xf32>,
    return
  }
  func.func @transform_0(%arg0: i32, %arg1: i32) -> (i32, i32) {
    %c0_i32 = arith.constant 0 : i32
    %c0_i32_0 = arith.constant 0 : i32
    return %arg0, %c0_i32 : i32, i32
  }
  func.func @transform_1(%arg0: i32, %arg1: i32) -> (i32, i32) {
    %c0_i32 = arith.constant 0 : i32
    %c0_i32_0 = arith.constant 0 : i32
    return %c0_i32, %arg1 : i32, i32
  }
  func.func @transform_2(%arg0: i32, %arg1: i32) -> (i32, i32) {
    %c0_i32 = arith.constant 0 : i32
    %c0_i32_0 = arith.constant 0 : i32
    return %c0_i32, %arg1 : i32, i32
  }
  func.func @transform_3(%arg0: i32, %arg1: i32) -> (i32, i32) {
    %c0_i32 = arith.constant 0 : i32
    return %arg0, %arg1 : i32, i32
  }
}

module attributes {stable_mosaic.version = 11 : i64} {
  func.func @_matmul_bias_kernel(%arg0: i32, %arg1: i32, %arg2: memref<256x144xbf16, #tpu.memory_space<vmem>>, %arg3: memref<144x128xbf16, #tpu.memory_space<vmem>>, %arg4: memref<1x128xf32, #tpu.memory_space<vmem>>, %arg5: memref<256x128xf32, #tpu.memory_space<vmem>>) attributes {dimension_semantics = [#tpu.dimension_semantics<parallel>, #tpu.dimension_semantics<parallel>], iteration_bounds = array<i64: 2, 1>, scalar_prefetch = 0 : i64, scratch_operands = 0 : i64, tpu.core_type = #tpu.core_type<tc>, window_params = [{transform_indices = @transform_0, window_bounds = array<i64: 256, 144>}, {transform_indices = @transform_1, window_bounds = array<i64: 144, 128>}, {transform_indices = @transform_2, window_bounds = array<i64: 1, 128>}, {transform_indices = @transform_3, window_bounds = array<i64: 256, 128>}]} {
    %c0 = arith.constant 0 : index
    %c0_0 = arith.constant 0 : index
    %0 = vector.load %arg2[%c0, %c0_0] : memref<256x144xbf16, #tpu.memory_space<vmem>>, vector<256x144xbf16>
    %c0_1 = arith.constant 0 : index
    %c0_2 = arith.constant 0 : index
    %1 = vector.load %arg3[%c0_1, %c0_2] : memref<144x128xbf16, #tpu.memory_space<vmem>>, vector<144x128xbf16>
    %cst = arith.constant dense<0.000000e+00> : vector<256x128xf32>
    %2 = tpu.matmul %0, %1, %cst {dimension_numbers = #tpu.dot_dimension_numbers<[1], [0], [0], [1], [0, 0, 1, 1], [], []>} : vector<256x144xbf16>, vector<144x128xbf16>, vector<256x128xf32> -> vector<256x128xf32>
    %c0_3 = arith.constant 0 : index
    %c0_4 = arith.constant 0 : index
    %3 = vector.load %arg4[%c0_3, %c0_4] : memref<1x128xf32, #tpu.memory_space<vmem>>, vector<1x128xf32>
    %4 = vector.broadcast %3 : vector<1x128xf32> to vector<256x128xf32>
    %5 = arith.addf %2, %4 : vector<256x128xf32>
    %cst_5 = arith.constant 0.000000e+00 : f32
    %6 = vector.broadcast %cst_5 : f32 to vector<256x128xf32>
    %7 = arith.maximumf %5, %6 : vector<256x128xf32>
    %c0_6 = arith.constant 0 : index
    %c0_7 = arith.constant 0 : index
    %8 = vector.load %arg5[%c0_6, %c0_7] : memref<256x128xf32, #tpu.memory_space<vmem>>, vector<256x128xf32>
    tpu.vector_store %arg5[%c0_6, %c0_7], %7 {strides = array<i32>} : memref<256x128xf32, #tpu.memory_space<vmem>>, vector<256x128xf32>,
    return
  }
  func.func @transform_0(%arg0: i32, %arg1: i32) -> (i32, i32) {
    %c0_i32 = arith.constant 0 : i32
    %c0_i32_0 = arith.constant 0 : i32
    return %arg0, %c0_i32 : i32, i32
  }
  func.func @transform_1(%arg0: i32, %arg1: i32) -> (i32, i32) {
    %c0_i32 = arith.constant 0 : i32
    %c0_i32_0 = arith.constant 0 : i32
    return %c0_i32, %arg1 : i32, i32
  }
  func.func @transform_2(%arg0: i32, %arg1: i32) -> (i32, i32) {
    %c0_i32 = arith.constant 0 : i32
    %c0_i32_0 = arith.constant 0 : i32
    return %c0_i32, %arg1 : i32, i32
  }
  func.func @transform_3(%arg0: i32, %arg1: i32) -> (i32, i32) {
    %c0_i32 = arith.constant 0 : i32
    return %arg0, %arg1 : i32, i32
  }
}

module attributes {stable_mosaic.version = 11 : i64} {
  func.func @_matmul_bias_kernel(%arg0: i32, %arg1: i32, %arg2: memref<64x288xbf16, #tpu.memory_space<vmem>>, %arg3: memref<288x128xbf16, #tpu.memory_space<vmem>>, %arg4: memref<1x128xf32, #tpu.memory_space<vmem>>, %arg5: memref<64x128xf32, #tpu.memory_space<vmem>>) attributes {dimension_semantics = [#tpu.dimension_semantics<parallel>, #tpu.dimension_semantics<parallel>], iteration_bounds = array<i64: 2, 1>, scalar_prefetch = 0 : i64, scratch_operands = 0 : i64, tpu.core_type = #tpu.core_type<tc>, window_params = [{transform_indices = @transform_0, window_bounds = array<i64: 64, 288>}, {transform_indices = @transform_1, window_bounds = array<i64: 288, 128>}, {transform_indices = @transform_2, window_bounds = array<i64: 1, 128>}, {transform_indices = @transform_3, window_bounds = array<i64: 64, 128>}]} {
    %c0 = arith.constant 0 : index
    %c0_0 = arith.constant 0 : index
    %0 = vector.load %arg2[%c0, %c0_0] : memref<64x288xbf16, #tpu.memory_space<vmem>>, vector<64x288xbf16>
    %c0_1 = arith.constant 0 : index
    %c0_2 = arith.constant 0 : index
    %1 = vector.load %arg3[%c0_1, %c0_2] : memref<288x128xbf16, #tpu.memory_space<vmem>>, vector<288x128xbf16>
    %cst = arith.constant dense<0.000000e+00> : vector<64x128xf32>
    %2 = tpu.matmul %0, %1, %cst {dimension_numbers = #tpu.dot_dimension_numbers<[1], [0], [0], [1], [0, 0, 1, 1], [], []>} : vector<64x288xbf16>, vector<288x128xbf16>, vector<64x128xf32> -> vector<64x128xf32>
    %c0_3 = arith.constant 0 : index
    %c0_4 = arith.constant 0 : index
    %3 = vector.load %arg4[%c0_3, %c0_4] : memref<1x128xf32, #tpu.memory_space<vmem>>, vector<1x128xf32>
    %4 = vector.broadcast %3 : vector<1x128xf32> to vector<64x128xf32>
    %5 = arith.addf %2, %4 : vector<64x128xf32>
    %cst_5 = arith.constant 0.000000e+00 : f32
    %6 = vector.broadcast %cst_5 : f32 to vector<64x128xf32>
    %7 = arith.maximumf %5, %6 : vector<64x128xf32>
    %c0_6 = arith.constant 0 : index
    %c0_7 = arith.constant 0 : index
    %8 = vector.load %arg5[%c0_6, %c0_7] : memref<64x128xf32, #tpu.memory_space<vmem>>, vector<64x128xf32>
    tpu.vector_store %arg5[%c0_6, %c0_7], %7 {strides = array<i32>} : memref<64x128xf32, #tpu.memory_space<vmem>>, vector<64x128xf32>,
    return
  }
  func.func @transform_0(%arg0: i32, %arg1: i32) -> (i32, i32) {
    %c0_i32 = arith.constant 0 : i32
    %c0_i32_0 = arith.constant 0 : i32
    return %arg0, %c0_i32 : i32, i32
  }
  func.func @transform_1(%arg0: i32, %arg1: i32) -> (i32, i32) {
    %c0_i32 = arith.constant 0 : i32
    %c0_i32_0 = arith.constant 0 : i32
    return %c0_i32, %arg1 : i32, i32
  }
  func.func @transform_2(%arg0: i32, %arg1: i32) -> (i32, i32) {
    %c0_i32 = arith.constant 0 : i32
    %c0_i32_0 = arith.constant 0 : i32
    return %c0_i32, %arg1 : i32, i32
  }
  func.func @transform_3(%arg0: i32, %arg1: i32) -> (i32, i32) {
    %c0_i32 = arith.constant 0 : i32
    return %arg0, %arg1 : i32, i32
  }
}

module attributes {stable_mosaic.version = 11 : i64} {
  func.func @_matmul_bias_kernel(%arg0: i32, %arg1: i32, %arg2: memref<16x288xbf16, #tpu.memory_space<vmem>>, %arg3: memref<288x128xbf16, #tpu.memory_space<vmem>>, %arg4: memref<1x128xf32, #tpu.memory_space<vmem>>, %arg5: memref<16x128xf32, #tpu.memory_space<vmem>>) attributes {dimension_semantics = [#tpu.dimension_semantics<parallel>, #tpu.dimension_semantics<parallel>], iteration_bounds = array<i64: 2, 1>, scalar_prefetch = 0 : i64, scratch_operands = 0 : i64, tpu.core_type = #tpu.core_type<tc>, window_params = [{transform_indices = @transform_0, window_bounds = array<i64: 16, 288>}, {transform_indices = @transform_1, window_bounds = array<i64: 288, 128>}, {transform_indices = @transform_2, window_bounds = array<i64: 1, 128>}, {transform_indices = @transform_3, window_bounds = array<i64: 16, 128>}]} {
    %c0 = arith.constant 0 : index
    %c0_0 = arith.constant 0 : index
    %0 = vector.load %arg2[%c0, %c0_0] : memref<16x288xbf16, #tpu.memory_space<vmem>>, vector<16x288xbf16>
    %c0_1 = arith.constant 0 : index
    %c0_2 = arith.constant 0 : index
    %1 = vector.load %arg3[%c0_1, %c0_2] : memref<288x128xbf16, #tpu.memory_space<vmem>>, vector<288x128xbf16>
    %cst = arith.constant dense<0.000000e+00> : vector<16x128xf32>
    %2 = tpu.matmul %0, %1, %cst {dimension_numbers = #tpu.dot_dimension_numbers<[1], [0], [0], [1], [0, 0, 1, 1], [], []>} : vector<16x288xbf16>, vector<288x128xbf16>, vector<16x128xf32> -> vector<16x128xf32>
    %c0_3 = arith.constant 0 : index
    %c0_4 = arith.constant 0 : index
    %3 = vector.load %arg4[%c0_3, %c0_4] : memref<1x128xf32, #tpu.memory_space<vmem>>, vector<1x128xf32>
    %4 = vector.broadcast %3 : vector<1x128xf32> to vector<16x128xf32>
    %5 = arith.addf %2, %4 : vector<16x128xf32>
    %c0_5 = arith.constant 0 : index
    %c0_6 = arith.constant 0 : index
    %6 = vector.load %arg5[%c0_5, %c0_6] : memref<16x128xf32, #tpu.memory_space<vmem>>, vector<16x128xf32>
    tpu.vector_store %arg5[%c0_5, %c0_6], %5 {strides = array<i32>} : memref<16x128xf32, #tpu.memory_space<vmem>>, vector<16x128xf32>,
    return
  }
  func.func @transform_0(%arg0: i32, %arg1: i32) -> (i32, i32) {
    %c0_i32 = arith.constant 0 : i32
    %c0_i32_0 = arith.constant 0 : i32
    return %arg0, %c0_i32 : i32, i32
  }
  func.func @transform_1(%arg0: i32, %arg1: i32) -> (i32, i32) {
    %c0_i32 = arith.constant 0 : i32
    %c0_i32_0 = arith.constant 0 : i32
    return %c0_i32, %arg1 : i32, i32
  }
  func.func @transform_2(%arg0: i32, %arg1: i32) -> (i32, i32) {
    %c0_i32 = arith.constant 0 : i32
    %c0_i32_0 = arith.constant 0 : i32
    return %c0_i32, %arg1 : i32, i32
  }
  func.func @transform_3(%arg0: i32, %arg1: i32) -> (i32, i32) {
    %c0_i32 = arith.constant 0 : i32
    return %arg0, %arg1 : i32, i32
  }
}

module attributes {stable_mosaic.version = 11 : i64} {
  func.func @_matmul_bias_kernel(%arg0: i32, %arg1: i32, %arg2: memref<64x288xbf16, #tpu.memory_space<vmem>>, %arg3: memref<288x128xbf16, #tpu.memory_space<vmem>>, %arg4: memref<1x128xf32, #tpu.memory_space<vmem>>, %arg5: memref<64x128xf32, #tpu.memory_space<vmem>>) attributes {dimension_semantics = [#tpu.dimension_semantics<parallel>, #tpu.dimension_semantics<parallel>], iteration_bounds = array<i64: 2, 1>, scalar_prefetch = 0 : i64, scratch_operands = 0 : i64, tpu.core_type = #tpu.core_type<tc>, window_params = [{transform_indices = @transform_0, window_bounds = array<i64: 64, 288>}, {transform_indices = @transform_1, window_bounds = array<i64: 288, 128>}, {transform_indices = @transform_2, window_bounds = array<i64: 1, 128>}, {transform_indices = @transform_3, window_bounds = array<i64: 64, 128>}]} {
    %c0 = arith.constant 0 : index
    %c0_0 = arith.constant 0 : index
    %0 = vector.load %arg2[%c0, %c0_0] : memref<64x288xbf16, #tpu.memory_space<vmem>>, vector<64x288xbf16>
    %c0_1 = arith.constant 0 : index
    %c0_2 = arith.constant 0 : index
    %1 = vector.load %arg3[%c0_1, %c0_2] : memref<288x128xbf16, #tpu.memory_space<vmem>>, vector<288x128xbf16>
    %cst = arith.constant dense<0.000000e+00> : vector<64x128xf32>
    %2 = tpu.matmul %0, %1, %cst {dimension_numbers = #tpu.dot_dimension_numbers<[1], [0], [0], [1], [0, 0, 1, 1], [], []>} : vector<64x288xbf16>, vector<288x128xbf16>, vector<64x128xf32> -> vector<64x128xf32>
    %c0_3 = arith.constant 0 : index
    %c0_4 = arith.constant 0 : index
    %3 = vector.load %arg4[%c0_3, %c0_4] : memref<1x128xf32, #tpu.memory_space<vmem>>, vector<1x128xf32>
    %4 = vector.broadcast %3 : vector<1x128xf32> to vector<64x128xf32>
    %5 = arith.addf %2, %4 : vector<64x128xf32>
    %c0_5 = arith.constant 0 : index
    %c0_6 = arith.constant 0 : index
    %6 = vector.load %arg5[%c0_5, %c0_6] : memref<64x128xf32, #tpu.memory_space<vmem>>, vector<64x128xf32>
    tpu.vector_store %arg5[%c0_5, %c0_6], %5 {strides = array<i32>} : memref<64x128xf32, #tpu.memory_space<vmem>>, vector<64x128xf32>,
    return
  }
  func.func @transform_0(%arg0: i32, %arg1: i32) -> (i32, i32) {
    %c0_i32 = arith.constant 0 : i32
    %c0_i32_0 = arith.constant 0 : i32
    return %arg0, %c0_i32 : i32, i32
  }
  func.func @transform_1(%arg0: i32, %arg1: i32) -> (i32, i32) {
    %c0_i32 = arith.constant 0 : i32
    %c0_i32_0 = arith.constant 0 : i32
    return %c0_i32, %arg1 : i32, i32
  }
  func.func @transform_2(%arg0: i32, %arg1: i32) -> (i32, i32) {
    %c0_i32 = arith.constant 0 : i32
    %c0_i32_0 = arith.constant 0 : i32
    return %c0_i32, %arg1 : i32, i32
  }
  func.func @transform_3(%arg0: i32, %arg1: i32) -> (i32, i32) {
    %c0_i32 = arith.constant 0 : i32
    return %arg0, %arg1 : i32, i32
  }
}

module attributes {stable_mosaic.version = 11 : i64} {
  func.func @_matmul_bias_kernel(%arg0: i32, %arg1: i32, %arg2: memref<256x144xbf16, #tpu.memory_space<vmem>>, %arg3: memref<144x128xbf16, #tpu.memory_space<vmem>>, %arg4: memref<1x128xf32, #tpu.memory_space<vmem>>, %arg5: memref<256x128xf32, #tpu.memory_space<vmem>>) attributes {dimension_semantics = [#tpu.dimension_semantics<parallel>, #tpu.dimension_semantics<parallel>], iteration_bounds = array<i64: 2, 1>, scalar_prefetch = 0 : i64, scratch_operands = 0 : i64, tpu.core_type = #tpu.core_type<tc>, window_params = [{transform_indices = @transform_0, window_bounds = array<i64: 256, 144>}, {transform_indices = @transform_1, window_bounds = array<i64: 144, 128>}, {transform_indices = @transform_2, window_bounds = array<i64: 1, 128>}, {transform_indices = @transform_3, window_bounds = array<i64: 256, 128>}]} {
    %c0 = arith.constant 0 : index
    %c0_0 = arith.constant 0 : index
    %0 = vector.load %arg2[%c0, %c0_0] : memref<256x144xbf16, #tpu.memory_space<vmem>>, vector<256x144xbf16>
    %c0_1 = arith.constant 0 : index
    %c0_2 = arith.constant 0 : index
    %1 = vector.load %arg3[%c0_1, %c0_2] : memref<144x128xbf16, #tpu.memory_space<vmem>>, vector<144x128xbf16>
    %cst = arith.constant dense<0.000000e+00> : vector<256x128xf32>
    %2 = tpu.matmul %0, %1, %cst {dimension_numbers = #tpu.dot_dimension_numbers<[1], [0], [0], [1], [0, 0, 1, 1], [], []>} : vector<256x144xbf16>, vector<144x128xbf16>, vector<256x128xf32> -> vector<256x128xf32>
    %c0_3 = arith.constant 0 : index
    %c0_4 = arith.constant 0 : index
    %3 = vector.load %arg4[%c0_3, %c0_4] : memref<1x128xf32, #tpu.memory_space<vmem>>, vector<1x128xf32>
    %4 = vector.broadcast %3 : vector<1x128xf32> to vector<256x128xf32>
    %5 = arith.addf %2, %4 : vector<256x128xf32>
    %c0_5 = arith.constant 0 : index
    %c0_6 = arith.constant 0 : index
    %6 = vector.load %arg5[%c0_5, %c0_6] : memref<256x128xf32, #tpu.memory_space<vmem>>, vector<256x128xf32>
    tpu.vector_store %arg5[%c0_5, %c0_6], %5 {strides = array<i32>} : memref<256x128xf32, #tpu.memory_space<vmem>>, vector<256x128xf32>,
    return
  }
  func.func @transform_0(%arg0: i32, %arg1: i32) -> (i32, i32) {
    %c0_i32 = arith.constant 0 : i32
    %c0_i32_0 = arith.constant 0 : i32
    return %arg0, %c0_i32 : i32, i32
  }
  func.func @transform_1(%arg0: i32, %arg1: i32) -> (i32, i32) {
    %c0_i32 = arith.constant 0 : i32
    %c0_i32_0 = arith.constant 0 : i32
    return %c0_i32, %arg1 : i32, i32
  }
  func.func @transform_2(%arg0: i32, %arg1: i32) -> (i32, i32) {
    %c0_i32 = arith.constant 0 : i32
    %c0_i32_0 = arith.constant 0 : i32
    return %c0_i32, %arg1 : i32, i32
  }
  func.func @transform_3(%arg0: i32, %arg1: i32) -> (i32, i32) {
    %c0_i32 = arith.constant 0 : i32
    return %arg0, %arg1 : i32, i32
  }
}

</mosaic_0001>

<bundles_post_ra>
// kernel: ssd_forward.7
= control target key start
LH: loop header
LB: loop body
LE: loop exit
PB: predicated region body
PF: predicated region fallthrough
CT: control target
= control target key end

     0   :  { %s2057_s12 = smov 0   ;;  %s2059_s13 = smov 0   ;;  %s2480_s0 = inlined_call_operand.vmem [shape: bf16[8192,32], index: 0, kind: input, shape index: {}]   ;;  %s2481_s1 = inlined_call_operand.vmem [shape: bf16[32,128], index: 1, kind: input, shape index: {}]   ;;  %s2482_s2 = inlined_call_operand.vmem [shape: f32[1,128], index: 2, kind: input, shape index: {}]   ;;  %s2483_s3 = inlined_call_operand.vmem [shape: f32[8192,128], index: 3, kind: output, shape index: {}]  }
   0x1   :  { %s2061_s14 = smov 0  }
   0x2 LB: > { %s25_s15 = sadd.s32 1, %s2031_s13  ;;  %p1580_p0 = scmp.ge.s32.totalorder %s2035_s14, 1  ;;  %s2035_s14 = sphi %s2061_s14, %s13_s14   ;;  %s2031_s13 = sphi %s2059_s13, %s2485_s13   ;;  %s2027_s12 = sphi %s2057_s12, %s2484_s12  }
   0x3   : > { %p27_p1 = scmp.ge.s32.totalorder %s25_s15, 8  ;;  %p169_p2 = scmp.lt.s32.totalorder %s2035_s14, 9 }
   0x5   : > { %s2487_s15 = smov (%p27_p1, %s25_s15), 0  ;;  %p170_p3 = pnand %p1580_p0, %p169_p2 }
   0x6   : > { %s1581_s18 = sshll.u32 (!%p170_p3), %s2027_s12, 7 }
   0x7   : > { %173 = sbr.rel (%p170_p3) target bundleno = 407 (0x197), region = 32  ;;  %p204_p4 = scmp.lt.s32.totalorder (!%p170_p3), %s1581_s18, 1023 }
   0xc   : > { %v1980_v0 = vld [vmem:[%s2481_s1 + $0x8] sm:$0xff]  ;;  %v1979_v1 = vld [vmem:[%s2481_s1] sm:$0xff]  ;;  %s2489_s18 = smov (!%p204_p4, %s1581_s18), 1023  ;;  %vm694_vm0 = vcmask 261120  }
   0xd   : > { %893 = vmatpush.bf16.msra.mxu0 %v1980_v0  ;;  %1981 = vmatpush.bf16.msra.mxu1 %v1980_v0  ;;  %s1582_s21 = sshll.u32 %s2489_s18, 2  ;;  %v2156_v34 = vld [vmem:[%s2482_s2] ss:$0 sm:$0xff]  ;;  %s1584_s27 = sshll.u32 %s2489_s18, 3 }
   0xe   : > { %1982 = vmatpush.bf16.msra.mxu2 %v1980_v0  ;;  %1983 = vmatpush.bf16.msra.mxu3 %v1980_v0  ;;  %s2087_s24 = scalar_lea.vmem %s2480_s0, %s1582_s21  ;;  %s2168_s30 = scalar_lea.vmem %s2483_s3, %s1584_s27 }
   0xf   : > { %v1915_v2 = vld [vmem:[%s2087_s24] sm:$0xff]  ;;  %v1916_v6 = vld [vmem:[%s2087_s24 + $0x8] sm:$0xff]  ;;  %v1917_v10 = vld [vmem:[%s2087_s24 + $0x10] sm:$0xff] }
  0x10   : > { %v1931_v3 = vld [vmem:[%s2087_s24 + $0x80] sm:$0xff]  ;;  %v1932_v7 = vld [vmem:[%s2087_s24 + $0x88] sm:$0xff]  ;;  %v1933_v11 = vld [vmem:[%s2087_s24 + $0x90] sm:$0xff] }
  0x11   : > { %894 = vmatpush.bf16.msra.mxu0 %v1979_v1  ;;  %1984 = vmatpush.bf16.msra.mxu1 %v1979_v1  ;;  %v1947_v4 = vld [vmem:[%s2087_s24 + $0x100] sm:$0xff]  ;;  %v1948_v8 = vld [vmem:[%s2087_s24 + $0x108] sm:$0xff]  ;;  %v1949_v12 = vld [vmem:[%s2087_s24 + $0x110] sm:$0xff] }
  0x12   : > { %1985 = vmatpush.bf16.msra.mxu2 %v1979_v1  ;;  %1986 = vmatpush.bf16.msra.mxu3 %v1979_v1  ;;  %v1963_v5 = vld [vmem:[%s2087_s24 + $0x180] sm:$0xff]  ;;  %v1964_v9 = vld [vmem:[%s2087_s24 + $0x188] sm:$0xff]  ;;  %v1965_v13 = vld [vmem:[%s2087_s24 + $0x190] sm:$0xff] }
  0x13   : > { %v1918_v14 = vld [vmem:[%s2087_s24 + $0x18] sm:$0xff]  ;;  %v1919_v18 = vld [vmem:[%s2087_s24 + $0x20] sm:$0xff]  ;;  %v1920_v22 = vld [vmem:[%s2087_s24 + $0x28] sm:$0xff] }
  0x14   : > { %1849 = vmatmul.msk.bf16.vlgmr.msra.gmra.mxu0 %vm694_vm0, %v1915_v2  ;;  %1865 = vmatmul.msk.bf16.vlgmr.msra.gmra.mxu1 %vm694_vm0, %v1931_v3  ;;  %v1934_v15 = vld [vmem:[%s2087_s24 + $0x98] sm:$0xff]  ;;  %v1935_v19 = vld [vmem:[%s2087_s24 + $0xa0] sm:$0xff]  ;;  %v1936_v23 = vld [vmem:[%s2087_s24 + $0xa8] sm:$0xff] }
  0x15   : > { %1881 = vmatmul.msk.bf16.vlgmr.msra.gmra.mxu2 %vm694_vm0, %v1947_v4  ;;  %1897 = vmatmul.msk.bf16.vlgmr.msra.gmra.mxu3 %vm694_vm0, %v1963_v5  ;;  %v1950_v16 = vld [vmem:[%s2087_s24 + $0x118] sm:$0xff]  ;;  %v1951_v20 = vld [vmem:[%s2087_s24 + $0x120] sm:$0xff]  ;;  %v1952_v24 = vld [vmem:[%s2087_s24 + $0x128] sm:$0xff] }
  0x16   : > { %v1966_v17 = vld [vmem:[%s2087_s24 + $0x198] sm:$0xff]  ;;  %v1967_v21 = vld [vmem:[%s2087_s24 + $0x1a0] sm:$0xff]  ;;  %v1968_v25 = vld [vmem:[%s2087_s24 + $0x1a8] sm:$0xff] }
  0x17   : > { %v1921_v26 = vld [vmem:[%s2087_s24 + $0x30] sm:$0xff]  ;;  %v1922_v30 = vld [vmem:[%s2087_s24 + $0x38] sm:$0xff]  ;;  %v1923_v35 = vld [vmem:[%s2087_s24 + $0x40] sm:$0xff] }
  0x18   : > { %v1937_v27 = vld [vmem:[%s2087_s24 + $0xb0] sm:$0xff]  ;;  %v1938_v31 = vld [vmem:[%s2087_s24 + $0xb8] sm:$0xff]  ;;  %v1939_v36 = vld [vmem:[%s2087_s24 + $0xc0] sm:$0xff] }
  0x19   : > { %v1953_v28 = vld [vmem:[%s2087_s24 + $0x130] sm:$0xff]  ;;  %v1954_v32 = vld [vmem:[%s2087_s24 + $0x138] sm:$0xff]  ;;  %v1955_v39 = vld [vmem:[%s2087_s24 + $0x140] sm:$0xff] }
  0x1a   : > { %v1969_v29 = vld [vmem:[%s2087_s24 + $0x1b0] sm:$0xff]  ;;  %v1970_v33 = vld [vmem:[%s2087_s24 + $0x1b8] sm:$0xff]  ;;  %v1971_v40 = vld [vmem:[%s2087_s24 + $0x1c0] sm:$0xff] }
  0x1b   : > { %v1924_v59 = vld [vmem:[%s2087_s24 + $0x48] sm:$0xff] }
  0x1c   : > { %v1940_v60 = vld [vmem:[%s2087_s24 + $0xc8] sm:$0xff] }
  0x1d   : > { %v1956_v1 = vld [vmem:[%s2087_s24 + $0x148] sm:$0xff] }
  0x1e   : > { %v1972_v2 = vld [vmem:[%s2087_s24 + $0x1c8] sm:$0xff] }
  0x24   : > { %1850 = vmatmul.msk.bf16.gmra.mxu0 %vm694_vm0, %v1916_v6  ;;  %1866 = vmatmul.msk.bf16.gmra.mxu1 %vm694_vm0, %v1932_v7 }
  0x25   : > { %1882 = vmatmul.msk.bf16.gmra.mxu2 %vm694_vm0, %v1948_v8  ;;  %1898 = vmatmul.msk.bf16.gmra.mxu3 %vm694_vm0, %v1964_v9 }
  0x34   : > { %1851 = vmatmul.msk.bf16.gmra.mxu0 %vm694_vm0, %v1917_v10  ;;  %1867 = vmatmul.msk.bf16.gmra.mxu1 %vm694_vm0, %v1933_v11 }
  0x35   : > { %1883 = vmatmul.msk.bf16.gmra.mxu2 %vm694_vm0, %v1949_v12  ;;  %1899 = vmatmul.msk.bf16.gmra.mxu3 %vm694_vm0, %v1965_v13 }
  0x44   : > { %1852 = vmatmul.msk.bf16.gmra.mxu0 %vm694_vm0, %v1918_v14  ;;  %1868 = vmatmul.msk.bf16.gmra.mxu1 %vm694_vm0, %v1934_v15 }
  0x45   : > { %1884 = vmatmul.msk.bf16.gmra.mxu2 %vm694_vm0, %v1950_v16  ;;  %1900 = vmatmul.msk.bf16.gmra.mxu3 %vm694_vm0, %v1966_v17 }
  0x54   : > { %1853 = vmatmul.msk.bf16.gmra.mxu0 %vm694_vm0, %v1919_v18  ;;  %1869 = vmatmul.msk.bf16.gmra.mxu1 %vm694_vm0, %v1935_v19 }
  0x55   : > { %1885 = vmatmul.msk.bf16.gmra.mxu2 %vm694_vm0, %v1951_v20  ;;  %1901 = vmatmul.msk.bf16.gmra.mxu3 %vm694_vm0, %v1967_v21 }
  0x64   : > { %1854 = vmatmul.msk.bf16.gmra.mxu0 %vm694_vm0, %v1920_v22  ;;  %1870 = vmatmul.msk.bf16.gmra.mxu1 %vm694_vm0, %v1936_v23  ;;  %v1925_v23 = vld [vmem:[%s2087_s24 + $0x50] sm:$0xff] }
  0x65   : > { %1886 = vmatmul.msk.bf16.gmra.mxu2 %vm694_vm0, %v1952_v24  ;;  %1902 = vmatmul.msk.bf16.gmra.mxu3 %vm694_vm0, %v1968_v25  ;;  %v1941_v24 = vld [vmem:[%s2087_s24 + $0xd0] sm:$0xff] }
  0x74   : > { %1855 = vmatmul.msk.bf16.gmra.mxu0 %vm694_vm0, %v1921_v26  ;;  %1871 = vmatmul.msk.bf16.gmra.mxu1 %vm694_vm0, %v1937_v27 }
  0x75   : > { %1887 = vmatmul.msk.bf16.gmra.mxu2 %vm694_vm0, %v1953_v28  ;;  %1903 = vmatmul.msk.bf16.gmra.mxu3 %vm694_vm0, %v1969_v29  ;;  %v1957_v29 = vld [vmem:[%s2087_s24 + $0x150] sm:$0xff] }
  0x84   : > { %1856 = vmatmul.msk.bf16.gmra.mxu0 %vm694_vm0, %v1922_v30  ;;  %1872 = vmatmul.msk.bf16.gmra.mxu1 %vm694_vm0, %v1938_v31  ;;  %v1973_v30 = vld [vmem:[%s2087_s24 + $0x1d0] sm:$0xff] }
  0x85   : > { %1888 = vmatmul.msk.bf16.gmra.mxu2 %vm694_vm0, %v1954_v32  ;;  %1904 = vmatmul.msk.bf16.gmra.mxu3 %vm694_vm0, %v1970_v33 }
  0x91   : > { %v896_v37 = vpop.f32.mrf.mxu0  ;;  %v976_v38 = vpop.f32.mrf.mxu1 }
  0x92   : > { %v897_v41 = vadd.f32 %v2156_v34, %v896_v37  ;;  %v977_v42 = vadd.f32 %v2156_v34, %v976_v38 }
  0x94   : > { %v1216_v43 = vmax.f32 %v897_v41, 0.0  ;;  %v1248_v44 = vmax.f32 %v977_v42, 0.0  ;;  %1857 = vmatmul.msk.bf16.gmra.mxu0 %vm694_vm0, %v1923_v35  ;;  %1873 = vmatmul.msk.bf16.gmra.mxu1 %vm694_vm0, %v1939_v36 }
  0x95   : > { %1889 = vmatmul.msk.bf16.gmra.mxu2 %vm694_vm0, %v1955_v39  ;;  %1905 = vmatmul.msk.bf16.gmra.mxu3 %vm694_vm0, %v1971_v40 }
  0x96   : > { %1344 = vst [vmem:[%s2168_s30] sm:$0xff] %v1216_v43 }
  0x97   : > { %1376 = vst [vmem:[%s2168_s30 + $0x100] sm:$0xff] %v1248_v44 }
  0x98   : > { %v1056_v45 = vpop.f32.mrf.mxu2  ;;  %v1136_v46 = vpop.f32.mrf.mxu3 }
  0x99   : > { %v1057_v47 = vadd.f32 %v2156_v34, %v1056_v45  ;;  %v1137_v48 = vadd.f32 %v2156_v34, %v1136_v46  ;;  %v898_v49 = vpop.f32.mrf.mxu0  ;;  %v978_v50 = vpop.f32.mrf.mxu1 }
  0x9a   : > { %v899_v51 = vadd.f32 %v2156_v34, %v898_v49  ;;  %v979_v52 = vadd.f32 %v2156_v34, %v978_v50 }
  0x9b   : > { %v1280_v53 = vmax.f32 %v1057_v47, 0.0  ;;  %v1312_v54 = vmax.f32 %v1137_v48, 0.0 }
  0x9c   : > { %v1217_v55 = vmax.f32 %v899_v51, 0.0  ;;  %v1249_v56 = vmax.f32 %v979_v52, 0.0  ;;  %v1926_v52 = vld [vmem:[%s2087_s24 + $0x58] sm:$0xff] }
  0x9d   : > { %1408 = vst [vmem:[%s2168_s30 + $0x200] sm:$0xff] %v1280_v53  ;;  %v1942_v53 = vld [vmem:[%s2087_s24 + $0xd8] sm:$0xff] }
  0x9e   : > { %1440 = vst [vmem:[%s2168_s30 + $0x300] sm:$0xff] %v1312_v54 }
  0x9f   : > { %1345 = vst [vmem:[%s2168_s30 + $0x8] sm:$0xff] %v1217_v55 }
  0xa0   : > { %1377 = vst [vmem:[%s2168_s30 + $0x108] sm:$0xff] %v1249_v56  ;;  %v1058_v57 = vpop.f32.mrf.mxu2  ;;  %v1138_v58 = vpop.f32.mrf.mxu3 }
  0xa1   : > { %v1059_v61 = vadd.f32 %v2156_v34, %v1058_v57  ;;  %v1139_v62 = vadd.f32 %v2156_v34, %v1138_v58  ;;  %v901_v63 = vpop.f32.mrf.mxu0  ;;  %v981_v0 = vpop.f32.mrf.mxu1  ;;  %v1958_v58 = vld [vmem:[%s2087_s24 + $0x158] sm:$0xff] }
  0xa2   : > { %v902_v3 = vadd.f32 %v2156_v34, %v901_v63  ;;  %v982_v4 = vadd.f32 %v2156_v34, %v981_v0 }
  0xa3   : > { %v1281_v5 = vmax.f32 %v1059_v61, 0.0  ;;  %v1313_v6 = vmax.f32 %v1139_v62, 0.0 }
  0xa4   : > { %v1218_v7 = vmax.f32 %v902_v3, 0.0  ;;  %v1250_v8 = vmax.f32 %v982_v4, 0.0  ;;  %1858 = vmatmul.msk.bf16.gmra.mxu0 %vm694_vm0, %v1924_v59  ;;  %1874 = vmatmul.msk.bf16.gmra.mxu1 %vm694_vm0, %v1940_v60  ;;  %v1974_v59 = vld [vmem:[%s2087_s24 + $0x1d8] sm:$0xff] }
  0xa5   : > { %1409 = vst [vmem:[%s2168_s30 + $0x208] sm:$0xff] %v1281_v5  ;;  %1890 = vmatmul.msk.bf16.gmra.mxu2 %vm694_vm0, %v1956_v1  ;;  %1906 = vmatmul.msk.bf16.gmra.mxu3 %vm694_vm0, %v1972_v2 }
  0xa6   : > { %1441 = vst [vmem:[%s2168_s30 + $0x308] sm:$0xff] %v1313_v6 }
  0xa7   : > { %1346 = vst [vmem:[%s2168_s30 + $0x10] sm:$0xff] %v1218_v7 }
  0xa8   : > { %1378 = vst [vmem:[%s2168_s30 + $0x110] sm:$0xff] %v1250_v8  ;;  %v1061_v9 = vpop.f32.mrf.mxu2  ;;  %v1141_v10 = vpop.f32.mrf.mxu3 }
  0xa9   : > { %v1062_v11 = vadd.f32 %v2156_v34, %v1061_v9  ;;  %v1142_v12 = vadd.f32 %v2156_v34, %v1141_v10  ;;  %v903_v13 = vpop.f32.mrf.mxu0  ;;  %v983_v14 = vpop.f32.mrf.mxu1 }
  0xaa   : > { %v904_v15 = vadd.f32 %v2156_v34, %v903_v13  ;;  %v984_v16 = vadd.f32 %v2156_v34, %v983_v14 }
  0xab   : > { %v1282_v17 = vmax.f32 %v1062_v11, 0.0  ;;  %v1314_v18 = vmax.f32 %v1142_v12, 0.0 }
  0xac   : > { %v1219_v19 = vmax.f32 %v904_v15, 0.0  ;;  %v1251_v20 = vmax.f32 %v984_v16, 0.0  ;;  %v1927_v16 = vld [vmem:[%s2087_s24 + $0x60] sm:$0xff] }
  0xad   : > { %1410 = vst [vmem:[%s2168_s30 + $0x210] sm:$0xff] %v1282_v17  ;;  %v1943_v17 = vld [vmem:[%s2087_s24 + $0xe0] sm:$0xff] }
  0xae   : > { %1442 = vst [vmem:[%s2168_s30 + $0x310] sm:$0xff] %v1314_v18 }
  0xaf   : > { %1347 = vst [vmem:[%s2168_s30 + $0x18] sm:$0xff] %v1219_v19 }
  0xb0   : > { %1379 = vst [vmem:[%s2168_s30 + $0x118] sm:$0xff] %v1251_v20  ;;  %v1063_v21 = vpop.f32.mrf.mxu2  ;;  %v1143_v22 = vpop.f32.mrf.mxu3 }
  0xb1   : > { %v1064_v25 = vadd.f32 %v2156_v34, %v1063_v21  ;;  %v1144_v26 = vadd.f32 %v2156_v34, %v1143_v22  ;;  %v906_v27 = vpop.f32.mrf.mxu0  ;;  %v986_v28 = vpop.f32.mrf.mxu1  ;;  %v1959_v22 = vld [vmem:[%s2087_s24 + $0x160] sm:$0xff] }
  0xb2   : > { %v907_v31 = vadd.f32 %v2156_v34, %v906_v27  ;;  %v987_v32 = vadd.f32 %v2156_v34, %v986_v28 }
  0xb3   : > { %v1283_v33 = vmax.f32 %v1064_v25, 0.0  ;;  %v1315_v35 = vmax.f32 %v1144_v26, 0.0 }
  0xb4   : > { %v1220_v36 = vmax.f32 %v907_v31, 0.0  ;;  %v1252_v37 = vmax.f32 %v987_v32, 0.0  ;;  %1859 = vmatmul.msk.bf16.gmra.mxu0 %vm694_vm0, %v1925_v23  ;;  %1875 = vmatmul.msk.bf16.gmra.mxu1 %vm694_vm0, %v1941_v24  ;;  %v1975_v23 = vld [vmem:[%s2087_s24 + $0x1e0] sm:$0xff] }
  0xb5   : > { %1411 = vst [vmem:[%s2168_s30 + $0x218] sm:$0xff] %v1283_v33  ;;  %1891 = vmatmul.msk.bf16.gmra.mxu2 %vm694_vm0, %v1957_v29  ;;  %1907 = vmatmul.msk.bf16.gmra.mxu3 %vm694_vm0, %v1973_v30 }
  0xb6   : > { %1443 = vst [vmem:[%s2168_s30 + $0x318] sm:$0xff] %v1315_v35 }
  0xb7   : > { %1348 = vst [vmem:[%s2168_s30 + $0x20] sm:$0xff] %v1220_v36 }
  0xb8   : > { %1380 = vst [vmem:[%s2168_s30 + $0x120] sm:$0xff] %v1252_v37  ;;  %v1066_v38 = vpop.f32.mrf.mxu2  ;;  %v1146_v39 = vpop.f32.mrf.mxu3 }
  0xb9   : > { %v1067_v40 = vadd.f32 %v2156_v34, %v1066_v38  ;;  %v1147_v41 = vadd.f32 %v2156_v34, %v1146_v39  ;;  %v908_v42 = vpop.f32.mrf.mxu0  ;;  %v988_v43 = vpop.f32.mrf.mxu1 }
  0xba   : > { %v909_v44 = vadd.f32 %v2156_v34, %v908_v42  ;;  %v989_v45 = vadd.f32 %v2156_v34, %v988_v43 }
  0xbb   : > { %v1284_v46 = vmax.f32 %v1067_v40, 0.0  ;;  %v1316_v47 = vmax.f32 %v1147_v41, 0.0 }
  0xbc   : > { %v1221_v48 = vmax.f32 %v909_v44, 0.0  ;;  %v1253_v49 = vmax.f32 %v989_v45, 0.0  ;;  %v1928_v45 = vld [vmem:[%s2087_s24 + $0x68] sm:$0xff] }
  0xbd   : > { %1412 = vst [vmem:[%s2168_s30 + $0x220] sm:$0xff] %v1284_v46  ;;  %v1944_v46 = vld [vmem:[%s2087_s24 + $0xe8] sm:$0xff] }
  0xbe   : > { %1444 = vst [vmem:[%s2168_s30 + $0x320] sm:$0xff] %v1316_v47 }
  0xbf   : > { %1349 = vst [vmem:[%s2168_s30 + $0x28] sm:$0xff] %v1221_v48 }
  0xc0   : > { %1381 = vst [vmem:[%s2168_s30 + $0x128] sm:$0xff] %v1253_v49  ;;  %v1068_v50 = vpop.f32.mrf.mxu2  ;;  %v1148_v51 = vpop.f32.mrf.mxu3 }
  0xc1   : > { %v1069_v54 = vadd.f32 %v2156_v34, %v1068_v50  ;;  %v1149_v55 = vadd.f32 %v2156_v34, %v1148_v51  ;;  %v911_v56 = vpop.f32.mrf.mxu0  ;;  %v991_v57 = vpop.f32.mrf.mxu1  ;;  %v1960_v51 = vld [vmem:[%s2087_s24 + $0x168] sm:$0xff] }
  0xc2   : > { %v912_v60 = vadd.f32 %v2156_v34, %v911_v56  ;;  %v992_v61 = vadd.f32 %v2156_v34, %v991_v57 }
  0xc3   : > { %v1285_v62 = vmax.f32 %v1069_v54, 0.0  ;;  %v1317_v63 = vmax.f32 %v1149_v55, 0.0 }
  0xc4   : > { %v1222_v0 = vmax.f32 %v912_v60, 0.0  ;;  %v1254_v1 = vmax.f32 %v992_v61, 0.0  ;;  %1860 = vmatmul.msk.bf16.gmra.mxu0 %vm694_vm0, %v1926_v52  ;;  %1876 = vmatmul.msk.bf16.gmra.mxu1 %vm694_vm0, %v1942_v53  ;;  %v1976_v52 = vld [vmem:[%s2087_s24 + $0x1e8] sm:$0xff] }
  0xc5   : > { %1413 = vst [vmem:[%s2168_s30 + $0x228] sm:$0xff] %v1285_v62  ;;  %1892 = vmatmul.msk.bf16.gmra.mxu2 %vm694_vm0, %v1958_v58  ;;  %1908 = vmatmul.msk.bf16.gmra.mxu3 %vm694_vm0, %v1974_v59 }
  0xc6   : > { %1445 = vst [vmem:[%s2168_s30 + $0x328] sm:$0xff] %v1317_v63 }
  0xc7   : > { %1350 = vst [vmem:[%s2168_s30 + $0x30] sm:$0xff] %v1222_v0 }
  0xc8   : > { %1382 = vst [vmem:[%s2168_s30 + $0x130] sm:$0xff] %v1254_v1  ;;  %v1071_v2 = vpop.f32.mrf.mxu2  ;;  %v1151_v3 = vpop.f32.mrf.mxu3 }
  0xc9   : > { %v1072_v4 = vadd.f32 %v2156_v34, %v1071_v2  ;;  %v1152_v5 = vadd.f32 %v2156_v34, %v1151_v3  ;;  %v913_v6 = vpop.f32.mrf.mxu0  ;;  %v993_v7 = vpop.f32.mrf.mxu1 }
  0xca   : > { %v914_v8 = vadd.f32 %v2156_v34, %v913_v6  ;;  %v994_v9 = vadd.f32 %v2156_v34, %v993_v7 }
  0xcb   : > { %v1286_v10 = vmax.f32 %v1072_v4, 0.0  ;;  %v1318_v11 = vmax.f32 %v1152_v5, 0.0 }
  0xcc   : > { %v1223_v12 = vmax.f32 %v914_v8, 0.0  ;;  %v1255_v13 = vmax.f32 %v994_v9, 0.0  ;;  %v1929_v9 = vld [vmem:[%s2087_s24 + $0x70] sm:$0xff] }
  0xcd   : > { %1414 = vst [vmem:[%s2168_s30 + $0x230] sm:$0xff] %v1286_v10  ;;  %v1945_v10 = vld [vmem:[%s2087_s24 + $0xf0] sm:$0xff] }
  0xce   : > { %1446 = vst [vmem:[%s2168_s30 + $0x330] sm:$0xff] %v1318_v11 }
  0xcf   : > { %1351 = vst [vmem:[%s2168_s30 + $0x38] sm:$0xff] %v1223_v12 }
  0xd0   : > { %1383 = vst [vmem:[%s2168_s30 + $0x138] sm:$0xff] %v1255_v13  ;;  %v1073_v14 = vpop.f32.mrf.mxu2  ;;  %v1153_v15 = vpop.f32.mrf.mxu3 }
  0xd1   : > { %v1074_v18 = vadd.f32 %v2156_v34, %v1073_v14  ;;  %v1154_v19 = vadd.f32 %v2156_v34, %v1153_v15  ;;  %v916_v20 = vpop.f32.mrf.mxu0  ;;  %v996_v21 = vpop.f32.mrf.mxu1  ;;  %v1961_v15 = vld [vmem:[%s2087_s24 + $0x170] sm:$0xff] }
  0xd2   : > { %v917_v24 = vadd.f32 %v2156_v34, %v916_v20  ;;  %v997_v25 = vadd.f32 %v2156_v34, %v996_v21 }
  0xd3   : > { %v1287_v26 = vmax.f32 %v1074_v18, 0.0  ;;  %v1319_v27 = vmax.f32 %v1154_v19, 0.0 }
  0xd4   : > { %v1224_v28 = vmax.f32 %v917_v24, 0.0  ;;  %v1256_v29 = vmax.f32 %v997_v25, 0.0  ;;  %1861 = vmatmul.msk.bf16.gmra.mxu0 %vm694_vm0, %v1927_v16  ;;  %1877 = vmatmul.msk.bf16.gmra.mxu1 %vm694_vm0, %v1943_v17  ;;  %v1977_v16 = vld [vmem:[%s2087_s24 + $0x1f0] sm:$0xff] }
  0xd5   : > { %1415 = vst [vmem:[%s2168_s30 + $0x238] sm:$0xff] %v1287_v26  ;;  %1893 = vmatmul.msk.bf16.gmra.mxu2 %vm694_vm0, %v1959_v22  ;;  %1909 = vmatmul.msk.bf16.gmra.mxu3 %vm694_vm0, %v1975_v23 }
  0xd6   : > { %1447 = vst [vmem:[%s2168_s30 + $0x338] sm:$0xff] %v1319_v27 }
  0xd7   : > { %1352 = vst [vmem:[%s2168_s30 + $0x40] sm:$0xff] %v1224_v28 }
  0xd8   : > { %1384 = vst [vmem:[%s2168_s30 + $0x140] sm:$0xff] %v1256_v29  ;;  %v1076_v30 = vpop.f32.mrf.mxu2  ;;  %v1156_v31 = vpop.f32.mrf.mxu3 }
  0xd9   : > { %v1077_v32 = vadd.f32 %v2156_v34, %v1076_v30  ;;  %v1157_v33 = vadd.f32 %v2156_v34, %v1156_v31  ;;  %v918_v35 = vpop.f32.mrf.mxu0  ;;  %v998_v36 = vpop.f32.mrf.mxu1 }
  0xda   : > { %v919_v37 = vadd.f32 %v2156_v34, %v918_v35  ;;  %v999_v38 = vadd.f32 %v2156_v34, %v998_v36 }
  0xdb   : > { %v1288_v39 = vmax.f32 %v1077_v32, 0.0  ;;  %v1320_v40 = vmax.f32 %v1157_v33, 0.0 }
  0xdc   : > { %v1225_v41 = vmax.f32 %v919_v37, 0.0  ;;  %v1257_v42 = vmax.f32 %v999_v38, 0.0  ;;  %v1930_v38 = vld [vmem:[%s2087_s24 + $0x78] sm:$0xff] }
  0xdd   : > { %1416 = vst [vmem:[%s2168_s30 + $0x240] sm:$0xff] %v1288_v39  ;;  %v1946_v39 = vld [vmem:[%s2087_s24 + $0xf8] sm:$0xff] }
  0xde   : > { %1448 = vst [vmem:[%s2168_s30 + $0x340] sm:$0xff] %v1320_v40 }
  0xdf   : > { %1353 = vst [vmem:[%s2168_s30 + $0x48] sm:$0xff] %v1225_v41 }
  0xe0   : > { %1385 = vst [vmem:[%s2168_s30 + $0x148] sm:$0xff] %v1257_v42  ;;  %v1078_v43 = vpop.f32.mrf.mxu2  ;;  %v1158_v44 = vpop.f32.mrf.mxu3 }
  0xe1   : > { %v1079_v47 = vadd.f32 %v2156_v34, %v1078_v43  ;;  %v1159_v48 = vadd.f32 %v2156_v34, %v1158_v44  ;;  %v921_v49 = vpop.f32.mrf.mxu0  ;;  %v1001_v50 = vpop.f32.mrf.mxu1  ;;  %v1962_v44 = vld [vmem:[%s2087_s24 + $0x178] sm:$0xff] }
  0xe2   : > { %v922_v53 = vadd.f32 %v2156_v34, %v921_v49  ;;  %v1002_v54 = vadd.f32 %v2156_v34, %v1001_v50 }
  0xe3   : > { %v1289_v55 = vmax.f32 %v1079_v47, 0.0  ;;  %v1321_v56 = vmax.f32 %v1159_v48, 0.0 }
  0xe4   : > { %v1226_v57 = vmax.f32 %v922_v53, 0.0  ;;  %v1258_v58 = vmax.f32 %v1002_v54, 0.0  ;;  %1862 = vmatmul.msk.bf16.gmra.mxu0 %vm694_vm0, %v1928_v45  ;;  %1878 = vmatmul.msk.bf16.gmra.mxu1 %vm694_vm0, %v1944_v46  ;;  %v1978_v45 = vld [vmem:[%s2087_s24 + $0x1f8] sm:$0xff] }
  0xe5   : > { %1417 = vst [vmem:[%s2168_s30 + $0x248] sm:$0xff] %v1289_v55  ;;  %1894 = vmatmul.msk.bf16.gmra.mxu2 %vm694_vm0, %v1960_v51  ;;  %1910 = vmatmul.msk.bf16.gmra.mxu3 %vm694_vm0, %v1976_v52 }
  0xe6   : > { %1449 = vst [vmem:[%s2168_s30 + $0x348] sm:$0xff] %v1321_v56 }
  0xe7   : > { %1354 = vst [vmem:[%s2168_s30 + $0x50] sm:$0xff] %v1226_v57 }
  0xe8   : > { %1386 = vst [vmem:[%s2168_s30 + $0x150] sm:$0xff] %v1258_v58  ;;  %v1081_v59 = vpop.f32.mrf.mxu2  ;;  %v1161_v60 = vpop.f32.mrf.mxu3 }
  0xe9   : > { %v1082_v61 = vadd.f32 %v2156_v34, %v1081_v59  ;;  %v1162_v62 = vadd.f32 %v2156_v34, %v1161_v60  ;;  %v923_v63 = vpop.f32.mrf.mxu0  ;;  %v1003_v0 = vpop.f32.mrf.mxu1 }
  0xea   : > { %v924_v1 = vadd.f32 %v2156_v34, %v923_v63  ;;  %v1004_v2 = vadd.f32 %v2156_v34, %v1003_v0 }
  0xeb   : > { %v1290_v3 = vmax.f32 %v1082_v61, 0.0  ;;  %v1322_v4 = vmax.f32 %v1162_v62, 0.0 }
  0xec   : > { %v1227_v5 = vmax.f32 %v924_v1, 0.0  ;;  %v1259_v6 = vmax.f32 %v1004_v2, 0.0 }
  0xed   : > { %1418 = vst [vmem:[%s2168_s30 + $0x250] sm:$0xff] %v1290_v3 }
  0xee   : > { %1450 = vst [vmem:[%s2168_s30 + $0x350] sm:$0xff] %v1322_v4 }
  0xef   : > { %1355 = vst [vmem:[%s2168_s30 + $0x58] sm:$0xff] %v1227_v5 }
  0xf0   : > { %1387 = vst [vmem:[%s2168_s30 + $0x158] sm:$0xff] %v1259_v6  ;;  %v1083_v7 = vpop.f32.mrf.mxu2  ;;  %v1163_v8 = vpop.f32.mrf.mxu3 }
  0xf1   : > { %v1084_v11 = vadd.f32 %v2156_v34, %v1083_v7  ;;  %v1164_v12 = vadd.f32 %v2156_v34, %v1163_v8  ;;  %v926_v13 = vpop.f32.mrf.mxu0  ;;  %v1006_v14 = vpop.f32.mrf.mxu1 }
  0xf2   : > { %v927_v17 = vadd.f32 %v2156_v34, %v926_v13  ;;  %v1007_v18 = vadd.f32 %v2156_v34, %v1006_v14 }
  0xf3   : > { %v1291_v19 = vmax.f32 %v1084_v11, 0.0  ;;  %v1323_v20 = vmax.f32 %v1164_v12, 0.0 }
  0xf4   : > { %v1228_v21 = vmax.f32 %v927_v17, 0.0  ;;  %v1260_v22 = vmax.f32 %v1007_v18, 0.0  ;;  %1863 = vmatmul.msk.bf16.gmra.mxu0 %vm694_vm0, %v1929_v9  ;;  %1879 = vmatmul.msk.bf16.gmra.mxu1 %vm694_vm0, %v1945_v10 }
  0xf5   : > { %1419 = vst [vmem:[%s2168_s30 + $0x258] sm:$0xff] %v1291_v19  ;;  %1895 = vmatmul.msk.bf16.gmra.mxu2 %vm694_vm0, %v1961_v15  ;;  %1911 = vmatmul.msk.bf16.gmra.mxu3 %vm694_vm0, %v1977_v16 }
  0xf6   : > { %1451 = vst [vmem:[%s2168_s30 + $0x358] sm:$0xff] %v1323_v20 }
  0xf7   : > { %1356 = vst [vmem:[%s2168_s30 + $0x60] sm:$0xff] %v1228_v21 }
  0xf8   : > { %1388 = vst [vmem:[%s2168_s30 + $0x160] sm:$0xff] %v1260_v22  ;;  %v1086_v23 = vpop.f32.mrf.mxu2  ;;  %v1166_v24 = vpop.f32.mrf.mxu3 }
  0xf9   : > { %v1087_v25 = vadd.f32 %v2156_v34, %v1086_v23  ;;  %v1167_v26 = vadd.f32 %v2156_v34, %v1166_v24  ;;  %v928_v27 = vpop.f32.mrf.mxu0  ;;  %v1008_v28 = vpop.f32.mrf.mxu1 }
  0xfa   : > { %v929_v29 = vadd.f32 %v2156_v34, %v928_v27  ;;  %v1009_v30 = vadd.f32 %v2156_v34, %v1008_v28 }
  0xfb   : > { %v1292_v31 = vmax.f32 %v1087_v25, 0.0  ;;  %v1324_v32 = vmax.f32 %v1167_v26, 0.0 }
  0xfc   : > { %v1229_v33 = vmax.f32 %v929_v29, 0.0  ;;  %v1261_v35 = vmax.f32 %v1009_v30, 0.0 }
  0xfd   : > { %1420 = vst [vmem:[%s2168_s30 + $0x260] sm:$0xff] %v1292_v31 }
  0xfe   : > { %1452 = vst [vmem:[%s2168_s30 + $0x360] sm:$0xff] %v1324_v32 }
  0xff   : > { %1357 = vst [vmem:[%s2168_s30 + $0x68] sm:$0xff] %v1229_v33 }
 0x100   : > { %1389 = vst [vmem:[%s2168_s30 + $0x168] sm:$0xff] %v1261_v35  ;;  %v1088_v36 = vpop.f32.mrf.mxu2  ;;  %v1168_v37 = vpop.f32.mrf.mxu3 }
 0x101   : > { %v1089_v40 = vadd.f32 %v2156_v34, %v1088_v36  ;;  %v1169_v41 = vadd.f32 %v2156_v34, %v1168_v37  ;;  %v931_v42 = vpop.f32.mrf.mxu0  ;;  %v1011_v43 = vpop.f32.mrf.mxu1 }
 0x102   : > { %v932_v46 = vadd.f32 %v2156_v34, %v931_v42  ;;  %v1012_v47 = vadd.f32 %v2156_v34, %v1011_v43 }
 0x103   : > { %v1293_v48 = vmax.f32 %v1089_v40, 0.0  ;;  %v1325_v49 = vmax.f32 %v1169_v41, 0.0 }
 0x104   : > { %v1230_v50 = vmax.f32 %v932_v46, 0.0  ;;  %v1262_v51 = vmax.f32 %v1012_v47, 0.0  ;;  %1864 = vmatmul.msk.bf16.gmra.mxu0 %vm694_vm0, %v1930_v38  ;;  %1880 = vmatmul.msk.bf16.gmra.mxu1 %vm694_vm0, %v1946_v39 }
 0x105   : > { %1421 = vst [vmem:[%s2168_s30 + $0x268] sm:$0xff] %v1293_v48  ;;  %1896 = vmatmul.msk.bf16.gmra.mxu2 %vm694_vm0, %v1962_v44  ;;  %1912 = vmatmul.msk.bf16.gmra.mxu3 %vm694_vm0, %v1978_v45 }
 0x106   : > { %1453 = vst [vmem:[%s2168_s30 + $0x368] sm:$0xff] %v1325_v49 }
 0x107   : > { %1358 = vst [vmem:[%s2168_s30 + $0x70] sm:$0xff] %v1230_v50 }
 0x108   : > { %1390 = vst [vmem:[%s2168_s30 + $0x170] sm:$0xff] %v1262_v51  ;;  %v1091_v52 = vpop.f32.mrf.mxu2  ;;  %v1171_v53 = vpop.f32.mrf.mxu3 }
 0x109   : > { %v1092_v54 = vadd.f32 %v2156_v34, %v1091_v52  ;;  %v1172_v55 = vadd.f32 %v2156_v34, %v1171_v53  ;;  %v933_v56 = vpop.f32.mrf.mxu0  ;;  %v1013_v57 = vpop.f32.mrf.mxu1 }
 0x10a   : > { %v934_v58 = vadd.f32 %v2156_v34, %v933_v56  ;;  %v1014_v59 = vadd.f32 %v2156_v34, %v1013_v57 }
 0x10b   : > { %v1294_v60 = vmax.f32 %v1092_v54, 0.0  ;;  %v1326_v61 = vmax.f32 %v1172_v55, 0.0 }
 0x10c   : > { %v1231_v62 = vmax.f32 %v934_v58, 0.0  ;;  %v1263_v63 = vmax.f32 %v1014_v59, 0.0 }
 0x10d   : > { %1422 = vst [vmem:[%s2168_s30 + $0x270] sm:$0xff] %v1294_v60 }
 0x10e   : > { %1454 = vst [vmem:[%s2168_s30 + $0x370] sm:$0xff] %v1326_v61 }
 0x10f   : > { %1359 = vst [vmem:[%s2168_s30 + $0x78] sm:$0xff] %v1231_v62 }
 0x110   : > { %1391 = vst [vmem:[%s2168_s30 + $0x178] sm:$0xff] %v1263_v63  ;;  %v1093_v0 = vpop.f32.mrf.mxu2  ;;  %v1173_v1 = vpop.f32.mrf.mxu3 }
 0x111   : > { %v1094_v2 = vadd.f32 %v2156_v34, %v1093_v0  ;;  %v1174_v3 = vadd.f32 %v2156_v34, %v1173_v1  ;;  %v936_v4 = vpop.f32.mrf.mxu0  ;;  %v1016_v5 = vpop.f32.mrf.mxu1 }
 0x112   : > { %v937_v6 = vadd.f32 %v2156_v34, %v936_v4  ;;  %v1017_v7 = vadd.f32 %v2156_v34, %v1016_v5 }
 0x113   : > { %v1295_v8 = vmax.f32 %v1094_v2, 0.0  ;;  %v1327_v9 = vmax.f32 %v1174_v3, 0.0 }
 0x114   : > { %v1232_v10 = vmax.f32 %v937_v6, 0.0  ;;  %v1264_v11 = vmax.f32 %v1017_v7, 0.0 }
 0x115   : > { %1423 = vst [vmem:[%s2168_s30 + $0x278] sm:$0xff] %v1295_v8 }
 0x116   : > { %1455 = vst [vmem:[%s2168_s30 + $0x378] sm:$0xff] %v1327_v9 }
 0x117   : > { %1360 = vst [vmem:[%s2168_s30 + $0x80] sm:$0xff] %v1232_v10 }
 0x118   : > { %1392 = vst [vmem:[%s2168_s30 + $0x180] sm:$0xff] %v1264_v11  ;;  %v1096_v12 = vpop.f32.mrf.mxu2  ;;  %v1176_v13 = vpop.f32.mrf.mxu3 }
 0x119   : > { %v1097_v14 = vadd.f32 %v2156_v34, %v1096_v12  ;;  %v1177_v15 = vadd.f32 %v2156_v34, %v1176_v13  ;;  %v938_v16 = vpop.f32.mrf.mxu0  ;;  %v1018_v17 = vpop.f32.mrf.mxu1 }
 0x11a   : > { %v939_v18 = vadd.f32 %v2156_v34, %v938_v16  ;;  %v1019_v19 = vadd.f32 %v2156_v34, %v1018_v17 }
 0x11b   : > { %v1296_v20 = vmax.f32 %v1097_v14, 0.0  ;;  %v1328_v21 = vmax.f32 %v1177_v15, 0.0 }
 0x11c   : > { %v1233_v22 = vmax.f32 %v939_v18, 0.0  ;;  %v1265_v23 = vmax.f32 %v1019_v19, 0.0 }
 0x11d   : > { %1424 = vst [vmem:[%s2168_s30 + $0x280] sm:$0xff] %v1296_v20 }
 0x11e   : > { %1456 = vst [vmem:[%s2168_s30 + $0x380] sm:$0xff] %v1328_v21 }
 0x11f   : > { %1361 = vst [vmem:[%s2168_s30 + $0x88] sm:$0xff] %v1233_v22 }
 0x120   : > { %1393 = vst [vmem:[%s2168_s30 + $0x188] sm:$0xff] %v1265_v23  ;;  %v1098_v24 = vpop.f32.mrf.mxu2  ;;  %v1178_v25 = vpop.f32.mrf.mxu3 }
 0x121   : > { %v1099_v26 = vadd.f32 %v2156_v34, %v1098_v24  ;;  %v1179_v27 = vadd.f32 %v2156_v34, %v1178_v25  ;;  %v941_v28 = vpop.f32.mrf.mxu0  ;;  %v1021_v29 = vpop.f32.mrf.mxu1 }
 0x122   : > { %v942_v30 = vadd.f32 %v2156_v34, %v941_v28  ;;  %v1022_v31 = vadd.f32 %v2156_v34, %v1021_v29 }
 0x123   : > { %v1297_v32 = vmax.f32 %v1099_v26, 0.0  ;;  %v1329_v33 = vmax.f32 %v1179_v27, 0.0 }
 0x124   : > { %v1234_v35 = vmax.f32 %v942_v30, 0.0  ;;  %v1266_v36 = vmax.f32 %v1022_v31, 0.0 }
 0x125   : > { %1425 = vst [vmem:[%s2168_s30 + $0x288] sm:$0xff] %v1297_v32 }
 0x126   : > { %1457 = vst [vmem:[%s2168_s30 + $0x388] sm:$0xff] %v1329_v33 }
 0x127   : > { %1362 = vst [vmem:[%s2168_s30 + $0x90] sm:$0xff] %v1234_v35 }
 0x128   : > { %1394 = vst [vmem:[%s2168_s30 + $0x190] sm:$0xff] %v1266_v36  ;;  %v1101_v37 = vpop.f32.mrf.mxu2  ;;  %v1181_v38 = vpop.f32.mrf.mxu3 }
 0x129   : > { %v1102_v39 = vadd.f32 %v2156_v34, %v1101_v37  ;;  %v1182_v40 = vadd.f32 %v2156_v34, %v1181_v38  ;;  %v943_v41 = vpop.f32.mrf.mxu0  ;;  %v1023_v42 = vpop.f32.mrf.mxu1 }
 0x12a   : > { %v944_v43 = vadd.f32 %v2156_v34, %v943_v41  ;;  %v1024_v44 = vadd.f32 %v2156_v34, %v1023_v42 }
 0x12b   : > { %v1298_v45 = vmax.f32 %v1102_v39, 0.0  ;;  %v1330_v46 = vmax.f32 %v1182_v40, 0.0 }
 0x12c   : > { %v1235_v47 = vmax.f32 %v944_v43, 0.0  ;;  %v1267_v48 = vmax.f32 %v1024_v44, 0.0 }
 0x12d   : > { %1426 = vst [vmem:[%s2168_s30 + $0x290] sm:$0xff] %v1298_v45 }
 0x12e   : > { %1458 = vst [vmem:[%s2168_s30 + $0x390] sm:$0xff] %v1330_v46 }
 0x12f   : > { %1363 = vst [vmem:[%s2168_s30 + $0x98] sm:$0xff] %v1235_v47 }
 0x130   : > { %1395 = vst [vmem:[%s2168_s30 + $0x198] sm:$0xff] %v1267_v48  ;;  %v1103_v49 = vpop.f32.mrf.mxu2  ;;  %v1183_v50 = vpop.f32.mrf.mxu3 }
 0x131   : > { %v1104_v51 = vadd.f32 %v2156_v34, %v1103_v49  ;;  %v1184_v52 = vadd.f32 %v2156_v34, %v1183_v50  ;;  %v946_v53 = vpop.f32.mrf.mxu0  ;;  %v1026_v54 = vpop.f32.mrf.mxu1 }
 0x132   : > { %v947_v55 = vadd.f32 %v2156_v34, %v946_v53  ;;  %v1027_v56 = vadd.f32 %v2156_v34, %v1026_v54 }
 0x133   : > { %v1299_v57 = vmax.f32 %v1104_v51, 0.0  ;;  %v1331_v58 = vmax.f32 %v1184_v52, 0.0 }
 0x134   : > { %v1236_v59 = vmax.f32 %v947_v55, 0.0  ;;  %v1268_v60 = vmax.f32 %v1027_v56, 0.0 }
 0x135   : > { %1427 = vst [vmem:[%s2168_s30 + $0x298] sm:$0xff] %v1299_v57 }
 0x136   : > { %1459 = vst [vmem:[%s2168_s30 + $0x398] sm:$0xff] %v1331_v58 }
 0x137   : > { %1364 = vst [vmem:[%s2168_s30 + $0xa0] sm:$0xff] %v1236_v59 }
 0x138   : > { %1396 = vst [vmem:[%s2168_s30 + $0x1a0] sm:$0xff] %v1268_v60  ;;  %v1106_v61 = vpop.f32.mrf.mxu2  ;;  %v1186_v62 = vpop.f32.mrf.mxu3 }
 0x139   : > { %v1107_v63 = vadd.f32 %v2156_v34, %v1106_v61  ;;  %v1187_v0 = vadd.f32 %v2156_v34, %v1186_v62  ;;  %v948_v1 = vpop.f32.mrf.mxu0  ;;  %v1028_v2 = vpop.f32.mrf.mxu1 }
 0x13a   : > { %v949_v3 = vadd.f32 %v2156_v34, %v948_v1  ;;  %v1029_v4 = vadd.f32 %v2156_v34, %v1028_v2 }
 0x13b   : > { %v1300_v5 = vmax.f32 %v1107_v63, 0.0  ;;  %v1332_v6 = vmax.f32 %v1187_v0, 0.0 }
 0x13c   : > { %v1237_v7 = vmax.f32 %v949_v3, 0.0  ;;  %v1269_v8 = vmax.f32 %v1029_v4, 0.0 }
 0x13d   : > { %1428 = vst [vmem:[%s2168_s30 + $0x2a0] sm:$0xff] %v1300_v5 }
 0x13e   : > { %1460 = vst [vmem:[%s2168_s30 + $0x3a0] sm:$0xff] %v1332_v6 }
 0x13f   : > { %1365 = vst [vmem:[%s2168_s30 + $0xa8] sm:$0xff] %v1237_v7 }
 0x140   : > { %1397 = vst [vmem:[%s2168_s30 + $0x1a8] sm:$0xff] %v1269_v8  ;;  %v1108_v9 = vpop.f32.mrf.mxu2  ;;  %v1188_v10 = vpop.f32.mrf.mxu3 }
 0x141   : > { %v1109_v11 = vadd.f32 %v2156_v34, %v1108_v9  ;;  %v1189_v12 = vadd.f32 %v2156_v34, %v1188_v10  ;;  %v951_v13 = vpop.f32.mrf.mxu0  ;;  %v1031_v14 = vpop.f32.mrf.mxu1 }
 0x142   : > { %v952_v15 = vadd.f32 %v2156_v34, %v951_v13  ;;  %v1032_v16 = vadd.f32 %v2156_v34, %v1031_v14 }
 0x143   : > { %v1301_v17 = vmax.f32 %v1109_v11, 0.0  ;;  %v1333_v18 = vmax.f32 %v1189_v12, 0.0 }
 0x144   : > { %v1238_v19 = vmax.f32 %v952_v15, 0.0  ;;  %v1270_v20 = vmax.f32 %v1032_v16, 0.0 }
 0x145   : > { %1429 = vst [vmem:[%s2168_s30 + $0x2a8] sm:$0xff] %v1301_v17 }
 0x146   : > { %1461 = vst [vmem:[%s2168_s30 + $0x3a8] sm:$0xff] %v1333_v18 }
 0x147   : > { %1366 = vst [vmem:[%s2168_s30 + $0xb0] sm:$0xff] %v1238_v19 }
 0x148   : > { %1398 = vst [vmem:[%s2168_s30 + $0x1b0] sm:$0xff] %v1270_v20  ;;  %v1111_v21 = vpop.f32.mrf.mxu2  ;;  %v1191_v22 = vpop.f32.mrf.mxu3 }
 0x149   : > { %v1112_v23 = vadd.f32 %v2156_v34, %v1111_v21  ;;  %v1192_v24 = vadd.f32 %v2156_v34, %v1191_v22  ;;  %v953_v25 = vpop.f32.mrf.mxu0  ;;  %v1033_v26 = vpop.f32.mrf.mxu1 }
 0x14a   : > { %v954_v27 = vadd.f32 %v2156_v34, %v953_v25  ;;  %v1034_v28 = vadd.f32 %v2156_v34, %v1033_v26 }
 0x14b   : > { %v1302_v29 = vmax.f32 %v1112_v23, 0.0  ;;  %v1334_v30 = vmax.f32 %v1192_v24, 0.0  ;;  %v2012_v24 = vld [vmem:[%s2482_s2] ss:$0 sm:$0xff] }
 0x14c   : > { %v1239_v31 = vmax.f32 %v954_v27, 0.0  ;;  %v1271_v32 = vmax.f32 %v1034_v28, 0.0 }
 0x14d   : > { %1430 = vst [vmem:[%s2168_s30 + $0x2b0] sm:$0xff] %v1302_v29 }
 0x14e   : > { %1462 = vst [vmem:[%s2168_s30 + $0x3b0] sm:$0xff] %v1334_v30 }
 0x14f   : > { %1367 = vst [vmem:[%s2168_s30 + $0xb8] sm:$0xff] %v1239_v31 }
 0x150   : > { %1399 = vst [vmem:[%s2168_s30 + $0x1b8] sm:$0xff] %v1271_v32  ;;  %v1113_v33 = vpop.f32.mrf.mxu2  ;;  %v1193_v35 = vpop.f32.mrf.mxu3 }
 0x151   : > { %v1114_v36 = vadd.f32 %v2156_v34, %v1113_v33  ;;  %v1194_v37 = vadd.f32 %v2156_v34, %v1193_v35  ;;  %v956_v38 = vpop.f32.mrf.mxu0  ;;  %v1036_v39 = vpop.f32.mrf.mxu1 }
 0x152   : > { %v957_v40 = vadd.f32 %v2156_v34, %v956_v38  ;;  %v1037_v41 = vadd.f32 %v2156_v34, %v1036_v39 }
 0x153   : > { %v1303_v42 = vmax.f32 %v1114_v36, 0.0  ;;  %v1335_v43 = vmax.f32 %v1194_v37, 0.0 }
 0x154   : > { %v1240_v44 = vmax.f32 %v957_v40, 0.0  ;;  %v1272_v45 = vmax.f32 %v1037_v41, 0.0 }
 0x155   : > { %1431 = vst [vmem:[%s2168_s30 + $0x2b8] sm:$0xff] %v1303_v42 }
 0x156   : > { %1463 = vst [vmem:[%s2168_s30 + $0x3b8] sm:$0xff] %v1335_v43 }
 0x157   : > { %1368 = vst [vmem:[%s2168_s30 + $0xc0] sm:$0xff] %v1240_v44 }
 0x158   : > { %1400 = vst [vmem:[%s2168_s30 + $0x1c0] sm:$0xff] %v1272_v45  ;;  %v1116_v46 = vpop.f32.mrf.mxu2  ;;  %v1196_v47 = vpop.f32.mrf.mxu3 }
 0x159   : > { %v1117_v48 = vadd.f32 %v2156_v34, %v1116_v46  ;;  %v1197_v49 = vadd.f32 %v2156_v34, %v1196_v47  ;;  %v958_v50 = vpop.f32.mrf.mxu0  ;;  %v1038_v51 = vpop.f32.mrf.mxu1 }
 0x15a   : > { %v959_v52 = vadd.f32 %v2156_v34, %v958_v50  ;;  %v1039_v53 = vadd.f32 %v2156_v34, %v1038_v51 }
 0x15b   : > { %v1304_v54 = vmax.f32 %v1117_v48, 0.0  ;;  %v1336_v55 = vmax.f32 %v1197_v49, 0.0 }
 0x15c   : > { %v1241_v56 = vmax.f32 %v959_v52, 0.0  ;;  %v1273_v57 = vmax.f32 %v1039_v53, 0.0 }
 0x15d   : > { %1432 = vst [vmem:[%s2168_s30 + $0x2c0] sm:$0xff] %v1304_v54 }
 0x15e   : > { %1464 = vst [vmem:[%s2168_s30 + $0x3c0] sm:$0xff] %v1336_v55 }
 0x15f   : > { %1369 = vst [vmem:[%s2168_s30 + $0xc8] sm:$0xff] %v1241_v56 }
 0x160   : > { %1401 = vst [vmem:[%s2168_s30 + $0x1c8] sm:$0xff] %v1273_v57  ;;  %v1118_v58 = vpop.f32.mrf.mxu2  ;;  %v1198_v59 = vpop.f32.mrf.mxu3 }
 0x161   : > { %v1119_v60 = vadd.f32 %v2156_v34, %v1118_v58  ;;  %v1199_v61 = vadd.f32 %v2156_v34, %v1198_v59  ;;  %v961_v62 = vpop.f32.mrf.mxu0  ;;  %v1041_v63 = vpop.f32.mrf.mxu1 }
 0x162   : > { %v962_v0 = vadd.f32 %v2156_v34, %v961_v62  ;;  %v1042_v1 = vadd.f32 %v2156_v34, %v1041_v63 }
 0x163   : > { %v1305_v2 = vmax.f32 %v1119_v60, 0.0  ;;  %v1337_v3 = vmax.f32 %v1199_v61, 0.0 }
 0x164   : > { %v1242_v4 = vmax.f32 %v962_v0, 0.0  ;;  %v1274_v5 = vmax.f32 %v1042_v1, 0.0 }
 0x165   : > { %1433 = vst [vmem:[%s2168_s30 + $0x2c8] sm:$0xff] %v1305_v2 }
 0x166   : > { %1465 = vst [vmem:[%s2168_s30 + $0x3c8] sm:$0xff] %v1337_v3 }
 0x167   : > { %1370 = vst [vmem:[%s2168_s30 + $0xd0] sm:$0xff] %v1242_v4 }
 0x168   : > { %1402 = vst [vmem:[%s2168_s30 + $0x1d0] sm:$0xff] %v1274_v5  ;;  %v1121_v6 = vpop.f32.mrf.mxu2  ;;  %v1201_v7 = vpop.f32.mrf.mxu3 }
 0x169   : > { %v1122_v8 = vadd.f32 %v2156_v34, %v1121_v6  ;;  %v1202_v9 = vadd.f32 %v2156_v34, %v1201_v7  ;;  %v963_v10 = vpop.f32.mrf.mxu0  ;;  %v1043_v11 = vpop.f32.mrf.mxu1 }
 0x16a   : > { %v964_v12 = vadd.f32 %v2156_v34, %v963_v10  ;;  %v1044_v13 = vadd.f32 %v2156_v34, %v1043_v11 }
 0x16b   : > { %v1306_v14 = vmax.f32 %v1122_v8, 0.0  ;;  %v1338_v15 = vmax.f32 %v1202_v9, 0.0 }
 0x16c   : > { %v1243_v16 = vmax.f32 %v964_v12, 0.0  ;;  %v1275_v17 = vmax.f32 %v1044_v13, 0.0 }
 0x16d   : > { %1434 = vst [vmem:[%s2168_s30 + $0x2d0] sm:$0xff] %v1306_v14 }
 0x16e   : > { %1466 = vst [vmem:[%s2168_s30 + $0x3d0] sm:$0xff] %v1338_v15 }
 0x16f   : > { %1371 = vst [vmem:[%s2168_s30 + $0xd8] sm:$0xff] %v1243_v16 }
 0x170   : > { %1403 = vst [vmem:[%s2168_s30 + $0x1d8] sm:$0xff] %v1275_v17  ;;  %v1123_v18 = vpop.f32.mrf.mxu2  ;;  %v1203_v19 = vpop.f32.mrf.mxu3 }
 0x171   : > { %v1124_v20 = vadd.f32 %v2156_v34, %v1123_v18  ;;  %v1204_v21 = vadd.f32 %v2156_v34, %v1203_v19  ;;  %v966_v22 = vpop.f32.mrf.mxu0  ;;  %v1046_v23 = vpop.f32.mrf.mxu1 }
 0x172   : > { %v967_v25 = vadd.f32 %v2012_v24, %v966_v22  ;;  %v1047_v26 = vadd.f32 %v2012_v24, %v1046_v23 }
 0x173   : > { %v1307_v27 = vmax.f32 %v1124_v20, 0.0  ;;  %v1339_v28 = vmax.f32 %v1204_v21, 0.0 }
 0x174   : > { %v1244_v29 = vmax.f32 %v967_v25, 0.0  ;;  %v1276_v30 = vmax.f32 %v1047_v26, 0.0 }
 0x175   : > { %1435 = vst [vmem:[%s2168_s30 + $0x2d8] sm:$0xff] %v1307_v27 }
 0x176   : > { %1467 = vst [vmem:[%s2168_s30 + $0x3d8] sm:$0xff] %v1339_v28 }
 0x177   : > { %1372 = vst [vmem:[%s2168_s30 + $0xe0] sm:$0xff] %v1244_v29 }
 0x178   : > { %1404 = vst [vmem:[%s2168_s30 + $0x1e0] sm:$0xff] %v1276_v30  ;;  %v1126_v34 = vpop.f32.mrf.mxu2  ;;  %v1206_v31 = vpop.f32.mrf.mxu3 }
 0x179   : > { %v1127_v32 = vadd.f32 %v2012_v24, %v1126_v34  ;;  %v1207_v33 = vadd.f32 %v2012_v24, %v1206_v31  ;;  %v968_v35 = vpop.f32.mrf.mxu0  ;;  %v1048_v36 = vpop.f32.mrf.mxu1 }
 0x17a   : > { %v969_v37 = vadd.f32 %v2012_v24, %v968_v35  ;;  %v1049_v38 = vadd.f32 %v2012_v24, %v1048_v36 }
 0x17b   : > { %v1308_v39 = vmax.f32 %v1127_v32, 0.0  ;;  %v1340_v40 = vmax.f32 %v1207_v33, 0.0 }
 0x17c   : > { %v1245_v41 = vmax.f32 %v969_v37, 0.0  ;;  %v1277_v42 = vmax.f32 %v1049_v38, 0.0 }
 0x17d   : > { %1436 = vst [vmem:[%s2168_s30 + $0x2e0] sm:$0xff] %v1308_v39 }
 0x17e   : > { %1468 = vst [vmem:[%s2168_s30 + $0x3e0] sm:$0xff] %v1340_v40 }
 0x17f   : > { %1373 = vst [vmem:[%s2168_s30 + $0xe8] sm:$0xff] %v1245_v41 }
 0x180   : > { %1405 = vst [vmem:[%s2168_s30 + $0x1e8] sm:$0xff] %v1277_v42  ;;  %v1128_v43 = vpop.f32.mrf.mxu2  ;;  %v1208_v44 = vpop.f32.mrf.mxu3 }
 0x181   : > { %v1129_v45 = vadd.f32 %v2012_v24, %v1128_v43  ;;  %v1209_v46 = vadd.f32 %v2012_v24, %v1208_v44  ;;  %v971_v47 = vpop.f32.mrf.mxu0  ;;  %v1051_v48 = vpop.f32.mrf.mxu1 }
 0x182   : > { %v972_v49 = vadd.f32 %v2012_v24, %v971_v47  ;;  %v1052_v50 = vadd.f32 %v2012_v24, %v1051_v48 }
 0x183   : > { %v1309_v51 = vmax.f32 %v1129_v45, 0.0  ;;  %v1341_v52 = vmax.f32 %v1209_v46, 0.0 }
 0x184   : > { %v1246_v53 = vmax.f32 %v972_v49, 0.0  ;;  %v1278_v54 = vmax.f32 %v1052_v50, 0.0 }
 0x185   : > { %1437 = vst [vmem:[%s2168_s30 + $0x2e8] sm:$0xff] %v1309_v51 }
 0x186   : > { %1469 = vst [vmem:[%s2168_s30 + $0x3e8] sm:$0xff] %v1341_v52 }
 0x187   : > { %1374 = vst [vmem:[%s2168_s30 + $0xf0] sm:$0xff] %v1246_v53 }
 0x188   : > { %1406 = vst [vmem:[%s2168_s30 + $0x1f0] sm:$0xff] %v1278_v54  ;;  %v1131_v55 = vpop.f32.mrf.mxu2  ;;  %v1211_v56 = vpop.f32.mrf.mxu3 }
 0x189   : > { %v1132_v57 = vadd.f32 %v2012_v24, %v1131_v55  ;;  %v1212_v58 = vadd.f32 %v2012_v24, %v1211_v56  ;;  %v973_v59 = vpop.f32.mrf.mxu0  ;;  %v1053_v60 = vpop.f32.mrf.mxu1 }
 0x18a   : > { %v974_v61 = vadd.f32 %v2012_v24, %v973_v59  ;;  %v1054_v62 = vadd.f32 %v2012_v24, %v1053_v60 }
 0x18b   : > { %v1310_v63 = vmax.f32 %v1132_v57, 0.0  ;;  %v1342_v0 = vmax.f32 %v1212_v58, 0.0 }
 0x18c   : > { %v1247_v1 = vmax.f32 %v974_v61, 0.0  ;;  %v1279_v2 = vmax.f32 %v1054_v62, 0.0 }
 0x18d   : > { %1438 = vst [vmem:[%s2168_s30 + $0x2f0] sm:$0xff] %v1310_v63 }
 0x18e   : > { %1470 = vst [vmem:[%s2168_s30 + $0x3f0] sm:$0xff] %v1342_v0 }
 0x18f   : > { %1375 = vst [vmem:[%s2168_s30 + $0xf8] sm:$0xff] %v1247_v1 }
 0x190   : > { %1407 = vst [vmem:[%s2168_s30 + $0x1f8] sm:$0xff] %v1279_v2  ;;  %v1133_v3 = vpop.f32.mrf.mxu2  ;;  %v1213_v4 = vpop.f32.mrf.mxu3 }
 0x191   : > { %v1134_v5 = vadd.f32 %v2012_v24, %v1133_v3  ;;  %v1214_v6 = vadd.f32 %v2012_v24, %v1213_v4 }
 0x193   : > { %v1311_v7 = vmax.f32 %v1134_v5, 0.0  ;;  %v1343_v8 = vmax.f32 %v1214_v6, 0.0 }
 0x195   : > { %1439 = vst [vmem:[%s2168_s30 + $0x2f8] sm:$0xff] %v1311_v7 }
 0x196   : > { %1471 = vst [vmem:[%s2168_s30 + $0x3f8] sm:$0xff] %v1343_v8 }
 0x197 PF: > { %s13_s14 = sadd.s32 1, %s2035_s14   ;;  %s2484_s12 = smov %s2031_s13 }
 0x198   : > { %p10_p5 = scmp.ge.s32.totalorder %s13_s14, 10   ;;  %s2485_s13 = smov %s2487_s15 }
 0x19a   :  { %12 = sbr.rel (!%p10_p5) target bundleno = 2 (0x2), region = 68 }

// kernel: ssd_forward.8
= control target key start
LH: loop header
LB: loop body
LE: loop exit
PB: predicated region body
PF: predicated region fallthrough
CT: control target
= control target key end

     0   :  { %s1299_s12 = smov 0   ;;  %s1301_s13 = smov 0   ;;  %s1552_s0 = inlined_call_operand.vmem [shape: bf16[2048,72], index: 0, kind: input, shape index: {}]   ;;  %s1553_s1 = inlined_call_operand.vmem [shape: bf16[72,128], index: 1, kind: input, shape index: {}]   ;;  %s1554_s2 = inlined_call_operand.vmem [shape: f32[1,128], index: 2, kind: input, shape index: {}]   ;;  %s1555_s3 = inlined_call_operand.vmem [shape: f32[2048,128], index: 3, kind: output, shape index: {}]  }
   0x1   :  { %s1303_s14 = smov 0  }
   0x2 LB: > { %s25_s15 = sadd.s32 1, %s1273_s13  ;;  %p996_p0 = scmp.ge.s32.totalorder %s1277_s14, 1  ;;  %s1277_s14 = sphi %s1303_s14, %s13_s14   ;;  %s1273_s13 = sphi %s1301_s13, %s1557_s13   ;;  %s1269_s12 = sphi %s1299_s12, %s1556_s12  }
   0x3   : > { %p27_p1 = scmp.ge.s32.totalorder %s25_s15, 4  ;;  %p169_p2 = scmp.lt.s32.totalorder %s1277_s14, 5 }
   0x5   : > { %s1559_s15 = smov (%p27_p1, %s25_s15), 0  ;;  %p170_p3 = pnand %p996_p0, %p169_p2 }
   0x6   : > { %s997_s18 = sshll.u32 (!%p170_p3), %s1269_s12, 6 }
   0x7   : > { %173 = sbr.rel (%p170_p3) target bundleno = 296 (0x128), region = 32  ;;  %p204_p4 = scmp.lt.s32.totalorder (!%p170_p3), %s997_s18, 255 }
   0xc   : > { %v298_v0 = vld [vmem:[%s1553_s1 + $0x20] sm:$0xf]  ;;  %vm587_vm0 = vcmask 1043456   ;;  %v1214_v4 = vld [vmem:[%s1553_s1 + $0x18] sm:$0xff]  ;;  %v1213_v5 = vld [vmem:[%s1553_s1 + $0x10] sm:$0xff]  ;;  %s1561_s18 = smov (!%p204_p4, %s997_s18), 255 }
   0xd   : > { %v480_v1 = vunpack.c.l.b16 %v298_v0  ;;  %v1212_v6 = vld [vmem:[%s1553_s1 + $0x8] sm:$0xff]  ;;  %s998_s25 = sshll.u32 %s1561_s18, 2  ;;  %v1211_v7 = vld [vmem:[%s1553_s1] sm:$0xff]  ;;  %vm490_vm1 = vcmask 588800   ;;  %s1000_s6 = sshll.u32 %s1561_s18, 3 }
   0xe   : > { %s1338_s30 = scalar_lea.vmem %s1552_s0, %s998_s25  ;;  %v1407_v40 = vld [vmem:[%s1554_s2] ss:$0 sm:$0xff]  ;;  %s1415_s9 = scalar_lea.vmem %s1555_s3, %s1000_s6 }
   0xf   : > { %v485_v2 = vpack.c.b16 %v480_v1, %v480_v1  ;;  %v1179_v8 = vld [vmem:[%s1338_s30] sm:$0xff]  ;;  %v1180_v12 = vld [vmem:[%s1338_s30 + $0x8] sm:$0xff]  ;;  %v1181_v16 = vld [vmem:[%s1338_s30 + $0x10] sm:$0xff] }
  0x10   : > { %v1187_v9 = vld [vmem:[%s1338_s30 + $0x40] sm:$0xff]  ;;  %v1188_v13 = vld [vmem:[%s1338_s30 + $0x48] sm:$0xff]  ;;  %v1189_v17 = vld [vmem:[%s1338_s30 + $0x50] sm:$0xff] }
  0x11   : > { %v589_v3 = vsel %vm587_vm0, %v485_v2, 0  ;;  %v1195_v10 = vld [vmem:[%s1338_s30 + $0x80] sm:$0xff]  ;;  %v1196_v14 = vld [vmem:[%s1338_s30 + $0x88] sm:$0xff]  ;;  %v1197_v18 = vld [vmem:[%s1338_s30 + $0x90] sm:$0xff] }
  0x12   : > { %594 = vmatpush.bf16.msra.mxu0 %v589_v3  ;;  %1215 = vmatpush.bf16.msra.mxu1 %v589_v3  ;;  %v1203_v11 = vld [vmem:[%s1338_s30 + $0xc0] sm:$0xff]  ;;  %v1204_v15 = vld [vmem:[%s1338_s30 + $0xc8] sm:$0xff]  ;;  %v1205_v19 = vld [vmem:[%s1338_s30 + $0xd0] sm:$0xff] }
  0x13   : > { %1216 = vmatpush.bf16.msra.mxu2 %v589_v3  ;;  %1217 = vmatpush.bf16.msra.mxu3 %v589_v3  ;;  %v1182_v20 = vld [vmem:[%s1338_s30 + $0x18] sm:$0xff]  ;;  %v1183_v24 = vld [vmem:[%s1338_s30 + $0x20] sm:$0xff]  ;;  %v1184_v28 = vld [vmem:[%s1338_s30 + $0x28] sm:$0xff] }
  0x14   : > { %v1190_v21 = vld [vmem:[%s1338_s30 + $0x58] sm:$0xff]  ;;  %v1191_v25 = vld [vmem:[%s1338_s30 + $0x60] sm:$0xff]  ;;  %v1192_v29 = vld [vmem:[%s1338_s30 + $0x68] sm:$0xff] }
  0x15   : > { %v1198_v22 = vld [vmem:[%s1338_s30 + $0x98] sm:$0xff]  ;;  %v1199_v26 = vld [vmem:[%s1338_s30 + $0xa0] sm:$0xff]  ;;  %v1200_v30 = vld [vmem:[%s1338_s30 + $0xa8] sm:$0xff] }
  0x16   : > { %595 = vmatpush.bf16.msra.mxu0 %v1214_v4  ;;  %1218 = vmatpush.bf16.msra.mxu1 %v1214_v4  ;;  %v1206_v23 = vld [vmem:[%s1338_s30 + $0xd8] sm:$0xff]  ;;  %v1207_v27 = vld [vmem:[%s1338_s30 + $0xe0] sm:$0xff]  ;;  %v1208_v31 = vld [vmem:[%s1338_s30 + $0xe8] sm:$0xff] }
  0x17   : > { %1219 = vmatpush.bf16.msra.mxu2 %v1214_v4  ;;  %1220 = vmatpush.bf16.msra.mxu3 %v1214_v4  ;;  %v1185_v32 = vld [vmem:[%s1338_s30 + $0x30] sm:$0xff]  ;;  %v1186_v36 = vld [vmem:[%s1338_s30 + $0x38] sm:$0xff] }
  0x18   : > { %v1193_v33 = vld [vmem:[%s1338_s30 + $0x70] sm:$0xff]  ;;  %v1194_v37 = vld [vmem:[%s1338_s30 + $0x78] sm:$0xff] }
  0x19   : > { %v1201_v34 = vld [vmem:[%s1338_s30 + $0xb0] sm:$0xff]  ;;  %v1202_v38 = vld [vmem:[%s1338_s30 + $0xb8] sm:$0xff] }
  0x1a   : > { %596 = vmatpush.bf16.msra.mxu0 %v1213_v5  ;;  %1221 = vmatpush.bf16.msra.mxu1 %v1213_v5  ;;  %v1209_v35 = vld [vmem:[%s1338_s30 + $0xf0] sm:$0xff]  ;;  %v1210_v39 = vld [vmem:[%s1338_s30 + $0xf8] sm:$0xff] }
  0x1b   : > { %1222 = vmatpush.bf16.msra.mxu2 %v1213_v5  ;;  %1223 = vmatpush.bf16.msra.mxu3 %v1213_v5 }
  0x1e   : > { %597 = vmatpush.bf16.msra.mxu0 %v1212_v6  ;;  %1224 = vmatpush.bf16.msra.mxu1 %v1212_v6 }
  0x1f   : > { %1225 = vmatpush.bf16.msra.mxu2 %v1212_v6  ;;  %1226 = vmatpush.bf16.msra.mxu3 %v1212_v6 }
  0x22   : > { %598 = vmatpush.bf16.msra.mxu0 %v1211_v7  ;;  %1227 = vmatpush.bf16.msra.mxu1 %v1211_v7 }
  0x23   : > { %1228 = vmatpush.bf16.msra.mxu2 %v1211_v7  ;;  %1229 = vmatpush.bf16.msra.mxu3 %v1211_v7 }
  0x25   : > { %1145 = vmatmul.msk.bf16.vlgmr.msra.gmra.mxu0 %vm490_vm1, %v1179_v8  ;;  %1153 = vmatmul.msk.bf16.vlgmr.msra.gmra.mxu1 %vm490_vm1, %v1187_v9 }
  0x26   : > { %1161 = vmatmul.msk.bf16.vlgmr.msra.gmra.mxu2 %vm490_vm1, %v1195_v10  ;;  %1169 = vmatmul.msk.bf16.vlgmr.msra.gmra.mxu3 %vm490_vm1, %v1203_v11 }
  0x35   : > { %1146 = vmatmul.msk.bf16.gmra.mxu0 %vm490_vm1, %v1180_v12  ;;  %1154 = vmatmul.msk.bf16.gmra.mxu1 %vm490_vm1, %v1188_v13 }
  0x36   : > { %1162 = vmatmul.msk.bf16.gmra.mxu2 %vm490_vm1, %v1196_v14  ;;  %1170 = vmatmul.msk.bf16.gmra.mxu3 %vm490_vm1, %v1204_v15 }
  0x45   : > { %1147 = vmatmul.msk.bf16.gmra.mxu0 %vm490_vm1, %v1181_v16  ;;  %1155 = vmatmul.msk.bf16.gmra.mxu1 %vm490_vm1, %v1189_v17 }
  0x46   : > { %1163 = vmatmul.msk.bf16.gmra.mxu2 %vm490_vm1, %v1197_v18  ;;  %1171 = vmatmul.msk.bf16.gmra.mxu3 %vm490_vm1, %v1205_v19 }
  0x55   : > { %1148 = vmatmul.msk.bf16.gmra.mxu0 %vm490_vm1, %v1182_v20  ;;  %1156 = vmatmul.msk.bf16.gmra.mxu1 %vm490_vm1, %v1190_v21 }
  0x56   : > { %1164 = vmatmul.msk.bf16.gmra.mxu2 %vm490_vm1, %v1198_v22  ;;  %1172 = vmatmul.msk.bf16.gmra.mxu3 %vm490_vm1, %v1206_v23 }
  0x65   : > { %1149 = vmatmul.msk.bf16.gmra.mxu0 %vm490_vm1, %v1183_v24  ;;  %1157 = vmatmul.msk.bf16.gmra.mxu1 %vm490_vm1, %v1191_v25 }
  0x66   : > { %1165 = vmatmul.msk.bf16.gmra.mxu2 %vm490_vm1, %v1199_v26  ;;  %1173 = vmatmul.msk.bf16.gmra.mxu3 %vm490_vm1, %v1207_v27 }
  0x75   : > { %1150 = vmatmul.msk.bf16.gmra.mxu0 %vm490_vm1, %v1184_v28  ;;  %1158 = vmatmul.msk.bf16.gmra.mxu1 %vm490_vm1, %v1192_v29 }
  0x76   : > { %1166 = vmatmul.msk.bf16.gmra.mxu2 %vm490_vm1, %v1200_v30  ;;  %1174 = vmatmul.msk.bf16.gmra.mxu3 %vm490_vm1, %v1208_v31 }
  0x85   : > { %1151 = vmatmul.msk.bf16.gmra.mxu0 %vm490_vm1, %v1185_v32  ;;  %1159 = vmatmul.msk.bf16.gmra.mxu1 %vm490_vm1, %v1193_v33 }
  0x86   : > { %1167 = vmatmul.msk.bf16.gmra.mxu2 %vm490_vm1, %v1201_v34  ;;  %1175 = vmatmul.msk.bf16.gmra.mxu3 %vm490_vm1, %v1209_v35 }
  0x95   : > { %1152 = vmatmul.msk.bf16.gmra.mxu0 %vm490_vm1, %v1186_v36  ;;  %1160 = vmatmul.msk.bf16.gmra.mxu1 %vm490_vm1, %v1194_v37 }
  0x96   : > { %1168 = vmatmul.msk.bf16.gmra.mxu2 %vm490_vm1, %v1202_v38  ;;  %1176 = vmatmul.msk.bf16.gmra.mxu3 %vm490_vm1, %v1210_v39 }
  0xa2   : > { %v600_v41 = vpop.f32.mrf.mxu0  ;;  %v640_v42 = vpop.f32.mrf.mxu1 }
  0xa3   : > { %v601_v43 = vadd.f32 %v1407_v40, %v600_v41  ;;  %v641_v44 = vadd.f32 %v1407_v40, %v640_v42 }
  0xa5   : > { %v760_v45 = vmax.f32 %v601_v43, 0.0  ;;  %v776_v46 = vmax.f32 %v641_v44, 0.0 }
  0xa7   : > { %824 = vst [vmem:[%s1415_s9] sm:$0xff] %v760_v45 }
  0xa8   : > { %840 = vst [vmem:[%s1415_s9 + $0x80] sm:$0xff] %v776_v46 }
  0xa9   : > { %v680_v47 = vpop.f32.mrf.mxu2  ;;  %v720_v48 = vpop.f32.mrf.mxu3 }
  0xaa   : > { %v681_v49 = vadd.f32 %v1407_v40, %v680_v47  ;;  %v721_v50 = vadd.f32 %v1407_v40, %v720_v48  ;;  %v602_v51 = vpop.f32.mrf.mxu0  ;;  %v642_v52 = vpop.f32.mrf.mxu1 }
  0xab   : > { %v603_v53 = vadd.f32 %v1407_v40, %v602_v51  ;;  %v643_v54 = vadd.f32 %v1407_v40, %v642_v52 }
  0xac   : > { %v792_v55 = vmax.f32 %v681_v49, 0.0  ;;  %v808_v56 = vmax.f32 %v721_v50, 0.0 }
  0xad   : > { %v761_v57 = vmax.f32 %v603_v53, 0.0  ;;  %v777_v58 = vmax.f32 %v643_v54, 0.0 }
  0xae   : > { %856 = vst [vmem:[%s1415_s9 + $0x100] sm:$0xff] %v792_v55 }
  0xaf   : > { %872 = vst [vmem:[%s1415_s9 + $0x180] sm:$0xff] %v808_v56 }
  0xb0   : > { %825 = vst [vmem:[%s1415_s9 + $0x8] sm:$0xff] %v761_v57 }
  0xb1   : > { %841 = vst [vmem:[%s1415_s9 + $0x88] sm:$0xff] %v777_v58  ;;  %v682_v59 = vpop.f32.mrf.mxu2  ;;  %v722_v60 = vpop.f32.mrf.mxu3 }
  0xb2   : > { %v683_v61 = vadd.f32 %v1407_v40, %v682_v59  ;;  %v723_v62 = vadd.f32 %v1407_v40, %v722_v60  ;;  %v605_v63 = vpop.f32.mrf.mxu0  ;;  %v645_v0 = vpop.f32.mrf.mxu1 }
  0xb3   : > { %v606_v1 = vadd.f32 %v1407_v40, %v605_v63  ;;  %v646_v2 = vadd.f32 %v1407_v40, %v645_v0 }
  0xb4   : > { %v793_v3 = vmax.f32 %v683_v61, 0.0  ;;  %v809_v4 = vmax.f32 %v723_v62, 0.0 }
  0xb5   : > { %v762_v5 = vmax.f32 %v606_v1, 0.0  ;;  %v778_v6 = vmax.f32 %v646_v2, 0.0 }
  0xb6   : > { %857 = vst [vmem:[%s1415_s9 + $0x108] sm:$0xff] %v793_v3 }
  0xb7   : > { %873 = vst [vmem:[%s1415_s9 + $0x188] sm:$0xff] %v809_v4 }
  0xb8   : > { %826 = vst [vmem:[%s1415_s9 + $0x10] sm:$0xff] %v762_v5 }
  0xb9   : > { %842 = vst [vmem:[%s1415_s9 + $0x90] sm:$0xff] %v778_v6  ;;  %v685_v7 = vpop.f32.mrf.mxu2  ;;  %v725_v8 = vpop.f32.mrf.mxu3 }
  0xba   : > { %v686_v9 = vadd.f32 %v1407_v40, %v685_v7  ;;  %v726_v10 = vadd.f32 %v1407_v40, %v725_v8  ;;  %v607_v11 = vpop.f32.mrf.mxu0  ;;  %v647_v12 = vpop.f32.mrf.mxu1 }
  0xbb   : > { %v608_v13 = vadd.f32 %v1407_v40, %v607_v11  ;;  %v648_v14 = vadd.f32 %v1407_v40, %v647_v12 }
  0xbc   : > { %v794_v15 = vmax.f32 %v686_v9, 0.0  ;;  %v810_v16 = vmax.f32 %v726_v10, 0.0 }
  0xbd   : > { %v763_v17 = vmax.f32 %v608_v13, 0.0  ;;  %v779_v18 = vmax.f32 %v648_v14, 0.0 }
  0xbe   : > { %858 = vst [vmem:[%s1415_s9 + $0x110] sm:$0xff] %v794_v15 }
  0xbf   : > { %874 = vst [vmem:[%s1415_s9 + $0x190] sm:$0xff] %v810_v16 }
  0xc0   : > { %827 = vst [vmem:[%s1415_s9 + $0x18] sm:$0xff] %v763_v17 }
  0xc1   : > { %843 = vst [vmem:[%s1415_s9 + $0x98] sm:$0xff] %v779_v18  ;;  %v687_v19 = vpop.f32.mrf.mxu2  ;;  %v727_v20 = vpop.f32.mrf.mxu3 }
  0xc2   : > { %v688_v21 = vadd.f32 %v1407_v40, %v687_v19  ;;  %v728_v22 = vadd.f32 %v1407_v40, %v727_v20  ;;  %v610_v23 = vpop.f32.mrf.mxu0  ;;  %v650_v24 = vpop.f32.mrf.mxu1 }
  0xc3   : > { %v611_v25 = vadd.f32 %v1407_v40, %v610_v23  ;;  %v651_v26 = vadd.f32 %v1407_v40, %v650_v24 }
  0xc4   : > { %v795_v27 = vmax.f32 %v688_v21, 0.0  ;;  %v811_v28 = vmax.f32 %v728_v22, 0.0 }
  0xc5   : > { %v764_v29 = vmax.f32 %v611_v25, 0.0  ;;  %v780_v30 = vmax.f32 %v651_v26, 0.0 }
  0xc6   : > { %859 = vst [vmem:[%s1415_s9 + $0x118] sm:$0xff] %v795_v27 }
  0xc7   : > { %875 = vst [vmem:[%s1415_s9 + $0x198] sm:$0xff] %v811_v28 }
  0xc8   : > { %828 = vst [vmem:[%s1415_s9 + $0x20] sm:$0xff] %v764_v29 }
  0xc9   : > { %844 = vst [vmem:[%s1415_s9 + $0xa0] sm:$0xff] %v780_v30  ;;  %v690_v31 = vpop.f32.mrf.mxu2  ;;  %v730_v32 = vpop.f32.mrf.mxu3 }
  0xca   : > { %v691_v33 = vadd.f32 %v1407_v40, %v690_v31  ;;  %v731_v34 = vadd.f32 %v1407_v40, %v730_v32  ;;  %v612_v35 = vpop.f32.mrf.mxu0  ;;  %v652_v36 = vpop.f32.mrf.mxu1 }
  0xcb   : > { %v613_v37 = vadd.f32 %v1407_v40, %v612_v35  ;;  %v653_v38 = vadd.f32 %v1407_v40, %v652_v36 }
  0xcc   : > { %v796_v39 = vmax.f32 %v691_v33, 0.0  ;;  %v812_v41 = vmax.f32 %v731_v34, 0.0 }
  0xcd   : > { %v765_v42 = vmax.f32 %v613_v37, 0.0  ;;  %v781_v43 = vmax.f32 %v653_v38, 0.0 }
  0xce   : > { %860 = vst [vmem:[%s1415_s9 + $0x120] sm:$0xff] %v796_v39 }
  0xcf   : > { %876 = vst [vmem:[%s1415_s9 + $0x1a0] sm:$0xff] %v812_v41 }
  0xd0   : > { %829 = vst [vmem:[%s1415_s9 + $0x28] sm:$0xff] %v765_v42 }
  0xd1   : > { %845 = vst [vmem:[%s1415_s9 + $0xa8] sm:$0xff] %v781_v43  ;;  %v692_v44 = vpop.f32.mrf.mxu2  ;;  %v732_v45 = vpop.f32.mrf.mxu3 }
  0xd2   : > { %v693_v46 = vadd.f32 %v1407_v40, %v692_v44  ;;  %v733_v47 = vadd.f32 %v1407_v40, %v732_v45  ;;  %v615_v48 = vpop.f32.mrf.mxu0  ;;  %v655_v49 = vpop.f32.mrf.mxu1 }
  0xd3   : > { %v616_v50 = vadd.f32 %v1407_v40, %v615_v48  ;;  %v656_v51 = vadd.f32 %v1407_v40, %v655_v49 }
  0xd4   : > { %v797_v52 = vmax.f32 %v693_v46, 0.0  ;;  %v813_v53 = vmax.f32 %v733_v47, 0.0 }
  0xd5   : > { %v766_v54 = vmax.f32 %v616_v50, 0.0  ;;  %v782_v55 = vmax.f32 %v656_v51, 0.0 }
  0xd6   : > { %861 = vst [vmem:[%s1415_s9 + $0x128] sm:$0xff] %v797_v52 }
  0xd7   : > { %877 = vst [vmem:[%s1415_s9 + $0x1a8] sm:$0xff] %v813_v53 }
  0xd8   : > { %830 = vst [vmem:[%s1415_s9 + $0x30] sm:$0xff] %v766_v54 }
  0xd9   : > { %846 = vst [vmem:[%s1415_s9 + $0xb0] sm:$0xff] %v782_v55  ;;  %v695_v56 = vpop.f32.mrf.mxu2  ;;  %v735_v57 = vpop.f32.mrf.mxu3 }
  0xda   : > { %v696_v58 = vadd.f32 %v1407_v40, %v695_v56  ;;  %v736_v59 = vadd.f32 %v1407_v40, %v735_v57  ;;  %v617_v60 = vpop.f32.mrf.mxu0  ;;  %v657_v61 = vpop.f32.mrf.mxu1 }
  0xdb   : > { %v618_v62 = vadd.f32 %v1407_v40, %v617_v60  ;;  %v658_v63 = vadd.f32 %v1407_v40, %v657_v61 }
  0xdc   : > { %v798_v0 = vmax.f32 %v696_v58, 0.0  ;;  %v814_v1 = vmax.f32 %v736_v59, 0.0 }
  0xdd   : > { %v767_v2 = vmax.f32 %v618_v62, 0.0  ;;  %v783_v3 = vmax.f32 %v658_v63, 0.0 }
  0xde   : > { %862 = vst [vmem:[%s1415_s9 + $0x130] sm:$0xff] %v798_v0 }
  0xdf   : > { %878 = vst [vmem:[%s1415_s9 + $0x1b0] sm:$0xff] %v814_v1 }
  0xe0   : > { %831 = vst [vmem:[%s1415_s9 + $0x38] sm:$0xff] %v767_v2 }
  0xe1   : > { %847 = vst [vmem:[%s1415_s9 + $0xb8] sm:$0xff] %v783_v3  ;;  %v697_v4 = vpop.f32.mrf.mxu2  ;;  %v737_v5 = vpop.f32.mrf.mxu3 }
  0xe2   : > { %v698_v6 = vadd.f32 %v1407_v40, %v697_v4  ;;  %v738_v7 = vadd.f32 %v1407_v40, %v737_v5  ;;  %v620_v8 = vpop.f32.mrf.mxu0  ;;  %v660_v9 = vpop.f32.mrf.mxu1 }
  0xe3   : > { %v621_v10 = vadd.f32 %v1407_v40, %v620_v8  ;;  %v661_v11 = vadd.f32 %v1407_v40, %v660_v9 }
  0xe4   : > { %v799_v12 = vmax.f32 %v698_v6, 0.0  ;;  %v815_v13 = vmax.f32 %v738_v7, 0.0 }
  0xe5   : > { %v768_v14 = vmax.f32 %v621_v10, 0.0  ;;  %v784_v15 = vmax.f32 %v661_v11, 0.0 }
  0xe6   : > { %863 = vst [vmem:[%s1415_s9 + $0x138] sm:$0xff] %v799_v12 }
  0xe7   : > { %879 = vst [vmem:[%s1415_s9 + $0x1b8] sm:$0xff] %v815_v13 }
  0xe8   : > { %832 = vst [vmem:[%s1415_s9 + $0x40] sm:$0xff] %v768_v14 }
  0xe9   : > { %848 = vst [vmem:[%s1415_s9 + $0xc0] sm:$0xff] %v784_v15  ;;  %v700_v16 = vpop.f32.mrf.mxu2  ;;  %v740_v17 = vpop.f32.mrf.mxu3 }
  0xea   : > { %v701_v18 = vadd.f32 %v1407_v40, %v700_v16  ;;  %v741_v19 = vadd.f32 %v1407_v40, %v740_v17  ;;  %v622_v20 = vpop.f32.mrf.mxu0  ;;  %v662_v21 = vpop.f32.mrf.mxu1 }
  0xeb   : > { %v623_v22 = vadd.f32 %v1407_v40, %v622_v20  ;;  %v663_v23 = vadd.f32 %v1407_v40, %v662_v21 }
  0xec   : > { %v800_v24 = vmax.f32 %v701_v18, 0.0  ;;  %v816_v25 = vmax.f32 %v741_v19, 0.0 }
  0xed   : > { %v769_v26 = vmax.f32 %v623_v22, 0.0  ;;  %v785_v27 = vmax.f32 %v663_v23, 0.0 }
  0xee   : > { %864 = vst [vmem:[%s1415_s9 + $0x140] sm:$0xff] %v800_v24 }
  0xef   : > { %880 = vst [vmem:[%s1415_s9 + $0x1c0] sm:$0xff] %v816_v25 }
  0xf0   : > { %833 = vst [vmem:[%s1415_s9 + $0x48] sm:$0xff] %v769_v26 }
  0xf1   : > { %849 = vst [vmem:[%s1415_s9 + $0xc8] sm:$0xff] %v785_v27  ;;  %v702_v28 = vpop.f32.mrf.mxu2  ;;  %v742_v29 = vpop.f32.mrf.mxu3 }
  0xf2   : > { %v703_v30 = vadd.f32 %v1407_v40, %v702_v28  ;;  %v743_v31 = vadd.f32 %v1407_v40, %v742_v29  ;;  %v625_v32 = vpop.f32.mrf.mxu0  ;;  %v665_v33 = vpop.f32.mrf.mxu1 }
  0xf3   : > { %v626_v34 = vadd.f32 %v1407_v40, %v625_v32  ;;  %v666_v35 = vadd.f32 %v1407_v40, %v665_v33 }
  0xf4   : > { %v801_v36 = vmax.f32 %v703_v30, 0.0  ;;  %v817_v37 = vmax.f32 %v743_v31, 0.0 }
  0xf5   : > { %v770_v38 = vmax.f32 %v626_v34, 0.0  ;;  %v786_v39 = vmax.f32 %v666_v35, 0.0 }
  0xf6   : > { %865 = vst [vmem:[%s1415_s9 + $0x148] sm:$0xff] %v801_v36 }
  0xf7   : > { %881 = vst [vmem:[%s1415_s9 + $0x1c8] sm:$0xff] %v817_v37 }
  0xf8   : > { %834 = vst [vmem:[%s1415_s9 + $0x50] sm:$0xff] %v770_v38 }
  0xf9   : > { %850 = vst [vmem:[%s1415_s9 + $0xd0] sm:$0xff] %v786_v39  ;;  %v705_v41 = vpop.f32.mrf.mxu2  ;;  %v745_v42 = vpop.f32.mrf.mxu3 }
  0xfa   : > { %v706_v43 = vadd.f32 %v1407_v40, %v705_v41  ;;  %v746_v44 = vadd.f32 %v1407_v40, %v745_v42  ;;  %v627_v45 = vpop.f32.mrf.mxu0  ;;  %v667_v46 = vpop.f32.mrf.mxu1 }
  0xfb   : > { %v628_v47 = vadd.f32 %v1407_v40, %v627_v45  ;;  %v668_v48 = vadd.f32 %v1407_v40, %v667_v46 }
  0xfc   : > { %v802_v49 = vmax.f32 %v706_v43, 0.0  ;;  %v818_v50 = vmax.f32 %v746_v44, 0.0 }
  0xfd   : > { %v771_v51 = vmax.f32 %v628_v47, 0.0  ;;  %v787_v52 = vmax.f32 %v668_v48, 0.0 }
  0xfe   : > { %866 = vst [vmem:[%s1415_s9 + $0x150] sm:$0xff] %v802_v49 }
  0xff   : > { %882 = vst [vmem:[%s1415_s9 + $0x1d0] sm:$0xff] %v818_v50 }
 0x100   : > { %835 = vst [vmem:[%s1415_s9 + $0x58] sm:$0xff] %v771_v51 }
 0x101   : > { %851 = vst [vmem:[%s1415_s9 + $0xd8] sm:$0xff] %v787_v52  ;;  %v707_v53 = vpop.f32.mrf.mxu2  ;;  %v747_v54 = vpop.f32.mrf.mxu3 }
 0x102   : > { %v708_v55 = vadd.f32 %v1407_v40, %v707_v53  ;;  %v748_v56 = vadd.f32 %v1407_v40, %v747_v54  ;;  %v630_v57 = vpop.f32.mrf.mxu0  ;;  %v670_v58 = vpop.f32.mrf.mxu1 }
 0x103   : > { %v631_v59 = vadd.f32 %v1407_v40, %v630_v57  ;;  %v671_v60 = vadd.f32 %v1407_v40, %v670_v58 }
 0x104   : > { %v803_v61 = vmax.f32 %v708_v55, 0.0  ;;  %v819_v62 = vmax.f32 %v748_v56, 0.0 }
 0x105   : > { %v772_v63 = vmax.f32 %v631_v59, 0.0  ;;  %v788_v0 = vmax.f32 %v671_v60, 0.0 }
 0x106   : > { %867 = vst [vmem:[%s1415_s9 + $0x158] sm:$0xff] %v803_v61 }
 0x107   : > { %883 = vst [vmem:[%s1415_s9 + $0x1d8] sm:$0xff] %v819_v62 }
 0x108   : > { %836 = vst [vmem:[%s1415_s9 + $0x60] sm:$0xff] %v772_v63 }
 0x109   : > { %852 = vst [vmem:[%s1415_s9 + $0xe0] sm:$0xff] %v788_v0  ;;  %v710_v1 = vpop.f32.mrf.mxu2  ;;  %v750_v2 = vpop.f32.mrf.mxu3 }
 0x10a   : > { %v711_v3 = vadd.f32 %v1407_v40, %v710_v1  ;;  %v751_v4 = vadd.f32 %v1407_v40, %v750_v2  ;;  %v632_v5 = vpop.f32.mrf.mxu0  ;;  %v672_v6 = vpop.f32.mrf.mxu1 }
 0x10b   : > { %v633_v7 = vadd.f32 %v1407_v40, %v632_v5  ;;  %v673_v8 = vadd.f32 %v1407_v40, %v672_v6 }
 0x10c   : > { %v804_v9 = vmax.f32 %v711_v3, 0.0  ;;  %v820_v10 = vmax.f32 %v751_v4, 0.0 }
 0x10d   : > { %v773_v11 = vmax.f32 %v633_v7, 0.0  ;;  %v789_v12 = vmax.f32 %v673_v8, 0.0 }
 0x10e   : > { %868 = vst [vmem:[%s1415_s9 + $0x160] sm:$0xff] %v804_v9 }
 0x10f   : > { %884 = vst [vmem:[%s1415_s9 + $0x1e0] sm:$0xff] %v820_v10 }
 0x110   : > { %837 = vst [vmem:[%s1415_s9 + $0x68] sm:$0xff] %v773_v11 }
 0x111   : > { %853 = vst [vmem:[%s1415_s9 + $0xe8] sm:$0xff] %v789_v12  ;;  %v712_v13 = vpop.f32.mrf.mxu2  ;;  %v752_v14 = vpop.f32.mrf.mxu3 }
 0x112   : > { %v713_v15 = vadd.f32 %v1407_v40, %v712_v13  ;;  %v753_v16 = vadd.f32 %v1407_v40, %v752_v14  ;;  %v635_v17 = vpop.f32.mrf.mxu0  ;;  %v675_v18 = vpop.f32.mrf.mxu1 }
 0x113   : > { %v636_v19 = vadd.f32 %v1407_v40, %v635_v17  ;;  %v676_v20 = vadd.f32 %v1407_v40, %v675_v18 }
 0x114   : > { %v805_v21 = vmax.f32 %v713_v15, 0.0  ;;  %v821_v22 = vmax.f32 %v753_v16, 0.0 }
 0x115   : > { %v774_v23 = vmax.f32 %v636_v19, 0.0  ;;  %v790_v24 = vmax.f32 %v676_v20, 0.0 }
 0x116   : > { %869 = vst [vmem:[%s1415_s9 + $0x168] sm:$0xff] %v805_v21 }
 0x117   : > { %885 = vst [vmem:[%s1415_s9 + $0x1e8] sm:$0xff] %v821_v22 }
 0x118   : > { %838 = vst [vmem:[%s1415_s9 + $0x70] sm:$0xff] %v774_v23 }
 0x119   : > { %854 = vst [vmem:[%s1415_s9 + $0xf0] sm:$0xff] %v790_v24  ;;  %v715_v25 = vpop.f32.mrf.mxu2  ;;  %v755_v26 = vpop.f32.mrf.mxu3 }
 0x11a   : > { %v716_v27 = vadd.f32 %v1407_v40, %v715_v25  ;;  %v756_v28 = vadd.f32 %v1407_v40, %v755_v26  ;;  %v637_v29 = vpop.f32.mrf.mxu0  ;;  %v677_v30 = vpop.f32.mrf.mxu1 }
 0x11b   : > { %v638_v31 = vadd.f32 %v1407_v40, %v637_v29  ;;  %v678_v32 = vadd.f32 %v1407_v40, %v677_v30 }
 0x11c   : > { %v806_v33 = vmax.f32 %v716_v27, 0.0  ;;  %v822_v34 = vmax.f32 %v756_v28, 0.0 }
 0x11d   : > { %v775_v35 = vmax.f32 %v638_v31, 0.0  ;;  %v791_v36 = vmax.f32 %v678_v32, 0.0 }
 0x11e   : > { %870 = vst [vmem:[%s1415_s9 + $0x170] sm:$0xff] %v806_v33 }
 0x11f   : > { %886 = vst [vmem:[%s1415_s9 + $0x1f0] sm:$0xff] %v822_v34 }
 0x120   : > { %839 = vst [vmem:[%s1415_s9 + $0x78] sm:$0xff] %v775_v35 }
 0x121   : > { %855 = vst [vmem:[%s1415_s9 + $0xf8] sm:$0xff] %v791_v36  ;;  %v717_v37 = vpop.f32.mrf.mxu2  ;;  %v757_v38 = vpop.f32.mrf.mxu3 }
 0x122   : > { %v718_v39 = vadd.f32 %v1407_v40, %v717_v37  ;;  %v758_v41 = vadd.f32 %v1407_v40, %v757_v38 }
 0x124   : > { %v807_v42 = vmax.f32 %v718_v39, 0.0  ;;  %v823_v43 = vmax.f32 %v758_v41, 0.0 }
 0x126   : > { %871 = vst [vmem:[%s1415_s9 + $0x178] sm:$0xff] %v807_v42 }
 0x127   : > { %887 = vst [vmem:[%s1415_s9 + $0x1f8] sm:$0xff] %v823_v43 }
 0x128 PF: > { %s13_s14 = sadd.s32 1, %s1277_s14   ;;  %s1556_s12 = smov %s1273_s13 }
 0x129   : > { %p10_p5 = scmp.ge.s32.totalorder %s13_s14, 6   ;;  %s1557_s13 = smov %s1559_s15 }
 0x12b   :  { %12 = sbr.rel (!%p10_p5) target bundleno = 2 (0x2), region = 68 }

// kernel: ssd_forward.9
= control target key start
LH: loop header
LB: loop body
LE: loop exit
PB: predicated region body
PF: predicated region fallthrough
CT: control target
= control target key end

     0   :  { %s1188_s12 = smov 0   ;;  %s1190_s13 = smov 0   ;;  %s1414_s0 = inlined_call_operand.vmem [shape: bf16[512,144], index: 0, kind: input, shape index: {}]   ;;  %s1415_s1 = inlined_call_operand.vmem [shape: bf16[144,128], index: 1, kind: input, shape index: {}]   ;;  %s1416_s2 = inlined_call_operand.vmem [shape: f32[1,128], index: 2, kind: input, shape index: {}]   ;;  %s1417_s3 = inlined_call_operand.vmem [shape: f32[512,128], index: 3, kind: output, shape index: {}]  }
   0x1   :  { %s1192_s14 = smov 0  }
   0x2 LB: > { %s25_s15 = sadd.s32 1, %s1162_s13  ;;  %p880_p0 = scmp.ge.s32.totalorder %s1166_s14, 1  ;;  %s1166_s14 = sphi %s1192_s14, %s13_s14   ;;  %s1162_s13 = sphi %s1190_s13, %s1419_s13   ;;  %s1158_s12 = sphi %s1188_s12, %s1418_s12  }
   0x3   : > { %p27_p1 = scmp.ge.s32.totalorder %s25_s15, 2  ;;  %p170_p2 = scmp.lt.s32.totalorder %s1166_s14, 3 }
   0x5   : > { %s1421_s15 = smov (%p27_p1, %s25_s15), 0  ;;  %p171_p3 = pnand %p880_p0, %p170_p2 }
   0x6   : > { %s881_s20 = sshll.u32 (!%p171_p3), %s1158_s12, 5 }
   0x7   : > { %174 = sbr.rel (%p171_p3) target bundleno = 303 (0x12f), region = 32  ;;  %p206_p4 = scmp.lt.s32.totalorder (!%p171_p3), %s881_s20, 63 }
   0xc   : > { %v1108_v0 = vld [vmem:[%s1415_s1 + $0x38] sm:$0xff]  ;;  %v1109_v1 = vld [vmem:[%s1415_s1 + $0x40] sm:$0xff]  ;;  %v1107_v2 = vld [vmem:[%s1415_s1 + $0x30] sm:$0xff]  ;;  %s1423_s20 = smov (!%p206_p4, %s881_s20), 63  ;;  %vm481_vm0 = vcmask 130048  }
   0xd   : > { %530 = vmatpush.bf16.msra.mxu0 %v1108_v0  ;;  %1110 = vmatpush.bf16.msra.mxu2 %v1108_v0  ;;  %s1068_s23 = sshll.u32 %s1423_s20, 3  ;;  %v1106_v3 = vld [vmem:[%s1415_s1 + $0x28] sm:$0xff]  ;;  %v1105_v7 = vld [vmem:[%s1415_s1 + $0x20] sm:$0xff]  ;;  %v1104_v11 = vld [vmem:[%s1415_s1 + $0x18] sm:$0xff] }
   0xe   : > { %626 = vmatpush.bf16.msra.mxu1 %v1109_v1  ;;  %1118 = vmatpush.bf16.msra.mxu3 %v1109_v1  ;;  %s1223_s26 = scalar_lea.vmem %s1414_s0, %s1068_s23  ;;  %v1103_v12 = vld [vmem:[%s1415_s1 + $0x10] sm:$0xff]  ;;  %v1102_v16 = vld [vmem:[%s1415_s1 + $0x8] sm:$0xff]  ;;  %v1101_v19 = vld [vmem:[%s1415_s1] sm:$0xff]  ;;  %s1334_s19 = scalar_lea.vmem %s1417_s3, %s1068_s23 }
   0xf   : > { %v1069_v4 = vld [vmem:[%s1223_s26 + $0x4] sm:$0xf]  ;;  %v890_v5 = vld [vmem:[%s1223_s26 + $0x8] sm:$0xf0]  ;;  %v1087_v8 = vld [vmem:[%s1223_s26 + $0x94] sm:$0xf] }
  0x10   : > { %v893_v6 = vor.u32 %v1069_v4, %v890_v5  ;;  %v962_v9 = vld [vmem:[%s1223_s26 + $0x98] sm:$0xf0]  ;;  %v1071_v13 = vld [vmem:[%s1223_s26 + $0x14] sm:$0xf]  ;;  %v1089_v17 = vld [vmem:[%s1223_s26 + $0xa4] sm:$0xf] }
  0x11   : > { %531 = vmatpush.bf16.msra.mxu0 %v1107_v2  ;;  %1111 = vmatpush.bf16.msra.mxu2 %v1107_v2  ;;  %v965_v10 = vor.u32 %v1087_v8, %v962_v9  ;;  %v898_v14 = vld [vmem:[%s1223_s26 + $0x18] sm:$0xf0]  ;;  %v970_v18 = vld [vmem:[%s1223_s26 + $0xa8] sm:$0xf0]  ;;  %v888_v20 = vld [vmem:[%s1223_s26] sm:$0xf] }
  0x12   : > { %1050 = vmatmul.msk.bf16.vlgmr.msra.gmra.mxu1 %vm481_vm0, %v893_v6  ;;  %v901_v15 = vor.u32 %v1071_v13, %v898_v14  ;;  %v1070_v21 = vld [vmem:[%s1223_s26 + $0x4] sm:$0xf0]  ;;  %v973_v22 = vor.u32 %v1089_v17, %v970_v18  ;;  %v952_v23 = vld [vmem:[%s1223_s26 + $0x80] sm:$0xf]  ;;  %v1073_v27 = vld [vmem:[%s1223_s26 + $0x24] sm:$0xf] }
  0x13   : > { %1059 = vmatmul.msk.bf16.vlgmr.msra.gmra.mxu3 %vm481_vm0, %v965_v10  ;;  %v1086_v24 = vld [vmem:[%s1223_s26 + $0x84] sm:$0xf0]  ;;  %v889_v25 = vor.u32 %v1070_v21, %v888_v20  ;;  %v906_v28 = vld [vmem:[%s1223_s26 + $0x28] sm:$0xf0]  ;;  %v1091_v30 = vld [vmem:[%s1223_s26 + $0xb4] sm:$0xf] }
  0x14   : > { %v953_v26 = vor.u32 %v1086_v24, %v952_v23  ;;  %v909_v29 = vor.u32 %v1073_v27, %v906_v28  ;;  %v978_v31 = vld [vmem:[%s1223_s26 + $0xb8] sm:$0xf0]  ;;  %v896_v32 = vld [vmem:[%s1223_s26 + $0x10] sm:$0xf]  ;;  %v1072_v33 = vld [vmem:[%s1223_s26 + $0x14] sm:$0xf0] }
  0x15   : > { %532 = vmatpush.bf16.msra.mxu0 %v1106_v3  ;;  %1112 = vmatpush.bf16.msra.mxu2 %v1106_v3  ;;  %v981_v34 = vor.u32 %v1091_v30, %v978_v31  ;;  %v960_v35 = vld [vmem:[%s1223_s26 + $0x90] sm:$0xf]  ;;  %v1088_v36 = vld [vmem:[%s1223_s26 + $0x94] sm:$0xf0]  ;;  %v897_v37 = vor.u32 %v1072_v33, %v896_v32  ;;  %v1075_v39 = vld [vmem:[%s1223_s26 + $0x34] sm:$0xf] }
  0x16   : > { %v961_v38 = vor.u32 %v1088_v36, %v960_v35  ;;  %v914_v40 = vld [vmem:[%s1223_s26 + $0x38] sm:$0xf0]  ;;  %v1093_v42 = vld [vmem:[%s1223_s26 + $0xc4] sm:$0xf]  ;;  %v986_v43 = vld [vmem:[%s1223_s26 + $0xc8] sm:$0xf0] }
  0x17   : > { %v917_v41 = vor.u32 %v1075_v39, %v914_v40  ;;  %v904_v44 = vld [vmem:[%s1223_s26 + $0x20] sm:$0xf]  ;;  %v1074_v45 = vld [vmem:[%s1223_s26 + $0x24] sm:$0xf0]  ;;  %v989_v46 = vor.u32 %v1093_v42, %v986_v43  ;;  %v1077_v51 = vld [vmem:[%s1223_s26 + $0x44] sm:$0xf] }
  0x18   : > { %v968_v47 = vld [vmem:[%s1223_s26 + $0xa0] sm:$0xf]  ;;  %v1090_v48 = vld [vmem:[%s1223_s26 + $0xa4] sm:$0xf0]  ;;  %v905_v49 = vor.u32 %v1074_v45, %v904_v44  ;;  %v922_v52 = vld [vmem:[%s1223_s26 + $0x48] sm:$0xf0] }
  0x19   : > { %533 = vmatpush.bf16.msra.mxu0 %v1105_v7  ;;  %1113 = vmatpush.bf16.msra.mxu2 %v1105_v7  ;;  %v969_v50 = vor.u32 %v1090_v48, %v968_v47  ;;  %v925_v53 = vor.u32 %v1077_v51, %v922_v52  ;;  %v1095_v54 = vld [vmem:[%s1223_s26 + $0xd4] sm:$0xf]  ;;  %v994_v55 = vld [vmem:[%s1223_s26 + $0xd8] sm:$0xf0]  ;;  %v912_v56 = vld [vmem:[%s1223_s26 + $0x30] sm:$0xf] }
  0x1a   : > { %v1076_v57 = vld [vmem:[%s1223_s26 + $0x34] sm:$0xf0]  ;;  %v997_v58 = vor.u32 %v1095_v54, %v994_v55  ;;  %v976_v59 = vld [vmem:[%s1223_s26 + $0xb0] sm:$0xf]  ;;  %v1079_v63 = vld [vmem:[%s1223_s26 + $0x54] sm:$0xf] }
  0x1b   : > { %v1092_v60 = vld [vmem:[%s1223_s26 + $0xb4] sm:$0xf0]  ;;  %v913_v61 = vor.u32 %v1076_v57, %v912_v56  ;;  %v930_v0 = vld [vmem:[%s1223_s26 + $0x58] sm:$0xf0]  ;;  %v1097_v2 = vld [vmem:[%s1223_s26 + $0xe4] sm:$0xf] }
  0x1c   : > { %v977_v62 = vor.u32 %v1092_v60, %v976_v59  ;;  %v933_v1 = vor.u32 %v1079_v63, %v930_v0  ;;  %v1002_v3 = vld [vmem:[%s1223_s26 + $0xe8] sm:$0xf0]  ;;  %v920_v4 = vld [vmem:[%s1223_s26 + $0x40] sm:$0xf]  ;;  %v1078_v5 = vld [vmem:[%s1223_s26 + $0x44] sm:$0xf0] }
  0x1d   : > { %534 = vmatpush.bf16.msra.mxu0 %v1104_v11  ;;  %1114 = vmatpush.bf16.msra.mxu2 %v1104_v11  ;;  %v1005_v6 = vor.u32 %v1097_v2, %v1002_v3  ;;  %v984_v7 = vld [vmem:[%s1223_s26 + $0xc0] sm:$0xf]  ;;  %v1094_v8 = vld [vmem:[%s1223_s26 + $0xc4] sm:$0xf0]  ;;  %v921_v9 = vor.u32 %v1078_v5, %v920_v4  ;;  %v1081_v11 = vld [vmem:[%s1223_s26 + $0x64] sm:$0xf] }
  0x1e   : > { %v985_v10 = vor.u32 %v1094_v8, %v984_v7  ;;  %v1099_v14 = vld [vmem:[%s1223_s26 + $0xf4] sm:$0xf]  ;;  %v1080_v17 = vld [vmem:[%s1223_s26 + $0x54] sm:$0xf0]  ;;  %v946_v24 = vld [vmem:[%s1223_s26 + $0x78] sm:$0xf0] }
  0x1f   : > { %v1096_v20 = vld [vmem:[%s1223_s26 + $0xd4] sm:$0xf0]  ;;  %v1083_v23 = vld [vmem:[%s1223_s26 + $0x74] sm:$0xf]  ;;  %v1082_v27 = vld [vmem:[%s1223_s26 + $0x64] sm:$0xf0] }
  0x20   : > { %v1000_v28 = vld [vmem:[%s1223_s26 + $0xe0] sm:$0xf]  ;;  %v1085_v32 = vld [vmem:[%s1223_s26 + $0x84] sm:$0xf]  ;;  %v954_v33 = vld [vmem:[%s1223_s26 + $0x88] sm:$0xf0] }
  0x21   : > { %535 = vmatpush.bf16.msra.mxu0 %v1103_v12  ;;  %1115 = vmatpush.bf16.msra.mxu2 %v1103_v12  ;;  %v938_v12 = vld [vmem:[%s1223_s26 + $0x68] sm:$0xf0]  ;;  %v944_v36 = vld [vmem:[%s1223_s26 + $0x70] sm:$0xf]  ;;  %v1100_v39 = vld [vmem:[%s1223_s26 + $0xf4] sm:$0xf0] }
  0x22   : > { %1051 = vmatmul.msk.bf16.gmra.mxu1 %vm481_vm0, %v901_v15  ;;  %v941_v13 = vor.u32 %v1081_v11, %v938_v12  ;;  %v1010_v15 = vld [vmem:[%s1223_s26 + $0xf8] sm:$0xf0]  ;;  %v1326_v44 = vld [vmem:[%s1416_s2] ss:$0 sm:$0xff] }
  0x23   : > { %1060 = vmatmul.msk.bf16.gmra.mxu3 %vm481_vm0, %v973_v22  ;;  %v1013_v18 = vor.u32 %v1099_v14, %v1010_v15 }
  0x25   : > { %536 = vmatpush.bf16.msra.mxu0 %v1102_v16  ;;  %1116 = vmatpush.bf16.msra.mxu2 %v1102_v16  ;;  %v928_v16 = vld [vmem:[%s1223_s26 + $0x50] sm:$0xf] }
  0x26   : > { %v929_v21 = vor.u32 %v1080_v17, %v928_v16 }
  0x29   : > { %537 = vmatpush.bf16.msra.mxu0 %v1101_v19  ;;  %1117 = vmatpush.bf16.msra.mxu2 %v1101_v19  ;;  %v992_v19 = vld [vmem:[%s1223_s26 + $0xd0] sm:$0xf] }
  0x2a   : > { %v993_v22 = vor.u32 %v1096_v20, %v992_v19 }
  0x2c   : > { %538 = vmatmul.bf16.vlgmr.msra.gmra.mxu0 %v889_v25  ;;  %578 = vmatmul.bf16.vlgmr.msra.gmra.mxu2 %v953_v26  ;;  %v949_v25 = vor.u32 %v1083_v23, %v946_v24  ;;  %v936_v26 = vld [vmem:[%s1223_s26 + $0x60] sm:$0xf] }
  0x2d   : > { %v937_v30 = vor.u32 %v1082_v27, %v936_v26 }
  0x32   : > { %1052 = vmatmul.msk.bf16.gmra.mxu1 %vm481_vm0, %v909_v29  ;;  %v1098_v29 = vld [vmem:[%s1223_s26 + $0xe4] sm:$0xf0] }
  0x33   : > { %1061 = vmatmul.msk.bf16.gmra.mxu3 %vm481_vm0, %v981_v34  ;;  %v1001_v31 = vor.u32 %v1098_v29, %v1000_v28  ;;  %v957_v34 = vor.u32 %v1085_v32, %v954_v33 }
  0x3c   : > { %543 = vmatmul.bf16.gmra.mxu0 %v897_v37  ;;  %583 = vmatmul.bf16.gmra.mxu2 %v961_v38  ;;  %v1084_v37 = vld [vmem:[%s1223_s26 + $0x74] sm:$0xf0]  ;;  %v1008_v38 = vld [vmem:[%s1223_s26 + $0xf0] sm:$0xf] }
  0x3d   : > { %v945_v40 = vor.u32 %v1084_v37, %v944_v36 }
  0x42   : > { %1053 = vmatmul.msk.bf16.gmra.mxu1 %vm481_vm0, %v917_v41  ;;  %v1009_v41 = vor.u32 %v1100_v39, %v1008_v38 }
  0x43   : > { %1062 = vmatmul.msk.bf16.gmra.mxu3 %vm481_vm0, %v989_v46 }
  0x4c   : > { %548 = vmatmul.bf16.gmra.mxu0 %v905_v49  ;;  %588 = vmatmul.bf16.gmra.mxu2 %v969_v50 }
  0x52   : > { %1054 = vmatmul.msk.bf16.gmra.mxu1 %vm481_vm0, %v925_v53 }
  0x53   : > { %1063 = vmatmul.msk.bf16.gmra.mxu3 %vm481_vm0, %v997_v58 }
  0x5c   : > { %553 = vmatmul.bf16.gmra.mxu0 %v913_v61  ;;  %593 = vmatmul.bf16.gmra.mxu2 %v977_v62 }
  0x62   : > { %1055 = vmatmul.msk.bf16.gmra.mxu1 %vm481_vm0, %v933_v1 }
  0x63   : > { %1064 = vmatmul.msk.bf16.gmra.mxu3 %vm481_vm0, %v1005_v6 }
  0x6c   : > { %558 = vmatmul.bf16.gmra.mxu0 %v921_v9  ;;  %598 = vmatmul.bf16.gmra.mxu2 %v985_v10 }
  0x72   : > { %1056 = vmatmul.msk.bf16.gmra.mxu1 %vm481_vm0, %v941_v13 }
  0x73   : > { %1065 = vmatmul.msk.bf16.gmra.mxu3 %vm481_vm0, %v1013_v18 }
  0x7c   : > { %563 = vmatmul.bf16.gmra.mxu0 %v929_v21  ;;  %603 = vmatmul.bf16.gmra.mxu2 %v993_v22 }
  0x82   : > { %1057 = vmatmul.msk.bf16.gmra.mxu1 %vm481_vm0, %v949_v25 }
  0x8c   : > { %568 = vmatmul.bf16.gmra.mxu0 %v937_v30  ;;  %608 = vmatmul.bf16.gmra.mxu2 %v1001_v31 }
  0x8f   : > { %v628_v35 = vpop.f32.mrf.mxu1 }
  0x92   : > { %1058 = vmatmul.msk.bf16.gmra.mxu1 %vm481_vm0, %v957_v34 }
  0x96   : > { %v673_v45 = vpop.f32.mrf.mxu3 }
  0x97   : > { %v630_v42 = vpop.f32.mrf.mxu1 }
  0x9c   : > { %573 = vmatmul.bf16.gmra.mxu0 %v945_v40  ;;  %613 = vmatmul.bf16.gmra.mxu2 %v1009_v41 }
  0x9e   : > { %v675_v55 = vpop.f32.mrf.mxu3 }
  0x9f   : > { %v633_v43 = vpop.f32.mrf.mxu1 }
  0xa6   : > { %v678_v63 = vpop.f32.mrf.mxu3 }
  0xa7   : > { %v635_v48 = vpop.f32.mrf.mxu1 }
  0xa9   : > { %v539_v46 = vpop.f32.mrf.mxu0 }
  0xaa   : > { %v540_v47 = vadd.f32 %v1326_v44, %v539_v46 }
  0xac   : > { %v629_v49 = vadd.f32 %v628_v35, %v540_v47 }
  0xae   : > { %v708_v50 = vmax.f32 %v629_v49, 0.0  ;;  %v680_v10 = vpop.f32.mrf.mxu3 }
  0xaf   : > { %v1337_v51 = vpop.f32.mrf.mxu2  ;;  %v638_v54 = vpop.f32.mrf.mxu1 }
  0xb0   : > { %740 = vst [vmem:[%s1334_s19] sm:$0xff] %v708_v50 }
  0xb1   : > { %v541_v52 = vpop.f32.mrf.mxu0 }
  0xb2   : > { %v542_v53 = vadd.f32 %v1326_v44, %v541_v52 }
  0xb4   : > { %v631_v56 = vadd.f32 %v630_v42, %v542_v53 }
  0xb6   : > { %v709_v57 = vmax.f32 %v631_v56, 0.0  ;;  %v683_v21 = vpop.f32.mrf.mxu3 }
  0xb7   : > { %v1341_v58 = vpop.f32.mrf.mxu2  ;;  %v640_v61 = vpop.f32.mrf.mxu1 }
  0xb8   : > { %741 = vst [vmem:[%s1334_s19 + $0x8] sm:$0xff] %v709_v57 }
  0xb9   : > { %v544_v59 = vpop.f32.mrf.mxu0 }
  0xba   : > { %v545_v60 = vadd.f32 %v1326_v44, %v544_v59 }
  0xbc   : > { %v634_v62 = vadd.f32 %v633_v43, %v545_v60 }
  0xbe   : > { %v710_v0 = vmax.f32 %v634_v62, 0.0  ;;  %v685_v35 = vpop.f32.mrf.mxu3 }
  0xbf   : > { %v584_v1 = vpop.f32.mrf.mxu2  ;;  %v643_v5 = vpop.f32.mrf.mxu1 }
  0xc0   : > { %742 = vst [vmem:[%s1334_s19 + $0x10] sm:$0xff] %v710_v0  ;;  %v585_v2 = vadd.f32 %v1326_v44, %v584_v1 }
  0xc1   : > { %v546_v3 = vpop.f32.mrf.mxu0 }
  0xc2   : > { %v547_v4 = vadd.f32 %v1326_v44, %v546_v3  ;;  %v674_v6 = vadd.f32 %v673_v45, %v585_v2 }
  0xc4   : > { %v636_v7 = vadd.f32 %v635_v48, %v547_v4  ;;  %v726_v8 = vmax.f32 %v674_v6, 0.0 }
  0xc6   : > { %v711_v9 = vmax.f32 %v636_v7, 0.0  ;;  %758 = vst [vmem:[%s1334_s19 + $0x90] sm:$0xff] %v726_v8  ;;  %v688_v48 = vpop.f32.mrf.mxu3 }
  0xc7   : > { %v586_v11 = vpop.f32.mrf.mxu2  ;;  %v645_v15 = vpop.f32.mrf.mxu1 }
  0xc8   : > { %743 = vst [vmem:[%s1334_s19 + $0x18] sm:$0xff] %v711_v9  ;;  %v587_v12 = vadd.f32 %v1326_v44, %v586_v11 }
  0xc9   : > { %v549_v13 = vpop.f32.mrf.mxu0 }
  0xca   : > { %v550_v14 = vadd.f32 %v1326_v44, %v549_v13  ;;  %v676_v16 = vadd.f32 %v675_v55, %v587_v12 }
  0xcc   : > { %v639_v17 = vadd.f32 %v638_v54, %v550_v14  ;;  %v727_v18 = vmax.f32 %v676_v16, 0.0 }
  0xce   : > { %v712_v19 = vmax.f32 %v639_v17, 0.0  ;;  %759 = vst [vmem:[%s1334_s19 + $0x98] sm:$0xff] %v727_v18  ;;  %v690_v62 = vpop.f32.mrf.mxu3 }
  0xcf   : > { %v589_v20 = vpop.f32.mrf.mxu2  ;;  %v648_v25 = vpop.f32.mrf.mxu1 }
  0xd0   : > { %744 = vst [vmem:[%s1334_s19 + $0x20] sm:$0xff] %v712_v19  ;;  %v590_v22 = vadd.f32 %v1326_v44, %v589_v20 }
  0xd1   : > { %v551_v23 = vpop.f32.mrf.mxu0 }
  0xd2   : > { %v552_v24 = vadd.f32 %v1326_v44, %v551_v23  ;;  %v679_v26 = vadd.f32 %v678_v63, %v590_v22 }
  0xd4   : > { %v641_v27 = vadd.f32 %v640_v61, %v552_v24  ;;  %v728_v28 = vmax.f32 %v679_v26, 0.0 }
  0xd6   : > { %v713_v29 = vmax.f32 %v641_v27, 0.0  ;;  %760 = vst [vmem:[%s1334_s19 + $0xa0] sm:$0xff] %v728_v28  ;;  %v693_v9 = vpop.f32.mrf.mxu3 }
  0xd7   : > { %v591_v30 = vpop.f32.mrf.mxu2  ;;  %v650_v34 = vpop.f32.mrf.mxu1 }
  0xd8   : > { %745 = vst [vmem:[%s1334_s19 + $0x28] sm:$0xff] %v713_v29  ;;  %v592_v31 = vadd.f32 %v1326_v44, %v591_v30 }
  0xd9   : > { %v554_v32 = vpop.f32.mrf.mxu0 }
  0xda   : > { %v555_v33 = vadd.f32 %v1326_v44, %v554_v32  ;;  %v681_v36 = vadd.f32 %v680_v10, %v592_v31 }
  0xdc   : > { %v644_v37 = vadd.f32 %v643_v5, %v555_v33  ;;  %v729_v38 = vmax.f32 %v681_v36, 0.0 }
  0xde   : > { %v714_v39 = vmax.f32 %v644_v37, 0.0  ;;  %761 = vst [vmem:[%s1334_s19 + $0xa8] sm:$0xff] %v729_v38  ;;  %v695_v23 = vpop.f32.mrf.mxu3 }
  0xdf   : > { %v594_v40 = vpop.f32.mrf.mxu2  ;;  %v653_v45 = vpop.f32.mrf.mxu1 }
  0xe0   : > { %746 = vst [vmem:[%s1334_s19 + $0x30] sm:$0xff] %v714_v39  ;;  %v595_v41 = vadd.f32 %v1326_v44, %v594_v40  ;;  %v580_v39 = vadd.f32 %v1326_v44, %v1337_v51  ;;  %v582_v51 = vadd.f32 %v1326_v44, %v1341_v58 }
  0xe1   : > { %v556_v42 = vpop.f32.mrf.mxu0 }
  0xe2   : > { %v557_v43 = vadd.f32 %v1326_v44, %v556_v42  ;;  %v684_v46 = vadd.f32 %v683_v21, %v595_v41 }
  0xe4   : > { %v646_v47 = vadd.f32 %v645_v15, %v557_v43  ;;  %v730_v49 = vmax.f32 %v684_v46, 0.0 }
  0xe6   : > { %v715_v50 = vmax.f32 %v646_v47, 0.0  ;;  %762 = vst [vmem:[%s1334_s19 + $0xb0] sm:$0xff] %v730_v49 }
  0xe7   : > { %v596_v52 = vpop.f32.mrf.mxu2  ;;  %v655_v56 = vpop.f32.mrf.mxu1 }
  0xe8   : > { %747 = vst [vmem:[%s1334_s19 + $0x38] sm:$0xff] %v715_v50  ;;  %v597_v53 = vadd.f32 %v1326_v44, %v596_v52 }
  0xe9   : > { %v559_v54 = vpop.f32.mrf.mxu0 }
  0xea   : > { %v560_v55 = vadd.f32 %v1326_v44, %v559_v54  ;;  %v686_v57 = vadd.f32 %v685_v35, %v597_v53  ;;  %v698_v35 = vpop.f32.mrf.mxu3 }
  0xec   : > { %v649_v59 = vadd.f32 %v648_v25, %v560_v55  ;;  %v731_v60 = vmax.f32 %v686_v57, 0.0 }
  0xee   : > { %v716_v61 = vmax.f32 %v649_v59, 0.0  ;;  %763 = vst [vmem:[%s1334_s19 + $0xb8] sm:$0xff] %v731_v60 }
  0xef   : > { %v599_v63 = vpop.f32.mrf.mxu2  ;;  %v658_v3 = vpop.f32.mrf.mxu1 }
  0xf0   : > { %748 = vst [vmem:[%s1334_s19 + $0x40] sm:$0xff] %v716_v61  ;;  %v600_v0 = vadd.f32 %v1326_v44, %v599_v63 }
  0xf1   : > { %v561_v1 = vpop.f32.mrf.mxu0 }
  0xf2   : > { %v562_v2 = vadd.f32 %v1326_v44, %v561_v1  ;;  %v689_v4 = vadd.f32 %v688_v48, %v600_v0  ;;  %v700_v52 = vpop.f32.mrf.mxu3 }
  0xf4   : > { %v651_v5 = vadd.f32 %v650_v34, %v562_v2  ;;  %v732_v6 = vmax.f32 %v689_v4, 0.0 }
  0xf6   : > { %v717_v7 = vmax.f32 %v651_v5, 0.0  ;;  %764 = vst [vmem:[%s1334_s19 + $0xc0] sm:$0xff] %v732_v6 }
  0xf7   : > { %v601_v8 = vpop.f32.mrf.mxu2  ;;  %v660_v13 = vpop.f32.mrf.mxu1 }
  0xf8   : > { %749 = vst [vmem:[%s1334_s19 + $0x48] sm:$0xff] %v717_v7  ;;  %v602_v10 = vadd.f32 %v1326_v44, %v601_v8 }
  0xf9   : > { %v564_v11 = vpop.f32.mrf.mxu0 }
  0xfa   : > { %v565_v12 = vadd.f32 %v1326_v44, %v564_v11  ;;  %v691_v14 = vadd.f32 %v690_v62, %v602_v10  ;;  %v703_v1 = vpop.f32.mrf.mxu3 }
  0xfc   : > { %v654_v15 = vadd.f32 %v653_v45, %v565_v12  ;;  %v733_v16 = vmax.f32 %v691_v14, 0.0 }
  0xfe   : > { %v718_v17 = vmax.f32 %v654_v15, 0.0  ;;  %765 = vst [vmem:[%s1334_s19 + $0xc8] sm:$0xff] %v733_v16 }
  0xff   : > { %v604_v18 = vpop.f32.mrf.mxu2  ;;  %v663_v22 = vpop.f32.mrf.mxu1 }
 0x100   : > { %750 = vst [vmem:[%s1334_s19 + $0x50] sm:$0xff] %v718_v17  ;;  %v605_v19 = vadd.f32 %v1326_v44, %v604_v18 }
 0x101   : > { %v566_v20 = vpop.f32.mrf.mxu0 }
 0x102   : > { %v567_v21 = vadd.f32 %v1326_v44, %v566_v20  ;;  %v694_v24 = vadd.f32 %v693_v9, %v605_v19  ;;  %v705_v11 = vpop.f32.mrf.mxu3 }
 0x104   : > { %v656_v25 = vadd.f32 %v655_v56, %v567_v21  ;;  %v734_v26 = vmax.f32 %v694_v24, 0.0 }
 0x106   : > { %v719_v27 = vmax.f32 %v656_v25, 0.0  ;;  %766 = vst [vmem:[%s1334_s19 + $0xd0] sm:$0xff] %v734_v26 }
 0x107   : > { %v606_v28 = vpop.f32.mrf.mxu2  ;;  %v665_v32 = vpop.f32.mrf.mxu1 }
 0x108   : > { %751 = vst [vmem:[%s1334_s19 + $0x58] sm:$0xff] %v719_v27  ;;  %v607_v29 = vadd.f32 %v1326_v44, %v606_v28 }
 0x109   : > { %v569_v30 = vpop.f32.mrf.mxu0 }
 0x10a   : > { %v570_v31 = vadd.f32 %v1326_v44, %v569_v30  ;;  %v696_v33 = vadd.f32 %v695_v23, %v607_v29 }
 0x10c   : > { %v659_v34 = vadd.f32 %v658_v3, %v570_v31  ;;  %v735_v36 = vmax.f32 %v696_v33, 0.0 }
 0x10e   : > { %v720_v37 = vmax.f32 %v659_v34, 0.0  ;;  %767 = vst [vmem:[%s1334_s19 + $0xd8] sm:$0xff] %v735_v36 }
 0x10f   : > { %v609_v38 = vpop.f32.mrf.mxu2  ;;  %v668_v43 = vpop.f32.mrf.mxu1 }
 0x110   : > { %752 = vst [vmem:[%s1334_s19 + $0x60] sm:$0xff] %v720_v37  ;;  %v610_v40 = vadd.f32 %v1326_v44, %v609_v38  ;;  %v669_v46 = vadd.f32 %v668_v43, %v580_v39 }
 0x111   : > { %v571_v41 = vpop.f32.mrf.mxu0 }
 0x112   : > { %v572_v42 = vadd.f32 %v1326_v44, %v571_v41  ;;  %v699_v45 = vadd.f32 %v698_v35, %v610_v40  ;;  %v724_v49 = vmax.f32 %v669_v46, 0.0 }
 0x114   : > { %v661_v47 = vadd.f32 %v660_v13, %v572_v42  ;;  %v736_v48 = vmax.f32 %v699_v45, 0.0  ;;  %756 = vst [vmem:[%s1334_s19 + $0x80] sm:$0xff] %v724_v49 }
 0x116   : > { %v721_v50 = vmax.f32 %v661_v47, 0.0  ;;  %768 = vst [vmem:[%s1334_s19 + $0xe0] sm:$0xff] %v736_v48 }
 0x117   : > { %v611_v53 = vpop.f32.mrf.mxu2  ;;  %v670_v57 = vpop.f32.mrf.mxu1 }
 0x118   : > { %753 = vst [vmem:[%s1334_s19 + $0x68] sm:$0xff] %v721_v50  ;;  %v612_v54 = vadd.f32 %v1326_v44, %v611_v53  ;;  %v671_v60 = vadd.f32 %v670_v57, %v582_v51 }
 0x119   : > { %v574_v55 = vpop.f32.mrf.mxu0 }
 0x11a   : > { %v575_v56 = vadd.f32 %v1326_v44, %v574_v55  ;;  %v701_v59 = vadd.f32 %v700_v52, %v612_v54  ;;  %v725_v63 = vmax.f32 %v671_v60, 0.0 }
 0x11c   : > { %v664_v61 = vadd.f32 %v663_v22, %v575_v56  ;;  %v737_v62 = vmax.f32 %v701_v59, 0.0  ;;  %757 = vst [vmem:[%s1334_s19 + $0x88] sm:$0xff] %v725_v63 }
 0x11e   : > { %v722_v0 = vmax.f32 %v664_v61, 0.0  ;;  %769 = vst [vmem:[%s1334_s19 + $0xe8] sm:$0xff] %v737_v62 }
 0x11f   : > { %v614_v58 = vpop.f32.mrf.mxu2 }
 0x120   : > { %754 = vst [vmem:[%s1334_s19 + $0x70] sm:$0xff] %v722_v0  ;;  %v615_v2 = vadd.f32 %v1326_v44, %v614_v58 }
 0x121   : > { %v576_v3 = vpop.f32.mrf.mxu0 }
 0x122   : > { %v577_v4 = vadd.f32 %v1326_v44, %v576_v3  ;;  %v704_v5 = vadd.f32 %v703_v1, %v615_v2 }
 0x124   : > { %v666_v6 = vadd.f32 %v665_v32, %v577_v4  ;;  %v738_v7 = vmax.f32 %v704_v5, 0.0 }
 0x126   : > { %v723_v8 = vmax.f32 %v666_v6, 0.0  ;;  %770 = vst [vmem:[%s1334_s19 + $0xf0] sm:$0xff] %v738_v7 }
 0x127   : > { %v616_v9 = vpop.f32.mrf.mxu2 }
 0x128   : > { %755 = vst [vmem:[%s1334_s19 + $0x78] sm:$0xff] %v723_v8  ;;  %v617_v10 = vadd.f32 %v1326_v44, %v616_v9 }
 0x12a   : > { %v706_v12 = vadd.f32 %v705_v11, %v617_v10 }
 0x12c   : > { %v739_v13 = vmax.f32 %v706_v12, 0.0 }
 0x12e   : > { %771 = vst [vmem:[%s1334_s19 + $0xf8] sm:$0xff] %v739_v13 }
 0x12f PF: > { %s13_s14 = sadd.s32 1, %s1166_s14   ;;  %s1418_s12 = smov %s1162_s13 }
 0x130   : > { %p10_p5 = scmp.ge.s32.totalorder %s13_s14, 4   ;;  %s1419_s13 = smov %s1421_s15 }
 0x132   :  { %12 = sbr.rel (!%p10_p5) target bundleno = 2 (0x2), region = 68 }

// kernel: ssd_forward.10
= control target key start
LH: loop header
LB: loop body
LE: loop exit
PB: predicated region body
PF: predicated region fallthrough
CT: control target
= control target key end

     0   :  { %s924_s12 = smov 0   ;;  %s926_s13 = smov 0   ;;  %s1062_s0 = inlined_call_operand.vmem [shape: bf16[128,288], index: 0, kind: input, shape index: {}]   ;;  %s1063_s1 = inlined_call_operand.vmem [shape: bf16[288,128], index: 1, kind: input, shape index: {}]   ;;  %s1064_s2 = inlined_call_operand.vmem [shape: f32[1,128], index: 2, kind: input, shape index: {}]   ;;  %s1065_s3 = inlined_call_operand.vmem [shape: f32[128,128], index: 3, kind: output, shape index: {}]  }
   0x1   :  { %s928_s14 = smov 0  }
   0x2 LB: > { %s25_s15 = sadd.s32 1, %s898_s13  ;;  %p677_p0 = scmp.ge.s32.totalorder %s902_s14, 1  ;;  %s902_s14 = sphi %s928_s14, %s13_s14   ;;  %s898_s13 = sphi %s926_s13, %s1067_s13   ;;  %s894_s12 = sphi %s924_s12, %s1066_s12  }
   0x3   : > { %p27_p1 = scmp.ge.s32.totalorder %s25_s15, 2  ;;  %p170_p2 = scmp.lt.s32.totalorder %s902_s14, 3 }
   0x5   : > { %s1069_s15 = smov (%p27_p1, %s25_s15), 0  ;;  %p171_p3 = pnand %p677_p0, %p170_p2 }
   0x6   : > { %s678_s20 = sshll.u32 (!%p171_p3), %s894_s12, 3 }
   0x7   : > { %174 = sbr.rel (%p171_p3) target bundleno = 225 (0xe1), region = 32  ;;  %p206_p4 = scmp.lt.s32.totalorder (!%p171_p3), %s678_s20, 15 }
   0xc   : > { %v827_v0 = vld [vmem:[%s1063_s1 + $0x38] sm:$0xff]  ;;  %v837_v2 = vld [vmem:[%s1063_s1 + $0x88] sm:$0xff]  ;;  %v826_v3 = vld [vmem:[%s1063_s1 + $0x30] sm:$0xff]  ;;  %s1071_s20 = smov (!%p206_p4, %s678_s20), 15  ;;  %vm453_vm0 = vcmask 261120  }
   0xd   : > { %v948_v1 = vld [vmem:[%s1063_s1 + $0x78] sm:$0xff]  ;;  %466 = vmatpush.bf16.msra.mxu0 %v827_v0  ;;  %838 = vmatpush.bf16.msra.mxu3 %v827_v0  ;;  %v834_v4 = vld [vmem:[%s1063_s1 + $0x70] sm:$0xff]  ;;  %v836_v5 = vld [vmem:[%s1063_s1 + $0x80] sm:$0xff]  ;;  %s854_s29 = smul.u32 12, %s1071_s20  ;;  %s681_s10 = sshll.u32 %s1071_s20, 3 }
   0xe   : > { %846 = vmatpush.bf16.msra.mxu1 %v948_v1  ;;  %530 = vmatpush.bf16.msra.mxu2 %v837_v2  ;;  %v825_v6 = vld [vmem:[%s1063_s1 + $0x28] sm:$0xff]  ;;  %v824_v11 = vld [vmem:[%s1063_s1 + $0x20] sm:$0xff]  ;;  %v823_v13 = vld [vmem:[%s1063_s1 + $0x18] sm:$0xff]  ;;  %s1043_s12 = scalar_lea.vmem %s1065_s3, %s681_s10 }
   0xf   : > { %v833_v7 = vld [vmem:[%s1063_s1 + $0x68] sm:$0xff]  ;;  %s975_s9 = scalar_lea.vmem %s1062_s0, %s854_s29  ;;  %v832_v12 = vld [vmem:[%s1063_s1 + $0x60] sm:$0xff]  ;;  %v831_v14 = vld [vmem:[%s1063_s1 + $0x58] sm:$0xff] }
  0x10   : > { %v692_v8 = vld [vmem:[%s975_s9 + $0x8] sm:$0xf]  ;;  %v810_v9 = vld [vmem:[%s975_s9 + $0x10] sm:$0xf0]  ;;  %v704_v17 = vld [vmem:[%s975_s9 + $0x20] sm:$0xf] }
  0x11   : > { %467 = vmatpush.bf16.msra.mxu0 %v826_v3  ;;  %839 = vmatpush.bf16.msra.mxu3 %v826_v3  ;;  %v693_v10 = vor.u32 %v810_v9, %v692_v8  ;;  %v822_v15 = vld [vmem:[%s1063_s1 + $0x10] sm:$0xff]  ;;  %v813_v18 = vld [vmem:[%s975_s9 + $0x28] sm:$0xf0]  ;;  %v820_v22 = vld [vmem:[%s1063_s1] sm:$0xff] }
  0x12   : > { %847 = vmatpush.bf16.msra.mxu1 %v834_v4  ;;  %531 = vmatpush.bf16.msra.mxu2 %v836_v5  ;;  %v830_v16 = vld [vmem:[%s1063_s1 + $0x50] sm:$0xff]  ;;  %v821_v19 = vld [vmem:[%s1063_s1 + $0x8] sm:$0xff]  ;;  %v705_v21 = vor.u32 %v813_v18, %v704_v17  ;;  %v696_v23 = vld [vmem:[%s975_s9 + $0x18] sm:$0xf] }
  0x13   : > { %v829_v20 = vld [vmem:[%s1063_s1 + $0x48] sm:$0xff]  ;;  %v812_v24 = vld [vmem:[%s975_s9 + $0x20] sm:$0xf0]  ;;  %v684_v25 = vld [vmem:[%s975_s9] sm:$0xf] }
  0x14   : > { %v809_v26 = vld [vmem:[%s975_s9 + $0x8] sm:$0xf0]  ;;  %v828_v27 = vld [vmem:[%s1063_s1 + $0x40] sm:$0xff]  ;;  %v811_v28 = vld [vmem:[%s975_s9 + $0x1c] sm:$0xf]  ;;  %v697_v30 = vor.u32 %v812_v24, %v696_v23 }
  0x15   : > { %468 = vmatpush.bf16.msra.mxu0 %v825_v6  ;;  %840 = vmatpush.bf16.msra.mxu3 %v825_v6  ;;  %v698_v29 = vld [vmem:[%s975_s9 + $0x24] sm:$0xf0]  ;;  %v685_v31 = vor.u32 %v809_v26, %v684_v25  ;;  %v716_v33 = vld [vmem:[%s975_s9 + $0x38] sm:$0xf]  ;;  %v816_v34 = vld [vmem:[%s975_s9 + $0x40] sm:$0xf0] }
  0x16   : > { %848 = vmatpush.bf16.msra.mxu1 %v833_v7  ;;  %802 = vmatmul.msk.bf16.vlgmr.msra.gmra.mxu2 %vm453_vm0, %v693_v10  ;;  %v701_v32 = vor.u32 %v811_v28, %v698_v29  ;;  %v717_v35 = vor.u32 %v816_v34, %v716_v33  ;;  %v708_v36 = vld [vmem:[%s975_s9 + $0x30] sm:$0xf]  ;;  %v815_v37 = vld [vmem:[%s975_s9 + $0x38] sm:$0xf0]  ;;  %v814_v38 = vld [vmem:[%s975_s9 + $0x34] sm:$0xf] }
  0x17   : > { %v710_v39 = vld [vmem:[%s975_s9 + $0x3c] sm:$0xf0]  ;;  %v709_v40 = vor.u32 %v815_v37, %v708_v36  ;;  %v728_v42 = vld [vmem:[%s975_s9 + $0x50] sm:$0xf]  ;;  %v819_v43 = vld [vmem:[%s975_s9 + $0x58] sm:$0xf0] }
  0x18   : > { %v713_v41 = vor.u32 %v814_v38, %v710_v39  ;;  %v729_v44 = vor.u32 %v819_v43, %v728_v42  ;;  %v808_v45 = vld [vmem:[%s975_s9 + $0x4] sm:$0xf]  ;;  %v686_v46 = vld [vmem:[%s975_s9 + $0xc] sm:$0xf0]  ;;  %v720_v48 = vld [vmem:[%s975_s9 + $0x48] sm:$0xf] }
  0x19   : > { %469 = vmatpush.bf16.msra.mxu0 %v824_v11  ;;  %841 = vmatpush.bf16.msra.mxu3 %v824_v11  ;;  %v689_v47 = vor.u32 %v808_v45, %v686_v46  ;;  %v818_v49 = vld [vmem:[%s975_s9 + $0x50] sm:$0xf0]  ;;  %v817_v50 = vld [vmem:[%s975_s9 + $0x4c] sm:$0xf]  ;;  %v722_v51 = vld [vmem:[%s975_s9 + $0x54] sm:$0xf0] }
  0x1a   : > { %849 = vmatpush.bf16.msra.mxu1 %v832_v12  ;;  %v721_v52 = vor.u32 %v818_v49, %v720_v48  ;;  %v725_v53 = vor.u32 %v817_v50, %v722_v51  ;;  %v879_v58 = vld [vmem:[%s1064_s2] ss:$0 sm:$0xff] }
  0x1d   : > { %470 = vmatpush.bf16.msra.mxu0 %v823_v13  ;;  %842 = vmatpush.bf16.msra.mxu3 %v823_v13 }
  0x1e   : > { %850 = vmatpush.bf16.msra.mxu1 %v831_v14 }
  0x21   : > { %471 = vmatpush.bf16.msra.mxu0 %v822_v15  ;;  %843 = vmatpush.bf16.msra.mxu3 %v822_v15 }
  0x22   : > { %851 = vmatpush.bf16.msra.mxu1 %v830_v16 }
  0x25   : > { %472 = vmatpush.bf16.msra.mxu0 %v821_v19  ;;  %844 = vmatpush.bf16.msra.mxu3 %v821_v19 }
  0x26   : > { %852 = vmatpush.bf16.msra.mxu1 %v829_v20  ;;  %803 = vmatmul.msk.bf16.gmra.mxu2 %vm453_vm0, %v705_v21 }
  0x29   : > { %473 = vmatpush.bf16.msra.mxu0 %v820_v22  ;;  %845 = vmatpush.bf16.msra.mxu3 %v820_v22 }
  0x2a   : > { %853 = vmatpush.bf16.msra.mxu1 %v828_v27 }
  0x2c   : > { %479 = vmatmul.bf16.vlgmr.msra.gmra.mxu3 %v697_v30  ;;  %474 = vmatmul.bf16.vlgmr.msra.gmra.mxu0 %v685_v31 }
  0x2d   : > { %495 = vmatpush.bf16.msrb.mxu0 %v948_v1  ;;  %508 = vmatmul.bf16.vlgmr.msra.gmra.mxu1 %v701_v32 }
  0x31   : > { %496 = vmatpush.bf16.msrb.mxu0 %v834_v4 }
  0x35   : > { %497 = vmatpush.bf16.msrb.mxu0 %v833_v7 }
  0x36   : > { %804 = vmatmul.msk.bf16.gmra.mxu2 %vm453_vm0, %v717_v35 }
  0x39   : > { %498 = vmatpush.bf16.msrb.mxu0 %v832_v12 }
  0x3c   : > { %484 = vmatmul.bf16.gmra.mxu3 %v709_v40 }
  0x3d   : > { %499 = vmatpush.bf16.msrb.mxu0 %v831_v14  ;;  %513 = vmatmul.bf16.gmra.mxu1 %v713_v41 }
  0x41   : > { %500 = vmatpush.bf16.msrb.mxu0 %v830_v16 }
  0x45   : > { %501 = vmatpush.bf16.msrb.mxu0 %v829_v20 }
  0x46   : > { %805 = vmatmul.msk.bf16.gmra.mxu2 %vm453_vm0, %v729_v44 }
  0x49   : > { %502 = vmatpush.bf16.msrb.mxu0 %v828_v27 }
  0x4c   : > { %503 = vmatmul.bf16.vlgmr.msrb.gmra.mxu0 %v689_v47  ;;  %489 = vmatmul.bf16.gmra.mxu3 %v721_v52 }
  0x4d   : > { %518 = vmatmul.bf16.gmra.mxu1 %v725_v53 }
  0x99   : > { %v533_v54 = vpop.f32.mrf.mxu2 }
  0xa1   : > { %v535_v55 = vpop.f32.mrf.mxu2 }
  0xa9   : > { %v538_v56 = vpop.f32.mrf.mxu2  ;;  %v475_v63 = vpop.f32.mrf.mxu0 }
  0xaa   : > { %v509_v57 = vpop.f32.mrf.mxu1  ;;  %v476_v15 = vadd.f32 %v879_v58, %v475_v63 }
  0xaf   : > { %v480_v59 = vpop.f32.mrf.mxu3 }
  0xb0   : > { %v481_v60 = vadd.f32 %v879_v58, %v480_v59 }
  0xb1   : > { %v540_v0 = vpop.f32.mrf.mxu2  ;;  %v477_v8 = vpop.f32.mrf.mxu0 }
  0xb2   : > { %v510_v61 = vadd.f32 %v509_v57, %v481_v60  ;;  %v511_v62 = vpop.f32.mrf.mxu1  ;;  %v478_v27 = vadd.f32 %v879_v58, %v477_v8 }
  0xb4   : > { %v539_v1 = vadd.f32 %v538_v56, %v510_v61 }
  0xb6   : > { %v555_v2 = vmax.f32 %v539_v1, 0.0 }
  0xb7   : > { %v482_v3 = vpop.f32.mrf.mxu3 }
  0xb8   : > { %563 = vst [vmem:[%s1043_s12 + $0x10] sm:$0xff] %v555_v2  ;;  %v483_v4 = vadd.f32 %v879_v58, %v482_v3 }
  0xb9   : > { %v543_v9 = vpop.f32.mrf.mxu2 }
  0xba   : > { %v512_v5 = vadd.f32 %v511_v62, %v483_v4  ;;  %v514_v6 = vpop.f32.mrf.mxu1 }
  0xbc   : > { %v541_v7 = vadd.f32 %v540_v0, %v512_v5 }
  0xbe   : > { %v556_v10 = vmax.f32 %v541_v7, 0.0 }
  0xbf   : > { %v485_v11 = vpop.f32.mrf.mxu3 }
  0xc0   : > { %564 = vst [vmem:[%s1043_s12 + $0x18] sm:$0xff] %v556_v10  ;;  %v486_v12 = vadd.f32 %v879_v58, %v485_v11 }
  0xc1   : > { %v545_v19 = vpop.f32.mrf.mxu2 }
  0xc2   : > { %v515_v13 = vadd.f32 %v514_v6, %v486_v12  ;;  %v516_v16 = vpop.f32.mrf.mxu1 }
  0xc4   : > { %v544_v14 = vadd.f32 %v543_v9, %v515_v13 }
  0xc6   : > { %v557_v17 = vmax.f32 %v544_v14, 0.0 }
  0xc7   : > { %v487_v21 = vpop.f32.mrf.mxu3 }
  0xc8   : > { %565 = vst [vmem:[%s1043_s12 + $0x20] sm:$0xff] %v557_v17  ;;  %v488_v22 = vadd.f32 %v879_v58, %v487_v21 }
  0xc9   : > { %v504_v18 = vpop.f32.mrf.mxu0  ;;  %v548_v34 = vpop.f32.mrf.mxu2 }
  0xca   : > { %v505_v20 = vadd.f32 %v504_v18, %v476_v15  ;;  %v517_v24 = vadd.f32 %v516_v16, %v488_v22  ;;  %v519_v30 = vpop.f32.mrf.mxu1 }
  0xcc   : > { %v534_v23 = vadd.f32 %v533_v54, %v505_v20  ;;  %v546_v26 = vadd.f32 %v545_v19, %v517_v24 }
  0xce   : > { %v553_v25 = vmax.f32 %v534_v23, 0.0  ;;  %v558_v28 = vmax.f32 %v546_v26, 0.0 }
  0xcf   : > { %v490_v32 = vpop.f32.mrf.mxu3 }
  0xd0   : > { %561 = vst [vmem:[%s1043_s12] sm:$0xff] %v553_v25  ;;  %v491_v33 = vadd.f32 %v879_v58, %v490_v32 }
  0xd1   : > { %v506_v29 = vpop.f32.mrf.mxu0  ;;  %566 = vst [vmem:[%s1043_s12 + $0x28] sm:$0xff] %v558_v28  ;;  %v550_v44 = vpop.f32.mrf.mxu2 }
  0xd2   : > { %v507_v31 = vadd.f32 %v506_v29, %v478_v27  ;;  %v520_v36 = vadd.f32 %v519_v30, %v491_v33  ;;  %v521_v42 = vpop.f32.mrf.mxu1 }
  0xd4   : > { %v536_v35 = vadd.f32 %v535_v55, %v507_v31  ;;  %v549_v38 = vadd.f32 %v548_v34, %v520_v36 }
  0xd6   : > { %v554_v37 = vmax.f32 %v536_v35, 0.0  ;;  %v559_v39 = vmax.f32 %v549_v38, 0.0 }
  0xd7   : > { %v492_v40 = vpop.f32.mrf.mxu3 }
  0xd8   : > { %562 = vst [vmem:[%s1043_s12 + $0x8] sm:$0xff] %v554_v37  ;;  %v493_v41 = vadd.f32 %v879_v58, %v492_v40 }
  0xd9   : > { %567 = vst [vmem:[%s1043_s12 + $0x30] sm:$0xff] %v559_v39 }
  0xda   : > { %v522_v43 = vadd.f32 %v521_v42, %v493_v41 }
  0xdc   : > { %v551_v45 = vadd.f32 %v550_v44, %v522_v43 }
  0xde   : > { %v560_v46 = vmax.f32 %v551_v45, 0.0 }
  0xe0   : > { %568 = vst [vmem:[%s1043_s12 + $0x38] sm:$0xff] %v560_v46 }
  0xe1 PF: > { %s13_s14 = sadd.s32 1, %s902_s14   ;;  %s1066_s12 = smov %s898_s13 }
  0xe2   : > { %p10_p5 = scmp.ge.s32.totalorder %s13_s14, 4   ;;  %s1067_s13 = smov %s1069_s15 }
  0xe4   :  { %12 = sbr.rel (!%p10_p5) target bundleno = 2 (0x2), region = 68 }

// kernel: ssd_forward.13
= control target key start
LH: loop header
LB: loop body
LE: loop exit
PB: predicated region body
PF: predicated region fallthrough
CT: control target
= control target key end

     0   :  { %s735_s12 = smov 0   ;;  %s737_s13 = smov 0   ;;  %s829_s0 = inlined_call_operand.vmem [shape: bf16[32,288], index: 0, kind: input, shape index: {}]   ;;  %s830_s1 = inlined_call_operand.vmem [shape: bf16[288,128], index: 1, kind: input, shape index: {}]   ;;  %s831_s2 = inlined_call_operand.vmem [shape: f32[1,128], index: 2, kind: input, shape index: {}]   ;;  %s832_s3 = inlined_call_operand.vmem [shape: f32[32,128], index: 3, kind: output, shape index: {}]  }
   0x1   :  { %s739_s14 = smov 0  }
   0x2 LB: > { %s25_s15 = sadd.s32 1, %s709_s13  ;;  %p552_p0 = scmp.ge.s32.totalorder %s713_s14, 1  ;;  %s713_s14 = sphi %s739_s14, %s13_s14   ;;  %s709_s13 = sphi %s737_s13, %s834_s13   ;;  %s705_s12 = sphi %s735_s12, %s833_s12  }
   0x3   : > { %p27_p1 = scmp.ge.s32.totalorder %s25_s15, 2  ;;  %p170_p2 = scmp.lt.s32.totalorder %s713_s14, 3 }
   0x5   : > { %s836_s15 = smov (%p27_p1, %s25_s15), 0  ;;  %p171_p3 = pnand %p552_p0, %p170_p2 }
   0x6   : > { %s553_s20 = sshll.u32 (!%p171_p3), %s705_s12, 1 }
   0x7   : > { %174 = sbr.rel (%p171_p3) target bundleno = 185 (0xb9), region = 32  ;;  %p206_p4 = scmp.lt.s32.totalorder (!%p171_p3), %s553_s20, 3 }
   0xc   : > { %v654_v0 = vld [vmem:[%s830_s1 + $0x38] sm:$0xff]  ;;  %v653_v2 = vld [vmem:[%s830_s1 + $0x30] sm:$0xff]  ;;  %v664_v4 = vld [vmem:[%s830_s1 + $0x88] sm:$0xff]  ;;  %s838_s20 = smov (!%p206_p4, %s553_s20), 3  ;;  %vm396_vm0 = vcmask 261120  }
   0xd   : > { %v662_v1 = vld [vmem:[%s830_s1 + $0x78] sm:$0xff]  ;;  %400 = vmatpush.bf16.msra.mxu0 %v654_v0  ;;  %v661_v3 = vld [vmem:[%s830_s1 + $0x70] sm:$0xff]  ;;  %434 = vmatpush.bf16.msra.mxu2 %v664_v4  ;;  %v663_v5 = vld [vmem:[%s830_s1 + $0x80] sm:$0xff]  ;;  %s665_s29 = smul.u32 12, %s838_s20  ;;  %s556_s10 = sshll.u32 %s838_s20, 3 }
   0xe   : > { %414 = vmatpush.bf16.msra.mxu1 %v662_v1  ;;  %v652_v6 = vld [vmem:[%s830_s1 + $0x28] sm:$0xff]  ;;  %v651_v11 = vld [vmem:[%s830_s1 + $0x20] sm:$0xff]  ;;  %v650_v13 = vld [vmem:[%s830_s1 + $0x18] sm:$0xff] }
   0xf   : > { %v660_v7 = vld [vmem:[%s830_s1 + $0x68] sm:$0xff]  ;;  %s210_s9 = scalar_lea.vmem %s829_s0, %s665_s29  ;;  %v659_v12 = vld [vmem:[%s830_s1 + $0x60] sm:$0xff]  ;;  %v658_v14 = vld [vmem:[%s830_s1 + $0x58] sm:$0xff] }
  0x10   : > { %v567_v8 = vld [vmem:[%s210_s9 + $0x8] sm:$0xf]  ;;  %v646_v9 = vld [vmem:[%s210_s9 + $0x10] sm:$0xf0]  ;;  %v647_v19 = vld [vmem:[%s830_s1] sm:$0xff] }
  0x11   : > { %401 = vmatpush.bf16.msra.mxu0 %v653_v2  ;;  %435 = vmatpush.bf16.msra.mxu2 %v663_v5  ;;  %v568_v10 = vor.u32 %v646_v9, %v567_v8  ;;  %v649_v15 = vld [vmem:[%s830_s1 + $0x10] sm:$0xff]  ;;  %v648_v17 = vld [vmem:[%s830_s1 + $0x8] sm:$0xff]  ;;  %v655_v20 = vld [vmem:[%s830_s1 + $0x40] sm:$0xff] }
  0x12   : > { %415 = vmatpush.bf16.msra.mxu1 %v661_v3  ;;  %v657_v16 = vld [vmem:[%s830_s1 + $0x50] sm:$0xff]  ;;  %v656_v18 = vld [vmem:[%s830_s1 + $0x48] sm:$0xff]  ;;  %v559_v21 = vld [vmem:[%s210_s9] sm:$0xf] }
  0x13   : > { %v645_v22 = vld [vmem:[%s210_s9 + $0x8] sm:$0xf0]  ;;  %v644_v23 = vld [vmem:[%s210_s9 + $0x4] sm:$0xf]  ;;  %v561_v24 = vld [vmem:[%s210_s9 + $0xc] sm:$0xf0]  ;;  %s226_s9 = scalar_lea.vmem %s832_s3, %s556_s10 }
  0x14   : > { %641 = vmatmul.msk.bf16.vlgmr.msra.gmra.mxu2 %vm396_vm0, %v568_v10  ;;  %v560_v25 = vor.u32 %v645_v22, %v559_v21  ;;  %v564_v26 = vor.u32 %v644_v23, %v561_v24  ;;  %v690_v27 = vld [vmem:[%s831_s2] ss:$0 sm:$0xff] }
  0x15   : > { %402 = vmatpush.bf16.msra.mxu0 %v652_v6 }
  0x16   : > { %416 = vmatpush.bf16.msra.mxu1 %v660_v7 }
  0x19   : > { %403 = vmatpush.bf16.msra.mxu0 %v651_v11 }
  0x1a   : > { %417 = vmatpush.bf16.msra.mxu1 %v659_v12 }
  0x1d   : > { %404 = vmatpush.bf16.msra.mxu0 %v650_v13 }
  0x1e   : > { %418 = vmatpush.bf16.msra.mxu1 %v658_v14 }
  0x21   : > { %405 = vmatpush.bf16.msra.mxu0 %v649_v15 }
  0x22   : > { %419 = vmatpush.bf16.msra.mxu1 %v657_v16 }
  0x25   : > { %406 = vmatpush.bf16.msra.mxu0 %v648_v17 }
  0x26   : > { %420 = vmatpush.bf16.msra.mxu1 %v656_v18 }
  0x29   : > { %407 = vmatpush.bf16.msra.mxu0 %v647_v19 }
  0x2a   : > { %421 = vmatpush.bf16.msra.mxu1 %v655_v20 }
  0x2c   : > { %408 = vmatmul.bf16.vlgmr.msra.gmra.mxu0 %v560_v25 }
  0x2d   : > { %422 = vmatmul.bf16.vlgmr.msra.gmra.mxu1 %v564_v26 }
  0x97   : > { %v437_v31 = vpop.f32.mrf.mxu2 }
  0x9f   : > { %v439_v38 = vpop.f32.mrf.mxu2 }
  0xa9   : > { %v409_v28 = vpop.f32.mrf.mxu0 }
  0xaa   : > { %v423_v29 = vpop.f32.mrf.mxu1  ;;  %v410_v30 = vadd.f32 %v690_v27, %v409_v28 }
  0xac   : > { %v424_v32 = vadd.f32 %v423_v29, %v410_v30 }
  0xae   : > { %v438_v33 = vadd.f32 %v437_v31, %v424_v32 }
  0xb0   : > { %442 = vst [vmem:[%s226_s9] sm:$0xff] %v438_v33 }
  0xb1   : > { %v411_v34 = vpop.f32.mrf.mxu0 }
  0xb2   : > { %v412_v35 = vadd.f32 %v690_v27, %v411_v34  ;;  %v425_v36 = vpop.f32.mrf.mxu1 }
  0xb4   : > { %v426_v37 = vadd.f32 %v425_v36, %v412_v35 }
  0xb6   : > { %v440_v39 = vadd.f32 %v439_v38, %v426_v37 }
  0xb8   : > { %443 = vst [vmem:[%s226_s9 + $0x8] sm:$0xff] %v440_v39 }
  0xb9 PF: > { %s13_s14 = sadd.s32 1, %s713_s14   ;;  %s833_s12 = smov %s709_s13 }
  0xba   : > { %p10_p5 = scmp.ge.s32.totalorder %s13_s14, 4   ;;  %s834_s13 = smov %s836_s15 }
  0xbc   :  { %12 = sbr.rel (!%p10_p5) target bundleno = 2 (0x2), region = 68 }

// kernel: ssd_forward.12
= control target key start
LH: loop header
LB: loop body
LE: loop exit
PB: predicated region body
PF: predicated region fallthrough
CT: control target
= control target key end

     0   :  { %s916_s12 = smov 0   ;;  %s918_s13 = smov 0   ;;  %s1054_s0 = inlined_call_operand.vmem [shape: bf16[128,288], index: 0, kind: input, shape index: {}]   ;;  %s1055_s1 = inlined_call_operand.vmem [shape: bf16[288,128], index: 1, kind: input, shape index: {}]   ;;  %s1056_s2 = inlined_call_operand.vmem [shape: f32[1,128], index: 2, kind: input, shape index: {}]   ;;  %s1057_s3 = inlined_call_operand.vmem [shape: f32[128,128], index: 3, kind: output, shape index: {}]  }
   0x1   :  { %s920_s14 = smov 0  }
   0x2 LB: > { %s25_s15 = sadd.s32 1, %s890_s13  ;;  %p669_p0 = scmp.ge.s32.totalorder %s894_s14, 1  ;;  %s894_s14 = sphi %s920_s14, %s13_s14   ;;  %s890_s13 = sphi %s918_s13, %s1059_s13   ;;  %s886_s12 = sphi %s916_s12, %s1058_s12  }
   0x3   : > { %p27_p1 = scmp.ge.s32.totalorder %s25_s15, 2  ;;  %p170_p2 = scmp.lt.s32.totalorder %s894_s14, 3 }
   0x5   : > { %s1061_s15 = smov (%p27_p1, %s25_s15), 0  ;;  %p171_p3 = pnand %p669_p0, %p170_p2 }
   0x6   : > { %s670_s20 = sshll.u32 (!%p171_p3), %s886_s12, 3 }
   0x7   : > { %174 = sbr.rel (%p171_p3) target bundleno = 223 (0xdf), region = 32  ;;  %p206_p4 = scmp.lt.s32.totalorder (!%p171_p3), %s670_s20, 15 }
   0xc   : > { %v819_v0 = vld [vmem:[%s1055_s1 + $0x38] sm:$0xff]  ;;  %v829_v2 = vld [vmem:[%s1055_s1 + $0x88] sm:$0xff]  ;;  %v818_v3 = vld [vmem:[%s1055_s1 + $0x30] sm:$0xff]  ;;  %s1063_s20 = smov (!%p206_p4, %s670_s20), 15  ;;  %vm453_vm0 = vcmask 261120  }
   0xd   : > { %v940_v1 = vld [vmem:[%s1055_s1 + $0x78] sm:$0xff]  ;;  %466 = vmatpush.bf16.msra.mxu0 %v819_v0  ;;  %830 = vmatpush.bf16.msra.mxu3 %v819_v0  ;;  %v826_v4 = vld [vmem:[%s1055_s1 + $0x70] sm:$0xff]  ;;  %v828_v5 = vld [vmem:[%s1055_s1 + $0x80] sm:$0xff]  ;;  %s846_s29 = smul.u32 12, %s1063_s20  ;;  %s673_s10 = sshll.u32 %s1063_s20, 3 }
   0xe   : > { %838 = vmatpush.bf16.msra.mxu1 %v940_v1  ;;  %530 = vmatpush.bf16.msra.mxu2 %v829_v2  ;;  %v817_v6 = vld [vmem:[%s1055_s1 + $0x28] sm:$0xff]  ;;  %v816_v11 = vld [vmem:[%s1055_s1 + $0x20] sm:$0xff]  ;;  %v815_v13 = vld [vmem:[%s1055_s1 + $0x18] sm:$0xff]  ;;  %s1035_s12 = scalar_lea.vmem %s1057_s3, %s673_s10 }
   0xf   : > { %v825_v7 = vld [vmem:[%s1055_s1 + $0x68] sm:$0xff]  ;;  %s967_s9 = scalar_lea.vmem %s1054_s0, %s846_s29  ;;  %v824_v12 = vld [vmem:[%s1055_s1 + $0x60] sm:$0xff]  ;;  %v823_v14 = vld [vmem:[%s1055_s1 + $0x58] sm:$0xff] }
  0x10   : > { %v684_v8 = vld [vmem:[%s967_s9 + $0x8] sm:$0xf]  ;;  %v802_v9 = vld [vmem:[%s967_s9 + $0x10] sm:$0xf0]  ;;  %v696_v17 = vld [vmem:[%s967_s9 + $0x20] sm:$0xf] }
  0x11   : > { %467 = vmatpush.bf16.msra.mxu0 %v818_v3  ;;  %831 = vmatpush.bf16.msra.mxu3 %v818_v3  ;;  %v685_v10 = vor.u32 %v802_v9, %v684_v8  ;;  %v814_v15 = vld [vmem:[%s1055_s1 + $0x10] sm:$0xff]  ;;  %v805_v18 = vld [vmem:[%s967_s9 + $0x28] sm:$0xf0]  ;;  %v812_v22 = vld [vmem:[%s1055_s1] sm:$0xff] }
  0x12   : > { %839 = vmatpush.bf16.msra.mxu1 %v826_v4  ;;  %531 = vmatpush.bf16.msra.mxu2 %v828_v5  ;;  %v822_v16 = vld [vmem:[%s1055_s1 + $0x50] sm:$0xff]  ;;  %v813_v19 = vld [vmem:[%s1055_s1 + $0x8] sm:$0xff]  ;;  %v697_v21 = vor.u32 %v805_v18, %v696_v17  ;;  %v688_v23 = vld [vmem:[%s967_s9 + $0x18] sm:$0xf] }
  0x13   : > { %v821_v20 = vld [vmem:[%s1055_s1 + $0x48] sm:$0xff]  ;;  %v804_v24 = vld [vmem:[%s967_s9 + $0x20] sm:$0xf0]  ;;  %v676_v25 = vld [vmem:[%s967_s9] sm:$0xf] }
  0x14   : > { %v801_v26 = vld [vmem:[%s967_s9 + $0x8] sm:$0xf0]  ;;  %v820_v27 = vld [vmem:[%s1055_s1 + $0x40] sm:$0xff]  ;;  %v803_v28 = vld [vmem:[%s967_s9 + $0x1c] sm:$0xf]  ;;  %v689_v30 = vor.u32 %v804_v24, %v688_v23 }
  0x15   : > { %468 = vmatpush.bf16.msra.mxu0 %v817_v6  ;;  %832 = vmatpush.bf16.msra.mxu3 %v817_v6  ;;  %v690_v29 = vld [vmem:[%s967_s9 + $0x24] sm:$0xf0]  ;;  %v677_v31 = vor.u32 %v801_v26, %v676_v25  ;;  %v708_v33 = vld [vmem:[%s967_s9 + $0x38] sm:$0xf]  ;;  %v808_v34 = vld [vmem:[%s967_s9 + $0x40] sm:$0xf0] }
  0x16   : > { %840 = vmatpush.bf16.msra.mxu1 %v825_v7  ;;  %794 = vmatmul.msk.bf16.vlgmr.msra.gmra.mxu2 %vm453_vm0, %v685_v10  ;;  %v693_v32 = vor.u32 %v803_v28, %v690_v29  ;;  %v709_v35 = vor.u32 %v808_v34, %v708_v33  ;;  %v700_v36 = vld [vmem:[%s967_s9 + $0x30] sm:$0xf]  ;;  %v807_v37 = vld [vmem:[%s967_s9 + $0x38] sm:$0xf0]  ;;  %v806_v38 = vld [vmem:[%s967_s9 + $0x34] sm:$0xf] }
  0x17   : > { %v702_v39 = vld [vmem:[%s967_s9 + $0x3c] sm:$0xf0]  ;;  %v701_v40 = vor.u32 %v807_v37, %v700_v36  ;;  %v720_v42 = vld [vmem:[%s967_s9 + $0x50] sm:$0xf]  ;;  %v811_v43 = vld [vmem:[%s967_s9 + $0x58] sm:$0xf0] }
  0x18   : > { %v705_v41 = vor.u32 %v806_v38, %v702_v39  ;;  %v721_v44 = vor.u32 %v811_v43, %v720_v42  ;;  %v800_v45 = vld [vmem:[%s967_s9 + $0x4] sm:$0xf]  ;;  %v678_v46 = vld [vmem:[%s967_s9 + $0xc] sm:$0xf0]  ;;  %v712_v48 = vld [vmem:[%s967_s9 + $0x48] sm:$0xf] }
  0x19   : > { %469 = vmatpush.bf16.msra.mxu0 %v816_v11  ;;  %833 = vmatpush.bf16.msra.mxu3 %v816_v11  ;;  %v681_v47 = vor.u32 %v800_v45, %v678_v46  ;;  %v810_v49 = vld [vmem:[%s967_s9 + $0x50] sm:$0xf0]  ;;  %v809_v50 = vld [vmem:[%s967_s9 + $0x4c] sm:$0xf]  ;;  %v714_v51 = vld [vmem:[%s967_s9 + $0x54] sm:$0xf0] }
  0x1a   : > { %841 = vmatpush.bf16.msra.mxu1 %v824_v12  ;;  %v713_v52 = vor.u32 %v810_v49, %v712_v48  ;;  %v717_v53 = vor.u32 %v809_v50, %v714_v51  ;;  %v871_v58 = vld [vmem:[%s1056_s2] ss:$0 sm:$0xff] }
  0x1d   : > { %470 = vmatpush.bf16.msra.mxu0 %v815_v13  ;;  %834 = vmatpush.bf16.msra.mxu3 %v815_v13 }
  0x1e   : > { %842 = vmatpush.bf16.msra.mxu1 %v823_v14 }
  0x21   : > { %471 = vmatpush.bf16.msra.mxu0 %v814_v15  ;;  %835 = vmatpush.bf16.msra.mxu3 %v814_v15 }
  0x22   : > { %843 = vmatpush.bf16.msra.mxu1 %v822_v16 }
  0x25   : > { %472 = vmatpush.bf16.msra.mxu0 %v813_v19  ;;  %836 = vmatpush.bf16.msra.mxu3 %v813_v19 }
  0x26   : > { %844 = vmatpush.bf16.msra.mxu1 %v821_v20  ;;  %795 = vmatmul.msk.bf16.gmra.mxu2 %vm453_vm0, %v697_v21 }
  0x29   : > { %473 = vmatpush.bf16.msra.mxu0 %v812_v22  ;;  %837 = vmatpush.bf16.msra.mxu3 %v812_v22 }
  0x2a   : > { %845 = vmatpush.bf16.msra.mxu1 %v820_v27 }
  0x2c   : > { %479 = vmatmul.bf16.vlgmr.msra.gmra.mxu3 %v689_v30  ;;  %474 = vmatmul.bf16.vlgmr.msra.gmra.mxu0 %v677_v31 }
  0x2d   : > { %495 = vmatpush.bf16.msrb.mxu0 %v940_v1  ;;  %508 = vmatmul.bf16.vlgmr.msra.gmra.mxu1 %v693_v32 }
  0x31   : > { %496 = vmatpush.bf16.msrb.mxu0 %v826_v4 }
  0x35   : > { %497 = vmatpush.bf16.msrb.mxu0 %v825_v7 }
  0x36   : > { %796 = vmatmul.msk.bf16.gmra.mxu2 %vm453_vm0, %v709_v35 }
  0x39   : > { %498 = vmatpush.bf16.msrb.mxu0 %v824_v12 }
  0x3c   : > { %484 = vmatmul.bf16.gmra.mxu3 %v701_v40 }
  0x3d   : > { %499 = vmatpush.bf16.msrb.mxu0 %v823_v14  ;;  %513 = vmatmul.bf16.gmra.mxu1 %v705_v41 }
  0x41   : > { %500 = vmatpush.bf16.msrb.mxu0 %v822_v16 }
  0x45   : > { %501 = vmatpush.bf16.msrb.mxu0 %v821_v20 }
  0x46   : > { %797 = vmatmul.msk.bf16.gmra.mxu2 %vm453_vm0, %v721_v44 }
  0x49   : > { %502 = vmatpush.bf16.msrb.mxu0 %v820_v27 }
  0x4c   : > { %503 = vmatmul.bf16.vlgmr.msrb.gmra.mxu0 %v681_v47  ;;  %489 = vmatmul.bf16.gmra.mxu3 %v713_v52 }
  0x4d   : > { %518 = vmatmul.bf16.gmra.mxu1 %v717_v53 }
  0x99   : > { %v533_v54 = vpop.f32.mrf.mxu2 }
  0xa1   : > { %v535_v55 = vpop.f32.mrf.mxu2 }
  0xa9   : > { %v538_v56 = vpop.f32.mrf.mxu2  ;;  %v475_v63 = vpop.f32.mrf.mxu0 }
  0xaa   : > { %v509_v57 = vpop.f32.mrf.mxu1  ;;  %v476_v13 = vadd.f32 %v871_v58, %v475_v63 }
  0xaf   : > { %v480_v59 = vpop.f32.mrf.mxu3 }
  0xb0   : > { %v481_v60 = vadd.f32 %v871_v58, %v480_v59 }
  0xb1   : > { %v540_v0 = vpop.f32.mrf.mxu2  ;;  %v477_v7 = vpop.f32.mrf.mxu0 }
  0xb2   : > { %v510_v61 = vadd.f32 %v509_v57, %v481_v60  ;;  %v511_v62 = vpop.f32.mrf.mxu1  ;;  %v478_v23 = vadd.f32 %v871_v58, %v477_v7 }
  0xb4   : > { %v539_v1 = vadd.f32 %v538_v56, %v510_v61 }
  0xb6   : > { %555 = vst [vmem:[%s1035_s12 + $0x10] sm:$0xff] %v539_v1 }
  0xb7   : > { %v482_v2 = vpop.f32.mrf.mxu3 }
  0xb8   : > { %v483_v3 = vadd.f32 %v871_v58, %v482_v2 }
  0xb9   : > { %v543_v8 = vpop.f32.mrf.mxu2 }
  0xba   : > { %v512_v4 = vadd.f32 %v511_v62, %v483_v3  ;;  %v514_v5 = vpop.f32.mrf.mxu1 }
  0xbc   : > { %v541_v6 = vadd.f32 %v540_v0, %v512_v4 }
  0xbe   : > { %556 = vst [vmem:[%s1035_s12 + $0x18] sm:$0xff] %v541_v6 }
  0xbf   : > { %v485_v9 = vpop.f32.mrf.mxu3 }
  0xc0   : > { %v486_v10 = vadd.f32 %v871_v58, %v485_v9 }
  0xc1   : > { %v545_v16 = vpop.f32.mrf.mxu2 }
  0xc2   : > { %v515_v11 = vadd.f32 %v514_v5, %v486_v10  ;;  %v516_v14 = vpop.f32.mrf.mxu1 }
  0xc4   : > { %v544_v12 = vadd.f32 %v543_v8, %v515_v11 }
  0xc6   : > { %557 = vst [vmem:[%s1035_s12 + $0x20] sm:$0xff] %v544_v12 }
  0xc7   : > { %v487_v18 = vpop.f32.mrf.mxu3 }
  0xc8   : > { %v488_v19 = vadd.f32 %v871_v58, %v487_v18 }
  0xc9   : > { %v504_v15 = vpop.f32.mrf.mxu0  ;;  %v548_v29 = vpop.f32.mrf.mxu2 }
  0xca   : > { %v505_v17 = vadd.f32 %v504_v15, %v476_v13  ;;  %v517_v21 = vadd.f32 %v516_v14, %v488_v19  ;;  %v519_v25 = vpop.f32.mrf.mxu1 }
  0xcc   : > { %v534_v20 = vadd.f32 %v533_v54, %v505_v17  ;;  %v546_v22 = vadd.f32 %v545_v16, %v517_v21 }
  0xce   : > { %553 = vst [vmem:[%s1035_s12] sm:$0xff] %v534_v20 }
  0xcf   : > { %558 = vst [vmem:[%s1035_s12 + $0x28] sm:$0xff] %v546_v22  ;;  %v490_v27 = vpop.f32.mrf.mxu3 }
  0xd0   : > { %v491_v28 = vadd.f32 %v871_v58, %v490_v27 }
  0xd1   : > { %v506_v24 = vpop.f32.mrf.mxu0  ;;  %v550_v37 = vpop.f32.mrf.mxu2 }
  0xd2   : > { %v507_v26 = vadd.f32 %v506_v24, %v478_v23  ;;  %v520_v31 = vadd.f32 %v519_v25, %v491_v28  ;;  %v521_v35 = vpop.f32.mrf.mxu1 }
  0xd4   : > { %v536_v30 = vadd.f32 %v535_v55, %v507_v26  ;;  %v549_v32 = vadd.f32 %v548_v29, %v520_v31 }
  0xd6   : > { %554 = vst [vmem:[%s1035_s12 + $0x8] sm:$0xff] %v536_v30 }
  0xd7   : > { %559 = vst [vmem:[%s1035_s12 + $0x30] sm:$0xff] %v549_v32  ;;  %v492_v33 = vpop.f32.mrf.mxu3 }
  0xd8   : > { %v493_v34 = vadd.f32 %v871_v58, %v492_v33 }
  0xda   : > { %v522_v36 = vadd.f32 %v521_v35, %v493_v34 }
  0xdc   : > { %v551_v38 = vadd.f32 %v550_v37, %v522_v36 }
  0xde   : > { %560 = vst [vmem:[%s1035_s12 + $0x38] sm:$0xff] %v551_v38 }
  0xdf PF: > { %s13_s14 = sadd.s32 1, %s894_s14   ;;  %s1058_s12 = smov %s890_s13 }
  0xe0   : > { %p10_p5 = scmp.ge.s32.totalorder %s13_s14, 4   ;;  %s1059_s13 = smov %s1061_s15 }
  0xe2   :  { %12 = sbr.rel (!%p10_p5) target bundleno = 2 (0x2), region = 68 }

// kernel: ssd_forward.11
= control target key start
LH: loop header
LB: loop body
LE: loop exit
PB: predicated region body
PF: predicated region fallthrough
CT: control target
= control target key end

     0   :  { %s1156_s12 = smov 0   ;;  %s1158_s13 = smov 0   ;;  %s1382_s0 = inlined_call_operand.vmem [shape: bf16[512,144], index: 0, kind: input, shape index: {}]   ;;  %s1383_s1 = inlined_call_operand.vmem [shape: bf16[144,128], index: 1, kind: input, shape index: {}]   ;;  %s1384_s2 = inlined_call_operand.vmem [shape: f32[1,128], index: 2, kind: input, shape index: {}]   ;;  %s1385_s3 = inlined_call_operand.vmem [shape: f32[512,128], index: 3, kind: output, shape index: {}]  }
   0x1   :  { %s1160_s14 = smov 0  }
   0x2 LB: > { %s25_s15 = sadd.s32 1, %s1130_s13  ;;  %p848_p0 = scmp.ge.s32.totalorder %s1134_s14, 1  ;;  %s1134_s14 = sphi %s1160_s14, %s13_s14   ;;  %s1130_s13 = sphi %s1158_s13, %s1387_s13   ;;  %s1126_s12 = sphi %s1156_s12, %s1386_s12  }
   0x3   : > { %p27_p1 = scmp.ge.s32.totalorder %s25_s15, 2  ;;  %p170_p2 = scmp.lt.s32.totalorder %s1134_s14, 3 }
   0x5   : > { %s1389_s15 = smov (%p27_p1, %s25_s15), 0  ;;  %p171_p3 = pnand %p848_p0, %p170_p2 }
   0x6   : > { %s849_s20 = sshll.u32 (!%p171_p3), %s1126_s12, 5 }
   0x7   : > { %174 = sbr.rel (%p171_p3) target bundleno = 301 (0x12d), region = 32  ;;  %p206_p4 = scmp.lt.s32.totalorder (!%p171_p3), %s849_s20, 63 }
   0xc   : > { %v1076_v0 = vld [vmem:[%s1383_s1 + $0x38] sm:$0xff]  ;;  %v1077_v1 = vld [vmem:[%s1383_s1 + $0x40] sm:$0xff]  ;;  %v1075_v2 = vld [vmem:[%s1383_s1 + $0x30] sm:$0xff]  ;;  %s1391_s20 = smov (!%p206_p4, %s849_s20), 63  ;;  %vm481_vm0 = vcmask 130048  }
   0xd   : > { %530 = vmatpush.bf16.msra.mxu0 %v1076_v0  ;;  %1078 = vmatpush.bf16.msra.mxu2 %v1076_v0  ;;  %s1036_s23 = sshll.u32 %s1391_s20, 3  ;;  %v1074_v3 = vld [vmem:[%s1383_s1 + $0x28] sm:$0xff]  ;;  %v1073_v7 = vld [vmem:[%s1383_s1 + $0x20] sm:$0xff]  ;;  %v1072_v11 = vld [vmem:[%s1383_s1 + $0x18] sm:$0xff] }
   0xe   : > { %626 = vmatpush.bf16.msra.mxu1 %v1077_v1  ;;  %1086 = vmatpush.bf16.msra.mxu3 %v1077_v1  ;;  %s1191_s26 = scalar_lea.vmem %s1382_s0, %s1036_s23  ;;  %v1071_v12 = vld [vmem:[%s1383_s1 + $0x10] sm:$0xff]  ;;  %v1070_v16 = vld [vmem:[%s1383_s1 + $0x8] sm:$0xff]  ;;  %v1069_v19 = vld [vmem:[%s1383_s1] sm:$0xff]  ;;  %s1302_s19 = scalar_lea.vmem %s1385_s3, %s1036_s23 }
   0xf   : > { %v1037_v4 = vld [vmem:[%s1191_s26 + $0x4] sm:$0xf]  ;;  %v858_v5 = vld [vmem:[%s1191_s26 + $0x8] sm:$0xf0]  ;;  %v1055_v8 = vld [vmem:[%s1191_s26 + $0x94] sm:$0xf] }
  0x10   : > { %v861_v6 = vor.u32 %v1037_v4, %v858_v5  ;;  %v930_v9 = vld [vmem:[%s1191_s26 + $0x98] sm:$0xf0]  ;;  %v1039_v13 = vld [vmem:[%s1191_s26 + $0x14] sm:$0xf]  ;;  %v1057_v17 = vld [vmem:[%s1191_s26 + $0xa4] sm:$0xf] }
  0x11   : > { %531 = vmatpush.bf16.msra.mxu0 %v1075_v2  ;;  %1079 = vmatpush.bf16.msra.mxu2 %v1075_v2  ;;  %v933_v10 = vor.u32 %v1055_v8, %v930_v9  ;;  %v866_v14 = vld [vmem:[%s1191_s26 + $0x18] sm:$0xf0]  ;;  %v938_v18 = vld [vmem:[%s1191_s26 + $0xa8] sm:$0xf0]  ;;  %v856_v20 = vld [vmem:[%s1191_s26] sm:$0xf] }
  0x12   : > { %1018 = vmatmul.msk.bf16.vlgmr.msra.gmra.mxu1 %vm481_vm0, %v861_v6  ;;  %v869_v15 = vor.u32 %v1039_v13, %v866_v14  ;;  %v1038_v21 = vld [vmem:[%s1191_s26 + $0x4] sm:$0xf0]  ;;  %v941_v22 = vor.u32 %v1057_v17, %v938_v18  ;;  %v920_v23 = vld [vmem:[%s1191_s26 + $0x80] sm:$0xf]  ;;  %v1041_v27 = vld [vmem:[%s1191_s26 + $0x24] sm:$0xf] }
  0x13   : > { %1027 = vmatmul.msk.bf16.vlgmr.msra.gmra.mxu3 %vm481_vm0, %v933_v10  ;;  %v1054_v24 = vld [vmem:[%s1191_s26 + $0x84] sm:$0xf0]  ;;  %v857_v25 = vor.u32 %v1038_v21, %v856_v20  ;;  %v874_v28 = vld [vmem:[%s1191_s26 + $0x28] sm:$0xf0]  ;;  %v1059_v30 = vld [vmem:[%s1191_s26 + $0xb4] sm:$0xf] }
  0x14   : > { %v921_v26 = vor.u32 %v1054_v24, %v920_v23  ;;  %v877_v29 = vor.u32 %v1041_v27, %v874_v28  ;;  %v946_v31 = vld [vmem:[%s1191_s26 + $0xb8] sm:$0xf0]  ;;  %v864_v32 = vld [vmem:[%s1191_s26 + $0x10] sm:$0xf]  ;;  %v1040_v33 = vld [vmem:[%s1191_s26 + $0x14] sm:$0xf0] }
  0x15   : > { %532 = vmatpush.bf16.msra.mxu0 %v1074_v3  ;;  %1080 = vmatpush.bf16.msra.mxu2 %v1074_v3  ;;  %v949_v34 = vor.u32 %v1059_v30, %v946_v31  ;;  %v928_v35 = vld [vmem:[%s1191_s26 + $0x90] sm:$0xf]  ;;  %v1056_v36 = vld [vmem:[%s1191_s26 + $0x94] sm:$0xf0]  ;;  %v865_v37 = vor.u32 %v1040_v33, %v864_v32  ;;  %v1043_v39 = vld [vmem:[%s1191_s26 + $0x34] sm:$0xf] }
  0x16   : > { %v929_v38 = vor.u32 %v1056_v36, %v928_v35  ;;  %v882_v40 = vld [vmem:[%s1191_s26 + $0x38] sm:$0xf0]  ;;  %v1061_v42 = vld [vmem:[%s1191_s26 + $0xc4] sm:$0xf]  ;;  %v954_v43 = vld [vmem:[%s1191_s26 + $0xc8] sm:$0xf0] }
  0x17   : > { %v885_v41 = vor.u32 %v1043_v39, %v882_v40  ;;  %v872_v44 = vld [vmem:[%s1191_s26 + $0x20] sm:$0xf]  ;;  %v1042_v45 = vld [vmem:[%s1191_s26 + $0x24] sm:$0xf0]  ;;  %v957_v46 = vor.u32 %v1061_v42, %v954_v43  ;;  %v1045_v51 = vld [vmem:[%s1191_s26 + $0x44] sm:$0xf] }
  0x18   : > { %v936_v47 = vld [vmem:[%s1191_s26 + $0xa0] sm:$0xf]  ;;  %v1058_v48 = vld [vmem:[%s1191_s26 + $0xa4] sm:$0xf0]  ;;  %v873_v49 = vor.u32 %v1042_v45, %v872_v44  ;;  %v890_v52 = vld [vmem:[%s1191_s26 + $0x48] sm:$0xf0] }
  0x19   : > { %533 = vmatpush.bf16.msra.mxu0 %v1073_v7  ;;  %1081 = vmatpush.bf16.msra.mxu2 %v1073_v7  ;;  %v937_v50 = vor.u32 %v1058_v48, %v936_v47  ;;  %v893_v53 = vor.u32 %v1045_v51, %v890_v52  ;;  %v1063_v54 = vld [vmem:[%s1191_s26 + $0xd4] sm:$0xf]  ;;  %v962_v55 = vld [vmem:[%s1191_s26 + $0xd8] sm:$0xf0]  ;;  %v880_v56 = vld [vmem:[%s1191_s26 + $0x30] sm:$0xf] }
  0x1a   : > { %v1044_v57 = vld [vmem:[%s1191_s26 + $0x34] sm:$0xf0]  ;;  %v965_v58 = vor.u32 %v1063_v54, %v962_v55  ;;  %v944_v59 = vld [vmem:[%s1191_s26 + $0xb0] sm:$0xf]  ;;  %v1047_v63 = vld [vmem:[%s1191_s26 + $0x54] sm:$0xf] }
  0x1b   : > { %v1060_v60 = vld [vmem:[%s1191_s26 + $0xb4] sm:$0xf0]  ;;  %v881_v61 = vor.u32 %v1044_v57, %v880_v56  ;;  %v898_v0 = vld [vmem:[%s1191_s26 + $0x58] sm:$0xf0]  ;;  %v1065_v2 = vld [vmem:[%s1191_s26 + $0xe4] sm:$0xf] }
  0x1c   : > { %v945_v62 = vor.u32 %v1060_v60, %v944_v59  ;;  %v901_v1 = vor.u32 %v1047_v63, %v898_v0  ;;  %v970_v3 = vld [vmem:[%s1191_s26 + $0xe8] sm:$0xf0]  ;;  %v888_v4 = vld [vmem:[%s1191_s26 + $0x40] sm:$0xf]  ;;  %v1046_v5 = vld [vmem:[%s1191_s26 + $0x44] sm:$0xf0] }
  0x1d   : > { %534 = vmatpush.bf16.msra.mxu0 %v1072_v11  ;;  %1082 = vmatpush.bf16.msra.mxu2 %v1072_v11  ;;  %v973_v6 = vor.u32 %v1065_v2, %v970_v3  ;;  %v952_v7 = vld [vmem:[%s1191_s26 + $0xc0] sm:$0xf]  ;;  %v1062_v8 = vld [vmem:[%s1191_s26 + $0xc4] sm:$0xf0]  ;;  %v889_v9 = vor.u32 %v1046_v5, %v888_v4  ;;  %v1049_v11 = vld [vmem:[%s1191_s26 + $0x64] sm:$0xf] }
  0x1e   : > { %v953_v10 = vor.u32 %v1062_v8, %v952_v7  ;;  %v1067_v14 = vld [vmem:[%s1191_s26 + $0xf4] sm:$0xf]  ;;  %v1048_v17 = vld [vmem:[%s1191_s26 + $0x54] sm:$0xf0]  ;;  %v914_v24 = vld [vmem:[%s1191_s26 + $0x78] sm:$0xf0] }
  0x1f   : > { %v1064_v20 = vld [vmem:[%s1191_s26 + $0xd4] sm:$0xf0]  ;;  %v1051_v23 = vld [vmem:[%s1191_s26 + $0x74] sm:$0xf]  ;;  %v1050_v27 = vld [vmem:[%s1191_s26 + $0x64] sm:$0xf0] }
  0x20   : > { %v968_v28 = vld [vmem:[%s1191_s26 + $0xe0] sm:$0xf]  ;;  %v1053_v32 = vld [vmem:[%s1191_s26 + $0x84] sm:$0xf]  ;;  %v922_v33 = vld [vmem:[%s1191_s26 + $0x88] sm:$0xf0] }
  0x21   : > { %535 = vmatpush.bf16.msra.mxu0 %v1071_v12  ;;  %1083 = vmatpush.bf16.msra.mxu2 %v1071_v12  ;;  %v906_v12 = vld [vmem:[%s1191_s26 + $0x68] sm:$0xf0]  ;;  %v912_v36 = vld [vmem:[%s1191_s26 + $0x70] sm:$0xf]  ;;  %v1068_v39 = vld [vmem:[%s1191_s26 + $0xf4] sm:$0xf0] }
  0x22   : > { %1019 = vmatmul.msk.bf16.gmra.mxu1 %vm481_vm0, %v869_v15  ;;  %v909_v13 = vor.u32 %v1049_v11, %v906_v12  ;;  %v978_v15 = vld [vmem:[%s1191_s26 + $0xf8] sm:$0xf0]  ;;  %v1294_v44 = vld [vmem:[%s1384_s2] ss:$0 sm:$0xff] }
  0x23   : > { %1028 = vmatmul.msk.bf16.gmra.mxu3 %vm481_vm0, %v941_v22  ;;  %v981_v18 = vor.u32 %v1067_v14, %v978_v15 }
  0x25   : > { %536 = vmatpush.bf16.msra.mxu0 %v1070_v16  ;;  %1084 = vmatpush.bf16.msra.mxu2 %v1070_v16  ;;  %v896_v16 = vld [vmem:[%s1191_s26 + $0x50] sm:$0xf] }
  0x26   : > { %v897_v21 = vor.u32 %v1048_v17, %v896_v16 }
  0x29   : > { %537 = vmatpush.bf16.msra.mxu0 %v1069_v19  ;;  %1085 = vmatpush.bf16.msra.mxu2 %v1069_v19  ;;  %v960_v19 = vld [vmem:[%s1191_s26 + $0xd0] sm:$0xf] }
  0x2a   : > { %v961_v22 = vor.u32 %v1064_v20, %v960_v19 }
  0x2c   : > { %538 = vmatmul.bf16.vlgmr.msra.gmra.mxu0 %v857_v25  ;;  %578 = vmatmul.bf16.vlgmr.msra.gmra.mxu2 %v921_v26  ;;  %v917_v25 = vor.u32 %v1051_v23, %v914_v24  ;;  %v904_v26 = vld [vmem:[%s1191_s26 + $0x60] sm:$0xf] }
  0x2d   : > { %v905_v30 = vor.u32 %v1050_v27, %v904_v26 }
  0x32   : > { %1020 = vmatmul.msk.bf16.gmra.mxu1 %vm481_vm0, %v877_v29  ;;  %v1066_v29 = vld [vmem:[%s1191_s26 + $0xe4] sm:$0xf0] }
  0x33   : > { %1029 = vmatmul.msk.bf16.gmra.mxu3 %vm481_vm0, %v949_v34  ;;  %v969_v31 = vor.u32 %v1066_v29, %v968_v28  ;;  %v925_v34 = vor.u32 %v1053_v32, %v922_v33 }
  0x3c   : > { %543 = vmatmul.bf16.gmra.mxu0 %v865_v37  ;;  %583 = vmatmul.bf16.gmra.mxu2 %v929_v38  ;;  %v1052_v37 = vld [vmem:[%s1191_s26 + $0x74] sm:$0xf0]  ;;  %v976_v38 = vld [vmem:[%s1191_s26 + $0xf0] sm:$0xf] }
  0x3d   : > { %v913_v40 = vor.u32 %v1052_v37, %v912_v36 }
  0x42   : > { %1021 = vmatmul.msk.bf16.gmra.mxu1 %vm481_vm0, %v885_v41  ;;  %v977_v41 = vor.u32 %v1068_v39, %v976_v38 }
  0x43   : > { %1030 = vmatmul.msk.bf16.gmra.mxu3 %vm481_vm0, %v957_v46 }
  0x4c   : > { %548 = vmatmul.bf16.gmra.mxu0 %v873_v49  ;;  %588 = vmatmul.bf16.gmra.mxu2 %v937_v50 }
  0x52   : > { %1022 = vmatmul.msk.bf16.gmra.mxu1 %vm481_vm0, %v893_v53 }
  0x53   : > { %1031 = vmatmul.msk.bf16.gmra.mxu3 %vm481_vm0, %v965_v58 }
  0x5c   : > { %553 = vmatmul.bf16.gmra.mxu0 %v881_v61  ;;  %593 = vmatmul.bf16.gmra.mxu2 %v945_v62 }
  0x62   : > { %1023 = vmatmul.msk.bf16.gmra.mxu1 %vm481_vm0, %v901_v1 }
  0x63   : > { %1032 = vmatmul.msk.bf16.gmra.mxu3 %vm481_vm0, %v973_v6 }
  0x6c   : > { %558 = vmatmul.bf16.gmra.mxu0 %v889_v9  ;;  %598 = vmatmul.bf16.gmra.mxu2 %v953_v10 }
  0x72   : > { %1024 = vmatmul.msk.bf16.gmra.mxu1 %vm481_vm0, %v909_v13 }
  0x73   : > { %1033 = vmatmul.msk.bf16.gmra.mxu3 %vm481_vm0, %v981_v18 }
  0x7c   : > { %563 = vmatmul.bf16.gmra.mxu0 %v897_v21  ;;  %603 = vmatmul.bf16.gmra.mxu2 %v961_v22 }
  0x82   : > { %1025 = vmatmul.msk.bf16.gmra.mxu1 %vm481_vm0, %v917_v25 }
  0x8c   : > { %568 = vmatmul.bf16.gmra.mxu0 %v905_v30  ;;  %608 = vmatmul.bf16.gmra.mxu2 %v969_v31 }
  0x8f   : > { %v628_v35 = vpop.f32.mrf.mxu1 }
  0x92   : > { %1026 = vmatmul.msk.bf16.gmra.mxu1 %vm481_vm0, %v925_v34 }
  0x96   : > { %v673_v45 = vpop.f32.mrf.mxu3 }
  0x97   : > { %v630_v42 = vpop.f32.mrf.mxu1 }
  0x9c   : > { %573 = vmatmul.bf16.gmra.mxu0 %v913_v40  ;;  %613 = vmatmul.bf16.gmra.mxu2 %v977_v41 }
  0x9e   : > { %v675_v54 = vpop.f32.mrf.mxu3 }
  0x9f   : > { %v633_v43 = vpop.f32.mrf.mxu1 }
  0xa6   : > { %v678_v61 = vpop.f32.mrf.mxu3 }
  0xa7   : > { %v635_v48 = vpop.f32.mrf.mxu1 }
  0xa9   : > { %v539_v46 = vpop.f32.mrf.mxu0 }
  0xaa   : > { %v540_v47 = vadd.f32 %v1294_v44, %v539_v46 }
  0xac   : > { %v629_v49 = vadd.f32 %v628_v35, %v540_v47 }
  0xae   : > { %708 = vst [vmem:[%s1302_s19] sm:$0xff] %v629_v49  ;;  %v680_v5 = vpop.f32.mrf.mxu3 }
  0xaf   : > { %v1305_v50 = vpop.f32.mrf.mxu2  ;;  %v638_v53 = vpop.f32.mrf.mxu1 }
  0xb1   : > { %v541_v51 = vpop.f32.mrf.mxu0 }
  0xb2   : > { %v542_v52 = vadd.f32 %v1294_v44, %v541_v51 }
  0xb4   : > { %v631_v55 = vadd.f32 %v630_v42, %v542_v52 }
  0xb6   : > { %709 = vst [vmem:[%s1302_s19 + $0x8] sm:$0xff] %v631_v55  ;;  %v683_v14 = vpop.f32.mrf.mxu3 }
  0xb7   : > { %v1309_v56 = vpop.f32.mrf.mxu2  ;;  %v640_v59 = vpop.f32.mrf.mxu1 }
  0xb9   : > { %v544_v57 = vpop.f32.mrf.mxu0 }
  0xba   : > { %v545_v58 = vadd.f32 %v1294_v44, %v544_v57 }
  0xbc   : > { %v634_v60 = vadd.f32 %v633_v43, %v545_v58 }
  0xbe   : > { %710 = vst [vmem:[%s1302_s19 + $0x10] sm:$0xff] %v634_v60  ;;  %v685_v26 = vpop.f32.mrf.mxu3 }
  0xbf   : > { %v584_v62 = vpop.f32.mrf.mxu2  ;;  %v643_v2 = vpop.f32.mrf.mxu1 }
  0xc0   : > { %v585_v63 = vadd.f32 %v1294_v44, %v584_v62 }
  0xc1   : > { %v546_v0 = vpop.f32.mrf.mxu0 }
  0xc2   : > { %v547_v1 = vadd.f32 %v1294_v44, %v546_v0  ;;  %v674_v3 = vadd.f32 %v673_v45, %v585_v63 }
  0xc4   : > { %v636_v4 = vadd.f32 %v635_v48, %v547_v1  ;;  %726 = vst [vmem:[%s1302_s19 + $0x90] sm:$0xff] %v674_v3 }
  0xc6   : > { %711 = vst [vmem:[%s1302_s19 + $0x18] sm:$0xff] %v636_v4  ;;  %v688_v36 = vpop.f32.mrf.mxu3 }
  0xc7   : > { %v586_v6 = vpop.f32.mrf.mxu2  ;;  %v645_v10 = vpop.f32.mrf.mxu1 }
  0xc8   : > { %v587_v7 = vadd.f32 %v1294_v44, %v586_v6 }
  0xc9   : > { %v549_v8 = vpop.f32.mrf.mxu0 }
  0xca   : > { %v550_v9 = vadd.f32 %v1294_v44, %v549_v8  ;;  %v676_v11 = vadd.f32 %v675_v54, %v587_v7 }
  0xcc   : > { %v639_v12 = vadd.f32 %v638_v53, %v550_v9  ;;  %727 = vst [vmem:[%s1302_s19 + $0x98] sm:$0xff] %v676_v11 }
  0xce   : > { %712 = vst [vmem:[%s1302_s19 + $0x20] sm:$0xff] %v639_v12  ;;  %v690_v45 = vpop.f32.mrf.mxu3 }
  0xcf   : > { %v589_v13 = vpop.f32.mrf.mxu2  ;;  %v648_v18 = vpop.f32.mrf.mxu1 }
  0xd0   : > { %v590_v15 = vadd.f32 %v1294_v44, %v589_v13 }
  0xd1   : > { %v551_v16 = vpop.f32.mrf.mxu0 }
  0xd2   : > { %v552_v17 = vadd.f32 %v1294_v44, %v551_v16  ;;  %v679_v19 = vadd.f32 %v678_v61, %v590_v15  ;;  %v580_v16 = vadd.f32 %v1294_v44, %v1305_v50  ;;  %v582_v50 = vadd.f32 %v1294_v44, %v1309_v56 }
  0xd4   : > { %v641_v20 = vadd.f32 %v640_v59, %v552_v17  ;;  %728 = vst [vmem:[%s1302_s19 + $0xa0] sm:$0xff] %v679_v19 }
  0xd6   : > { %713 = vst [vmem:[%s1302_s19 + $0x28] sm:$0xff] %v641_v20  ;;  %v693_v55 = vpop.f32.mrf.mxu3 }
  0xd7   : > { %v591_v21 = vpop.f32.mrf.mxu2  ;;  %v650_v25 = vpop.f32.mrf.mxu1 }
  0xd8   : > { %v592_v22 = vadd.f32 %v1294_v44, %v591_v21 }
  0xd9   : > { %v554_v23 = vpop.f32.mrf.mxu0 }
  0xda   : > { %v555_v24 = vadd.f32 %v1294_v44, %v554_v23  ;;  %v681_v27 = vadd.f32 %v680_v5, %v592_v22 }
  0xdc   : > { %v644_v28 = vadd.f32 %v643_v2, %v555_v24  ;;  %729 = vst [vmem:[%s1302_s19 + $0xa8] sm:$0xff] %v681_v27 }
  0xde   : > { %714 = vst [vmem:[%s1302_s19 + $0x30] sm:$0xff] %v644_v28  ;;  %v695_v4 = vpop.f32.mrf.mxu3 }
  0xdf   : > { %v594_v29 = vpop.f32.mrf.mxu2  ;;  %v653_v33 = vpop.f32.mrf.mxu1 }
  0xe0   : > { %v595_v30 = vadd.f32 %v1294_v44, %v594_v29 }
  0xe1   : > { %v556_v31 = vpop.f32.mrf.mxu0 }
  0xe2   : > { %v557_v32 = vadd.f32 %v1294_v44, %v556_v31  ;;  %v684_v34 = vadd.f32 %v683_v14, %v595_v30 }
  0xe4   : > { %v646_v35 = vadd.f32 %v645_v10, %v557_v32  ;;  %730 = vst [vmem:[%s1302_s19 + $0xb0] sm:$0xff] %v684_v34 }
  0xe6   : > { %715 = vst [vmem:[%s1302_s19 + $0x38] sm:$0xff] %v646_v35  ;;  %v698_v14 = vpop.f32.mrf.mxu3 }
  0xe7   : > { %v596_v37 = vpop.f32.mrf.mxu2  ;;  %v655_v41 = vpop.f32.mrf.mxu1 }
  0xe8   : > { %v597_v38 = vadd.f32 %v1294_v44, %v596_v37 }
  0xe9   : > { %v559_v39 = vpop.f32.mrf.mxu0 }
  0xea   : > { %v560_v40 = vadd.f32 %v1294_v44, %v559_v39  ;;  %v686_v42 = vadd.f32 %v685_v26, %v597_v38 }
  0xec   : > { %v649_v43 = vadd.f32 %v648_v18, %v560_v40  ;;  %731 = vst [vmem:[%s1302_s19 + $0xb8] sm:$0xff] %v686_v42 }
  0xee   : > { %716 = vst [vmem:[%s1302_s19 + $0x40] sm:$0xff] %v649_v43  ;;  %v700_v24 = vpop.f32.mrf.mxu3 }
  0xef   : > { %v599_v46 = vpop.f32.mrf.mxu2  ;;  %v658_v51 = vpop.f32.mrf.mxu1 }
  0xf0   : > { %v600_v47 = vadd.f32 %v1294_v44, %v599_v46 }
  0xf1   : > { %v561_v48 = vpop.f32.mrf.mxu0 }
  0xf2   : > { %v562_v49 = vadd.f32 %v1294_v44, %v561_v48  ;;  %v689_v52 = vadd.f32 %v688_v36, %v600_v47 }
  0xf4   : > { %v651_v53 = vadd.f32 %v650_v25, %v562_v49  ;;  %732 = vst [vmem:[%s1302_s19 + $0xc0] sm:$0xff] %v689_v52 }
  0xf6   : > { %717 = vst [vmem:[%s1302_s19 + $0x48] sm:$0xff] %v651_v53 }
  0xf7   : > { %v601_v54 = vpop.f32.mrf.mxu2  ;;  %v660_v60 = vpop.f32.mrf.mxu1 }
  0xf8   : > { %v602_v57 = vadd.f32 %v1294_v44, %v601_v54 }
  0xf9   : > { %v564_v58 = vpop.f32.mrf.mxu0 }
  0xfa   : > { %v565_v59 = vadd.f32 %v1294_v44, %v564_v58  ;;  %v691_v61 = vadd.f32 %v690_v45, %v602_v57 }
  0xfc   : > { %v654_v62 = vadd.f32 %v653_v33, %v565_v59  ;;  %733 = vst [vmem:[%s1302_s19 + $0xc8] sm:$0xff] %v691_v61  ;;  %v703_v33 = vpop.f32.mrf.mxu3 }
  0xfe   : > { %718 = vst [vmem:[%s1302_s19 + $0x50] sm:$0xff] %v654_v62 }
  0xff   : > { %v604_v63 = vpop.f32.mrf.mxu2  ;;  %v663_v3 = vpop.f32.mrf.mxu1 }
 0x100   : > { %v605_v0 = vadd.f32 %v1294_v44, %v604_v63 }
 0x101   : > { %v566_v1 = vpop.f32.mrf.mxu0 }
 0x102   : > { %v567_v2 = vadd.f32 %v1294_v44, %v566_v1  ;;  %v694_v5 = vadd.f32 %v693_v55, %v605_v0 }
 0x104   : > { %v656_v6 = vadd.f32 %v655_v41, %v567_v2  ;;  %734 = vst [vmem:[%s1302_s19 + $0xd0] sm:$0xff] %v694_v5  ;;  %v705_v41 = vpop.f32.mrf.mxu3 }
 0x106   : > { %719 = vst [vmem:[%s1302_s19 + $0x58] sm:$0xff] %v656_v6 }
 0x107   : > { %v606_v7 = vpop.f32.mrf.mxu2  ;;  %v665_v11 = vpop.f32.mrf.mxu1 }
 0x108   : > { %v607_v8 = vadd.f32 %v1294_v44, %v606_v7 }
 0x109   : > { %v569_v9 = vpop.f32.mrf.mxu0 }
 0x10a   : > { %v570_v10 = vadd.f32 %v1294_v44, %v569_v9  ;;  %v696_v12 = vadd.f32 %v695_v4, %v607_v8 }
 0x10c   : > { %v659_v13 = vadd.f32 %v658_v51, %v570_v10  ;;  %735 = vst [vmem:[%s1302_s19 + $0xd8] sm:$0xff] %v696_v12 }
 0x10e   : > { %720 = vst [vmem:[%s1302_s19 + $0x60] sm:$0xff] %v659_v13 }
 0x10f   : > { %v609_v15 = vpop.f32.mrf.mxu2  ;;  %v668_v20 = vpop.f32.mrf.mxu1 }
 0x110   : > { %v610_v17 = vadd.f32 %v1294_v44, %v609_v15  ;;  %v669_v22 = vadd.f32 %v668_v20, %v580_v16 }
 0x111   : > { %v571_v18 = vpop.f32.mrf.mxu0 }
 0x112   : > { %v572_v19 = vadd.f32 %v1294_v44, %v571_v18  ;;  %v699_v21 = vadd.f32 %v698_v14, %v610_v17  ;;  %724 = vst [vmem:[%s1302_s19 + $0x80] sm:$0xff] %v669_v22 }
 0x114   : > { %v661_v23 = vadd.f32 %v660_v60, %v572_v19  ;;  %736 = vst [vmem:[%s1302_s19 + $0xe0] sm:$0xff] %v699_v21 }
 0x116   : > { %721 = vst [vmem:[%s1302_s19 + $0x68] sm:$0xff] %v661_v23 }
 0x117   : > { %v611_v25 = vpop.f32.mrf.mxu2  ;;  %v670_v29 = vpop.f32.mrf.mxu1 }
 0x118   : > { %v612_v26 = vadd.f32 %v1294_v44, %v611_v25  ;;  %v671_v31 = vadd.f32 %v670_v29, %v582_v50 }
 0x119   : > { %v574_v27 = vpop.f32.mrf.mxu0 }
 0x11a   : > { %v575_v28 = vadd.f32 %v1294_v44, %v574_v27  ;;  %v701_v30 = vadd.f32 %v700_v24, %v612_v26  ;;  %725 = vst [vmem:[%s1302_s19 + $0x88] sm:$0xff] %v671_v31 }
 0x11c   : > { %v664_v32 = vadd.f32 %v663_v3, %v575_v28  ;;  %737 = vst [vmem:[%s1302_s19 + $0xe8] sm:$0xff] %v701_v30 }
 0x11e   : > { %722 = vst [vmem:[%s1302_s19 + $0x70] sm:$0xff] %v664_v32 }
 0x11f   : > { %v614_v34 = vpop.f32.mrf.mxu2 }
 0x120   : > { %v615_v35 = vadd.f32 %v1294_v44, %v614_v34 }
 0x121   : > { %v576_v56 = vpop.f32.mrf.mxu0 }
 0x122   : > { %v577_v36 = vadd.f32 %v1294_v44, %v576_v56  ;;  %v704_v37 = vadd.f32 %v703_v33, %v615_v35 }
 0x124   : > { %v666_v38 = vadd.f32 %v665_v11, %v577_v36  ;;  %738 = vst [vmem:[%s1302_s19 + $0xf0] sm:$0xff] %v704_v37 }
 0x126   : > { %723 = vst [vmem:[%s1302_s19 + $0x78] sm:$0xff] %v666_v38 }
 0x127   : > { %v616_v39 = vpop.f32.mrf.mxu2 }
 0x128   : > { %v617_v40 = vadd.f32 %v1294_v44, %v616_v39 }
 0x12a   : > { %v706_v42 = vadd.f32 %v705_v41, %v617_v40 }
 0x12c   : > { %739 = vst [vmem:[%s1302_s19 + $0xf8] sm:$0xff] %v706_v42 }
 0x12d PF: > { %s13_s14 = sadd.s32 1, %s1134_s14   ;;  %s1386_s12 = smov %s1130_s13 }
 0x12e   : > { %p10_p5 = scmp.ge.s32.totalorder %s13_s14, 4   ;;  %s1387_s13 = smov %s1389_s15 }
 0x130   :  { %12 = sbr.rel (!%p10_p5) target bundleno = 2 (0x2), region = 68 }

</bundles_post_ra>
